<compile_context>
chip_gen: v7x
topology: tpu7x:2x2x1
jax: 0.10.0
libtpu: 0.0.40
codegen_flags: <defaults>
</compile_context>

<pallas_src>
import functools

import jax
import jax.numpy as jnp
from jax.experimental import pallas as pl
from jax.experimental.pallas import tpu as pltpu


# ----------------------------------------------------------------------------
# Decoder layer kernel: one q-tile of one batch element per grid point.
# Grid = (B, T // q_tile); weights are replicated (constant index map).
# Self/cross K/V caches live in VMEM scratch, rebuilt only when q-tile == 0.
# ----------------------------------------------------------------------------
def _decoder_layer_kernel(trg_ref, src_ref, tmask_ref, smask_ref,
                          ln_g_ref, ln_b_ref,
                          wq_ref, bq_ref, wkv_ref, bkv_ref, wo_ref, bo_ref,
                          w1_ref, b1_ref, w2_ref, b2_ref,
                          fin_g_ref, fin_b_ref,
                          out_ref,
                          k_self_ref, v_self_ref, k_cross_ref, v_cross_ref,
                          *, num_heads, q_tile, apply_final_norm):
    f32 = jnp.float32
    bf16 = jnp.bfloat16

    T, D = trg_ref.shape
    H = num_heads
    Dh = D // H
    scale = 1.0 / float(Dh) ** 0.5
    qi = pl.program_id(1)

    def layer_norm(v, g, b):
        # statistics in f32
        mu = jnp.mean(v, axis=-1, keepdims=True)
        var = jnp.mean(jnp.square(v - mu), axis=-1, keepdims=True)
        return (v - mu) * jax.lax.rsqrt(var + 1e-5) * g + b

    def to_heads(t):
        # (n, D) -> (H, n, Dh) bf16; head h takes columns [h*Dh, (h+1)*Dh).
        # Uses only Mosaic-friendly layout ops (2D minor transpose, major reshape,
        # swap of the last two dims).  For K/V this runs only once per batch elem.
        n = t.shape[0]
        tb = t.astype(bf16)
        return tb.T.reshape(H, Dh, n).swapaxes(1, 2)

    # ---- K/V caches: built once per batch element (first q-tile only). ----
    @pl.when(qi == 0)
    def _build_kv_caches():
        # self-attention K/V from LN_0(full target sequence); fused K|V projection
        nkv = layer_norm(trg_ref[...], ln_g_ref[0], ln_b_ref[0]).astype(bf16)
        kv_s = jnp.dot(nkv, wkv_ref[0], preferred_element_type=f32) + bkv_ref[0]
        k_self_ref[...] = to_heads(kv_s[:, :D])
        v_self_ref[...] = to_heads(kv_s[:, D:])
        # cross-attention K/V from the raw src representations (streamed as bf16)
        kv_c = jnp.dot(src_ref[...], wkv_ref[1], preferred_element_type=f32) + bkv_ref[1]
        k_cross_ref[...] = to_heads(kv_c[:, :D])
        v_cross_ref[...] = to_heads(kv_c[:, D:])

    # ---- q-tile residual stream (sliced from the per-batch (T, D) block). ----
    q_start = pl.multiple_of(qi * q_tile, q_tile)
    x = trg_ref[pl.ds(q_start, q_tile), :]                    # (TQ, D) f32

    # Additive mask biases: masks streamed as bf16, bias math in f32, broadcast
    # over heads.  TODO(synk): when trg_mask is known-causal, generate it from
    # broadcasted_iota instead of streaming it from HBM at all.
    t_bias = (tmask_ref[...].astype(f32) - 1.0) * 1e9          # (TQ, T)
    s_bias = (smask_ref[...].astype(f32) - 1.0) * 1e9          # (TQ, S)

    def attention(q_in_bf, k_cache_ref, v_cache_ref, bias, idx):
        # Q projection (1/sqrt(Dh) folded in); K/V come from the VMEM caches.
        q = (jnp.dot(q_in_bf, wq_ref[idx], preferred_element_type=f32)
             + bq_ref[idx]) * scale                            # (TQ, D) f32
        qh = to_heads(q)                                       # (H, TQ, Dh) bf16
        kh = k_cache_ref[...]                                  # (H, n_kv, Dh) bf16
        vh = v_cache_ref[...]                                  # (H, n_kv, Dh) bf16

        # Head-batched attention: one dot_general per stage (no per-head loop).
        scores = jnp.einsum('hqd,hkd->hqk', qh, kh,
                            preferred_element_type=f32)        # (H, TQ, n_kv) f32
        scores = scores + bias[None, :, :]
        probs = jax.nn.softmax(scores, axis=-1).astype(bf16)
        ctx = jnp.einsum('hqk,hkd->hqd', probs, vh,
                         preferred_element_type=f32)           # (H, TQ, Dh) f32

        # Reassemble heads on the lane dim, then ONE (TQ, D) x (D, D) Wo matmul.
        ctx_b = ctx.astype(bf16)
        ctx_flat = jnp.concatenate([ctx_b[h] for h in range(H)], axis=-1)  # (TQ, D)
        return jnp.dot(ctx_flat, wo_ref[idx], preferred_element_type=f32) + bo_ref[idx]

    # Sublayer 0: masked target self-attention (pre-norm + residual).
    n0 = layer_norm(x, ln_g_ref[0], ln_b_ref[0]).astype(bf16)
    x = x + attention(n0, k_self_ref, v_self_ref, t_bias, 0)

    # Sublayer 1: source (cross) attention — K/V from the raw src cache.
    n1 = layer_norm(x, ln_g_ref[1], ln_b_ref[1]).astype(bf16)
    x = x + attention(n1, k_cross_ref, v_cross_ref, s_bias, 1)

    # Sublayer 2: position-wise feed-forward net (bf16 MXU, f32 accumulation).
    n2 = layer_norm(x, ln_g_ref[2], ln_b_ref[2]).astype(bf16)
    h = jnp.maximum(jnp.dot(n2, w1_ref[...], preferred_element_type=f32)
                    + b1_ref[...], 0.0).astype(bf16)
    x = x + jnp.dot(h, w2_ref[...], preferred_element_type=f32) + b2_ref[...]

    # TODO(synk): dropout inside SublayerLogic is identity here (eval mode).

    if apply_final_norm:          # Decoder.norm fused into the last layer's kernel
        x = layer_norm(x, fin_g_ref[...], fin_b_ref[...])

    out_ref[...] = x.astype(out_ref.dtype)


# ----------------------------------------------------------------------------
# Wrappers
# ----------------------------------------------------------------------------
def _vmem_limit_bytes():
    # ~96 MiB on v5e/v6e (128 MiB physical), ~48 MiB on v7x (64 MiB physical).
    try:
        cap = pltpu.get_tpu_info().vmem_capacity_bytes
        return int(min(96 * 2**20, (cap * 3) // 4))
    except Exception:
        return 48 * 2**20


def decoder_layer(trg, src_bf, tmask_bf, smask_bf, p, fin_g, fin_b, *,
                  num_heads, apply_final_norm, q_tile=None):
    B, T, D = trg.shape
    S = src_bf.shape[1]
    F = p["w1"].shape[1]
    H = num_heads
    assert D % H == 0
    Dh = D // H

    if q_tile is None:
        # TODO(synk): for very long T on v7x, drop q_tile to 128 / add a kv-tile
        # loop with online softmax to bound the (H, q_tile, T) score intermediate.
        if T > 256 and T % 256 == 0:
            q_tile = 256
        elif T > 128 and T % 128 == 0:
            q_tile = 128
        else:
            q_tile = T
    assert T % q_tile == 0
    nq = T // q_tile

    kernel = functools.partial(_decoder_layer_kernel, num_heads=H, q_tile=q_tile,
                               apply_final_norm=apply_final_norm)

    def build_and_run(single_buffer_weights):
        def rep_spec(shape):
            # Replicated block (constant index map) — fetched once per kernel.
            nd = len(shape)
            index_map = lambda b, q, _n=nd: (0,) * _n
            if single_buffer_weights:
                try:
                    # Single-buffer constant weight blocks: halves their VMEM
                    # footprint (matters most under v7x's 64 MiB VMEM).
                    return pl.BlockSpec(shape, index_map,
                                        pipeline_mode=pl.Buffered(1))
                except TypeError:
                    pass
            return pl.BlockSpec(shape, index_map)

        grid_spec = pltpu.PrefetchScalarGridSpec(
            num_scalar_prefetch=0,
            grid=(B, nq),
            in_specs=[
                pl.BlockSpec((None, T, D), lambda b, q: (b, 0, 0)),       # trg (full seq, f32)
                pl.BlockSpec((None, S, D), lambda b, q: (b, 0, 0)),       # src (bf16)
                pl.BlockSpec((None, q_tile, T), lambda b, q: (b, q, 0)),  # trg_mask tile (bf16)
                pl.BlockSpec((None, q_tile, S), lambda b, q: (b, q, 0)),  # src_mask tile (bf16)
                rep_spec((3, 1, D)),        # sublayer LN gamma
                rep_spec((3, 1, D)),        # sublayer LN beta
                rep_spec((2, D, D)),        # Wq   [self, cross]
                rep_spec((2, 1, D)),        # bq
                rep_spec((2, D, 2 * D)),    # Wk|Wv fused
                rep_spec((2, 1, 2 * D)),    # bk|bv fused
                rep_spec((2, D, D)),        # Wo
                rep_spec((2, 1, D)),        # bo
                rep_spec((D, F)),           # FFN w1
                rep_spec((1, F)),           # FFN b1
                rep_spec((F, D)),           # FFN w2
                rep_spec((1, D)),           # FFN b2
                rep_spec((1, D)),           # final LN gamma
                rep_spec((1, D)),           # final LN beta
            ],
            out_specs=pl.BlockSpec((None, q_tile, D), lambda b, q: (b, q, 0)),
            scratch_shapes=[
                pltpu.VMEM((H, T, Dh), jnp.bfloat16),   # self-attn K cache
                pltpu.VMEM((H, T, Dh), jnp.bfloat16),   # self-attn V cache
                pltpu.VMEM((H, S, Dh), jnp.bfloat16),   # cross-attn K cache
                pltpu.VMEM((H, S, Dh), jnp.bfloat16),   # cross-attn V cache
            ],
        )
        return pl.pallas_call(
            kernel,
            out_shape=jax.ShapeDtypeStruct((B, T, D), trg.dtype),
            grid_spec=grid_spec,
            compiler_params=pltpu.CompilerParams(
                # q axis must be 'arbitrary': the K/V caches are built at q==0 and
                # reused by the sequential q iterations of each batch element.
                dimension_semantics=("parallel", "arbitrary"),
                vmem_limit_bytes=_vmem_limit_bytes()),
        )(trg, src_bf, tmask_bf, smask_bf,
          p["ln_g"], p["ln_b"], p["wq"], p["bq"], p["wkv"], p["bkv"],
          p["wo"], p["bo"], p["w1"], p["b1"], p["w2"], p["b2"],
          fin_g, fin_b)

    try:
        return build_and_run(True)
    except Exception:
        # Fallback for jax versions where pipeline_mode=pl.Buffered(1) is not
        # honored by pallas_call's automatic pipeliner.
        return build_and_run(False)


def decoder_forward(trg_embeddings, src_representations, trg_mask, src_mask,
                    params, *, num_heads):
    # Hoisted once across all layers: stream src and masks at half width (bf16).
    src_bf = src_representations.astype(jnp.bfloat16)
    tmask_bf = trg_mask.astype(jnp.bfloat16)
    smask_bf = src_mask.astype(jnp.bfloat16)

    x = trg_embeddings                       # residual stream stays f32 in HBM
    n_layers = len(params["layers"])
    fin_g = params["final"]["g"]
    fin_b = params["final"]["b"]
    for i, layer_params in enumerate(params["layers"]):
        x = decoder_layer(x, src_bf, tmask_bf, smask_bf, layer_params, fin_g, fin_b,
                          num_heads=num_heads,
                          apply_final_norm=(i == n_layers - 1))
    return x


# ----------------------------------------------------------------------------
# Deterministic parameter construction (synthetic weights, no checkpoint load)
# Large matrices are stored in bf16 (MXU-native); biases / LN params stay f32.
# K/V projection weights are pre-packed as (2, D, 2D) for the fused K|V matmul.
# ----------------------------------------------------------------------------
def init_params(key, num_layers, D, F):
    def w(k, shape):
        return (0.05 * jax.random.normal(k, shape, jnp.float32)).astype(jnp.bfloat16)

    def b(k, shape):
        return 0.02 * jax.random.normal(k, shape, jnp.float32)

    layers = []
    for i in range(num_layers):
        ks = jax.random.split(jax.random.fold_in(key, i), 10)
        layers.append(dict(
            ln_g=jnp.ones((3, 1, D), jnp.float32),
            ln_b=jnp.zeros((3, 1, D), jnp.float32),
            wq=w(ks[0], (2, D, D)),
            bq=b(ks[1], (2, 1, D)),
            wkv=w(ks[2], (2, D, 2 * D)),
            bkv=b(ks[3], (2, 1, 2 * D)),
            wo=w(ks[4], (2, D, D)),
            bo=b(ks[5], (2, 1, D)),
            w1=w(ks[6], (D, F)),
            b1=b(ks[7], (1, F)),
            w2=w(ks[8], (F, D)),
            b2=b(ks[9], (1, D)),
        ))
    final = dict(g=jnp.ones((1, D), jnp.float32),
                 b=jnp.zeros((1, D), jnp.float32))
    return dict(layers=layers, final=final)


if __name__ == "__main__":
    B, T, S, D = 2, 8, 8, 32        # batch, trg len, src len, model dim
    H, F, L = 4, 64, 2              # heads, ffn width, number of decoder layers

    key = jax.random.PRNGKey(0)
    k_trg, k_src, k_p = jax.random.split(key, 3)

    trg_embeddings = jax.random.normal(k_trg, (B, T, D), jnp.float32)
    src_representations = jax.random.normal(k_src, (B, S, D), jnp.float32)

    # causal target mask, all-ones source mask (1.0 = attend)
    trg_mask = jnp.broadcast_to(jnp.tril(jnp.ones((T, T), jnp.float32)), (B, T, T))
    src_mask = jnp.ones((B, T, S), jnp.float32)

    params = init_params(k_p, L, D, F)

    out = decoder_forward(trg_embeddings, src_representations, trg_mask, src_mask,
                          params, num_heads=H)
    out = jax.block_until_ready(out)
    assert out.shape == (B, T, D)
    assert bool(jnp.all(jnp.isfinite(out)))
    print("KERNEL_OK")
</pallas_src>

<mosaic_0001>
module attributes {stable_mosaic.version = 11 : i64} {
  func.func @_decoder_layer_kernel(%arg0: i32, %arg1: i32, %arg2: memref<1x8x32xf32, #tpu.memory_space<vmem>>, %arg3: memref<1x8x32xbf16, #tpu.memory_space<vmem>>, %arg4: memref<1x8x8xbf16, #tpu.memory_space<vmem>>, %arg5: memref<1x8x8xbf16, #tpu.memory_space<vmem>>, %arg6: memref<3x1x32xf32, #tpu.memory_space<vmem>>, %arg7: memref<3x1x32xf32, #tpu.memory_space<vmem>>, %arg8: memref<2x32x32xbf16, #tpu.memory_space<vmem>>, %arg9: memref<2x1x32xf32, #tpu.memory_space<vmem>>, %arg10: memref<2x32x64xbf16, #tpu.memory_space<vmem>>, %arg11: memref<2x1x64xf32, #tpu.memory_space<vmem>>, %arg12: memref<2x32x32xbf16, #tpu.memory_space<vmem>>, %arg13: memref<2x1x32xf32, #tpu.memory_space<vmem>>, %arg14: memref<32x64xbf16, #tpu.memory_space<vmem>>, %arg15: memref<1x64xf32, #tpu.memory_space<vmem>>, %arg16: memref<64x32xbf16, #tpu.memory_space<vmem>>, %arg17: memref<1x32xf32, #tpu.memory_space<vmem>>, %arg18: memref<1x32xf32, #tpu.memory_space<vmem>>, %arg19: memref<1x32xf32, #tpu.memory_space<vmem>>, %arg20: memref<1x8x32xf32, #tpu.memory_space<vmem>>, %arg21: memref<4x8x8xbf16, #tpu.memory_space<vmem>>, %arg22: memref<4x8x8xbf16, #tpu.memory_space<vmem>>, %arg23: memref<4x8x8xbf16, #tpu.memory_space<vmem>>, %arg24: memref<4x8x8xbf16, #tpu.memory_space<vmem>>) attributes {dimension_semantics = [#tpu.dimension_semantics<parallel>, #tpu.dimension_semantics<arbitrary>], iteration_bounds = array<i64: 2, 1>, scalar_prefetch = 0 : i64, scratch_operands = 4 : i64, tpu.core_type = #tpu.core_type<tc>, window_params = [{transform_indices = @transform_0, window_bounds = array<i64: 1, 8, 32>}, {transform_indices = @transform_1, window_bounds = array<i64: 1, 8, 32>}, {transform_indices = @transform_2, window_bounds = array<i64: 1, 8, 8>}, {transform_indices = @transform_3, window_bounds = array<i64: 1, 8, 8>}, {pipeline_mode = #tpu.pipeline_mode<synchronous>, transform_indices = @transform_4, window_bounds = array<i64: 3, 1, 32>}, {pipeline_mode = #tpu.pipeline_mode<synchronous>, transform_indices = @transform_5, window_bounds = array<i64: 3, 1, 32>}, {pipeline_mode = #tpu.pipeline_mode<synchronous>, transform_indices = @transform_6, window_bounds = array<i64: 2, 32, 32>}, {pipeline_mode = #tpu.pipeline_mode<synchronous>, transform_indices = @transform_7, window_bounds = array<i64: 2, 1, 32>}, {pipeline_mode = #tpu.pipeline_mode<synchronous>, transform_indices = @transform_8, window_bounds = array<i64: 2, 32, 64>}, {pipeline_mode = #tpu.pipeline_mode<synchronous>, transform_indices = @transform_9, window_bounds = array<i64: 2, 1, 64>}, {pipeline_mode = #tpu.pipeline_mode<synchronous>, transform_indices = @transform_10, window_bounds = array<i64: 2, 32, 32>}, {pipeline_mode = #tpu.pipeline_mode<synchronous>, transform_indices = @transform_11, window_bounds = array<i64: 2, 1, 32>}, {pipeline_mode = #tpu.pipeline_mode<synchronous>, transform_indices = @transform_12, window_bounds = array<i64: 32, 64>}, {pipeline_mode = #tpu.pipeline_mode<synchronous>, transform_indices = @transform_13, window_bounds = array<i64: 1, 64>}, {pipeline_mode = #tpu.pipeline_mode<synchronous>, transform_indices = @transform_14, window_bounds = array<i64: 64, 32>}, {pipeline_mode = #tpu.pipeline_mode<synchronous>, transform_indices = @transform_15, window_bounds = array<i64: 1, 32>}, {pipeline_mode = #tpu.pipeline_mode<synchronous>, transform_indices = @transform_16, window_bounds = array<i64: 1, 32>}, {pipeline_mode = #tpu.pipeline_mode<synchronous>, transform_indices = @transform_17, window_bounds = array<i64: 1, 32>}, {transform_indices = @transform_18, window_bounds = array<i64: 1, 8, 32>}]} {
    %c0_i32 = arith.constant 0 : i32
    %0 = arith.cmpi eq, %arg1, %c0_i32 : i32
    %1 = arith.extui %0 : i1 to i32
    %c0_i32_0 = arith.constant 0 : i32
    %2 = arith.cmpi ne, %1, %c0_i32_0 : i32
    scf.if %2 {
      %c0_108 = arith.constant 0 : index
      %c0_109 = arith.constant 0 : index
      %c0_110 = arith.constant 0 : index
      %220 = vector.load %arg2[%c0_108, %c0_109, %c0_110] : memref<1x8x32xf32, #tpu.memory_space<vmem>>, vector<1x8x32xf32>
      %221 = vector.shape_cast %220 : vector<1x8x32xf32> to vector<8x32xf32>
      %c0_111 = arith.constant 0 : index
      %c0_112 = arith.constant 0 : index
      %c0_113 = arith.constant 0 : index
      %222 = vector.load %arg6[%c0_111, %c0_112, %c0_113] : memref<3x1x32xf32, #tpu.memory_space<vmem>>, vector<1x1x32xf32>
      %223 = vector.shape_cast %222 : vector<1x1x32xf32> to vector<1x32xf32>
      %c0_114 = arith.constant 0 : index
      %c0_115 = arith.constant 0 : index
      %c0_116 = arith.constant 0 : index
      %224 = vector.load %arg7[%c0_114, %c0_115, %c0_116] : memref<3x1x32xf32, #tpu.memory_space<vmem>>, vector<1x1x32xf32>
      %225 = vector.shape_cast %224 : vector<1x1x32xf32> to vector<1x32xf32>
      %cst_117 = arith.constant dense<0.000000e+00> : vector<8xf32>
      %226 = vector.multi_reduction <add>, %221, %cst_117 [1] : vector<8x32xf32> to vector<8xf32>
      %227 = vector.shape_cast %226 : vector<8xf32> to vector<8x1xf32>
      %cst_118 = arith.constant 3.200000e+01 : f32
      %228 = vector.broadcast %cst_118 : f32 to vector<8x1xf32>
      %229 = arith.divf %227, %228 : vector<8x1xf32>
      %230 = vector.broadcast %229 : vector<8x1xf32> to vector<8x32xf32>
      %231 = arith.subf %221, %230 : vector<8x32xf32>
      %232 = arith.mulf %231, %231 : vector<8x32xf32>
      %cst_119 = arith.constant dense<0.000000e+00> : vector<8xf32>
      %233 = vector.multi_reduction <add>, %232, %cst_119 [1] : vector<8x32xf32> to vector<8xf32>
      %234 = vector.shape_cast %233 : vector<8xf32> to vector<8x1xf32>
      %cst_120 = arith.constant 3.200000e+01 : f32
      %235 = vector.broadcast %cst_120 : f32 to vector<8x1xf32>
      %236 = arith.divf %234, %235 : vector<8x1xf32>
      %237 = vector.broadcast %229 : vector<8x1xf32> to vector<8x32xf32>
      %238 = arith.subf %221, %237 : vector<8x32xf32>
      %cst_121 = arith.constant 9.99999974E-6 : f32
      %239 = vector.broadcast %cst_121 : f32 to vector<8x1xf32>
      %240 = arith.addf %236, %239 : vector<8x1xf32>
      %241 = math.rsqrt %240 : vector<8x1xf32>
      %242 = vector.broadcast %241 : vector<8x1xf32> to vector<8x32xf32>
      %243 = arith.mulf %238, %242 : vector<8x32xf32>
      %244 = vector.broadcast %223 : vector<1x32xf32> to vector<8x32xf32>
      %245 = arith.mulf %243, %244 : vector<8x32xf32>
      %246 = vector.broadcast %225 : vector<1x32xf32> to vector<8x32xf32>
      %247 = arith.addf %245, %246 : vector<8x32xf32>
      %248 = arith.truncf %247 : vector<8x32xf32> to vector<8x32xbf16>
      %c0_122 = arith.constant 0 : index
      %c0_123 = arith.constant 0 : index
      %c0_124 = arith.constant 0 : index
      %249 = vector.load %arg10[%c0_122, %c0_123, %c0_124] : memref<2x32x64xbf16, #tpu.memory_space<vmem>>, vector<1x32x64xbf16>
      %250 = vector.shape_cast %249 : vector<1x32x64xbf16> to vector<32x64xbf16>
      %cst_125 = arith.constant dense<0.000000e+00> : vector<8x64xf32>
      %251 = tpu.matmul %248, %250, %cst_125 {dimension_numbers = #tpu.dot_dimension_numbers<[1], [0], [0], [1], [0, 0, 1, 1], [], []>} : vector<8x32xbf16>, vector<32x64xbf16>, vector<8x64xf32> -> vector<8x64xf32>
      %c0_126 = arith.constant 0 : index
      %c0_127 = arith.constant 0 : index
      %c0_128 = arith.constant 0 : index
      %252 = vector.load %arg11[%c0_126, %c0_127, %c0_128] : memref<2x1x64xf32, #tpu.memory_space<vmem>>, vector<1x1x64xf32>
      %253 = vector.shape_cast %252 : vector<1x1x64xf32> to vector<1x64xf32>
      %254 = vector.broadcast %253 : vector<1x64xf32> to vector<8x64xf32>
      %255 = arith.addf %251, %254 : vector<8x64xf32>
      %256 = vector.extract_strided_slice %255 {offsets = [0, 0], sizes = [8, 32], strides = [1, 1]} : vector<8x64xf32> to vector<8x32xf32>
      %257 = arith.truncf %256 : vector<8x32xf32> to vector<8x32xbf16>
      %258 = tpu.transpose %257, [1, 0] : vector<8x32xbf16> -> vector<32x8xbf16>
      %259 = vector.shape_cast %258 : vector<32x8xbf16> to vector<4x8x8xbf16>
      %260 = tpu.transpose %259, [0, 2, 1] : vector<4x8x8xbf16> -> vector<4x8x8xbf16>
      %c0_129 = arith.constant 0 : index
      %c0_130 = arith.constant 0 : index
      %c0_131 = arith.constant 0 : index
      %261 = vector.load %arg21[%c0_129, %c0_130, %c0_131] : memref<4x8x8xbf16, #tpu.memory_space<vmem>>, vector<4x8x8xbf16>
      tpu.vector_store %arg21[%c0_129, %c0_130, %c0_131], %260 {strides = array<i32>} : memref<4x8x8xbf16, #tpu.memory_space<vmem>>, vector<4x8x8xbf16>,
      %262 = vector.extract_strided_slice %255 {offsets = [0, 32], sizes = [8, 32], strides = [1, 1]} : vector<8x64xf32> to vector<8x32xf32>
      %263 = arith.truncf %262 : vector<8x32xf32> to vector<8x32xbf16>
      %264 = tpu.transpose %263, [1, 0] : vector<8x32xbf16> -> vector<32x8xbf16>
      %265 = vector.shape_cast %264 : vector<32x8xbf16> to vector<4x8x8xbf16>
      %266 = tpu.transpose %265, [0, 2, 1] : vector<4x8x8xbf16> -> vector<4x8x8xbf16>
      %c0_132 = arith.constant 0 : index
      %c0_133 = arith.constant 0 : index
      %c0_134 = arith.constant 0 : index
      %267 = vector.load %arg22[%c0_132, %c0_133, %c0_134] : memref<4x8x8xbf16, #tpu.memory_space<vmem>>, vector<4x8x8xbf16>
      tpu.vector_store %arg22[%c0_132, %c0_133, %c0_134], %266 {strides = array<i32>} : memref<4x8x8xbf16, #tpu.memory_space<vmem>>, vector<4x8x8xbf16>,
      %c0_135 = arith.constant 0 : index
      %c0_136 = arith.constant 0 : index
      %c0_137 = arith.constant 0 : index
      %268 = vector.load %arg3[%c0_135, %c0_136, %c0_137] : memref<1x8x32xbf16, #tpu.memory_space<vmem>>, vector<1x8x32xbf16>
      %269 = vector.shape_cast %268 : vector<1x8x32xbf16> to vector<8x32xbf16>
      %c1_138 = arith.constant 1 : index
      %c0_139 = arith.constant 0 : index
      %c0_140 = arith.constant 0 : index
      %270 = vector.load %arg10[%c1_138, %c0_139, %c0_140] : memref<2x32x64xbf16, #tpu.memory_space<vmem>>, vector<1x32x64xbf16>
      %271 = vector.shape_cast %270 : vector<1x32x64xbf16> to vector<32x64xbf16>
      %cst_141 = arith.constant dense<0.000000e+00> : vector<8x64xf32>
      %272 = tpu.matmul %269, %271, %cst_141 {dimension_numbers = #tpu.dot_dimension_numbers<[1], [0], [0], [1], [0, 0, 1, 1], [], []>} : vector<8x32xbf16>, vector<32x64xbf16>, vector<8x64xf32> -> vector<8x64xf32>
      %c1_142 = arith.constant 1 : index
      %c0_143 = arith.constant 0 : index
      %c0_144 = arith.constant 0 : index
      %273 = vector.load %arg11[%c1_142, %c0_143, %c0_144] : memref<2x1x64xf32, #tpu.memory_space<vmem>>, vector<1x1x64xf32>
      %274 = vector.shape_cast %273 : vector<1x1x64xf32> to vector<1x64xf32>
      %275 = vector.broadcast %274 : vector<1x64xf32> to vector<8x64xf32>
      %276 = arith.addf %272, %275 : vector<8x64xf32>
      %277 = vector.extract_strided_slice %276 {offsets = [0, 0], sizes = [8, 32], strides = [1, 1]} : vector<8x64xf32> to vector<8x32xf32>
      %278 = arith.truncf %277 : vector<8x32xf32> to vector<8x32xbf16>
      %279 = tpu.transpose %278, [1, 0] : vector<8x32xbf16> -> vector<32x8xbf16>
      %280 = vector.shape_cast %279 : vector<32x8xbf16> to vector<4x8x8xbf16>
      %281 = tpu.transpose %280, [0, 2, 1] : vector<4x8x8xbf16> -> vector<4x8x8xbf16>
      %c0_145 = arith.constant 0 : index
      %c0_146 = arith.constant 0 : index
      %c0_147 = arith.constant 0 : index
      %282 = vector.load %arg23[%c0_145, %c0_146, %c0_147] : memref<4x8x8xbf16, #tpu.memory_space<vmem>>, vector<4x8x8xbf16>
      tpu.vector_store %arg23[%c0_145, %c0_146, %c0_147], %281 {strides = array<i32>} : memref<4x8x8xbf16, #tpu.memory_space<vmem>>, vector<4x8x8xbf16>,
      %283 = vector.extract_strided_slice %276 {offsets = [0, 32], sizes = [8, 32], strides = [1, 1]} : vector<8x64xf32> to vector<8x32xf32>
      %284 = arith.truncf %283 : vector<8x32xf32> to vector<8x32xbf16>
      %285 = tpu.transpose %284, [1, 0] : vector<8x32xbf16> -> vector<32x8xbf16>
      %286 = vector.shape_cast %285 : vector<32x8xbf16> to vector<4x8x8xbf16>
      %287 = tpu.transpose %286, [0, 2, 1] : vector<4x8x8xbf16> -> vector<4x8x8xbf16>
      %c0_148 = arith.constant 0 : index
      %c0_149 = arith.constant 0 : index
      %c0_150 = arith.constant 0 : index
      %288 = vector.load %arg24[%c0_148, %c0_149, %c0_150] : memref<4x8x8xbf16, #tpu.memory_space<vmem>>, vector<4x8x8xbf16>
      tpu.vector_store %arg24[%c0_148, %c0_149, %c0_150], %287 {strides = array<i32>} : memref<4x8x8xbf16, #tpu.memory_space<vmem>>, vector<4x8x8xbf16>,
    } else {
    }
    %c8_i32 = arith.constant 8 : i32
    %3 = arith.muli %arg1, %c8_i32 : i32
    %4 = tpu.assume_multiple %3, 8 : i32
    %c0 = arith.constant 0 : index
    %5 = arith.index_cast %4 : i32 to index
    %c0_1 = arith.constant 0 : index
    %6 = vector.load %arg2[%c0, %5, %c0_1] : memref<1x8x32xf32, #tpu.memory_space<vmem>>, vector<1x8x32xf32>
    %7 = vector.shape_cast %6 : vector<1x8x32xf32> to vector<8x32xf32>
    %c0_2 = arith.constant 0 : index
    %c0_3 = arith.constant 0 : index
    %c0_4 = arith.constant 0 : index
    %8 = vector.load %arg4[%c0_2, %c0_3, %c0_4] : memref<1x8x8xbf16, #tpu.memory_space<vmem>>, vector<1x8x8xbf16>
    %9 = vector.shape_cast %8 : vector<1x8x8xbf16> to vector<8x8xbf16>
    %10 = arith.extf %9 : vector<8x8xbf16> to vector<8x8xf32>
    %cst = arith.constant 1.000000e+00 : f32
    %11 = vector.broadcast %cst : f32 to vector<8x8xf32>
    %12 = arith.subf %10, %11 : vector<8x8xf32>
    %cst_5 = arith.constant 1.000000e+09 : f32
    %13 = vector.broadcast %cst_5 : f32 to vector<8x8xf32>
    %14 = arith.mulf %12, %13 : vector<8x8xf32>
    %c0_6 = arith.constant 0 : index
    %c0_7 = arith.constant 0 : index
    %c0_8 = arith.constant 0 : index
    %15 = vector.load %arg5[%c0_6, %c0_7, %c0_8] : memref<1x8x8xbf16, #tpu.memory_space<vmem>>, vector<1x8x8xbf16>
    %16 = vector.shape_cast %15 : vector<1x8x8xbf16> to vector<8x8xbf16>
    %17 = arith.extf %16 : vector<8x8xbf16> to vector<8x8xf32>
    %cst_9 = arith.constant 1.000000e+00 : f32
    %18 = vector.broadcast %cst_9 : f32 to vector<8x8xf32>
    %19 = arith.subf %17, %18 : vector<8x8xf32>
    %cst_10 = arith.constant 1.000000e+09 : f32
    %20 = vector.broadcast %cst_10 : f32 to vector<8x8xf32>
    %21 = arith.mulf %19, %20 : vector<8x8xf32>
    %c0_11 = arith.constant 0 : index
    %c0_12 = arith.constant 0 : index
    %c0_13 = arith.constant 0 : index
    %22 = vector.load %arg6[%c0_11, %c0_12, %c0_13] : memref<3x1x32xf32, #tpu.memory_space<vmem>>, vector<1x1x32xf32>
    %23 = vector.shape_cast %22 : vector<1x1x32xf32> to vector<1x32xf32>
    %c0_14 = arith.constant 0 : index
    %c0_15 = arith.constant 0 : index
    %c0_16 = arith.constant 0 : index
    %24 = vector.load %arg7[%c0_14, %c0_15, %c0_16] : memref<3x1x32xf32, #tpu.memory_space<vmem>>, vector<1x1x32xf32>
    %25 = vector.shape_cast %24 : vector<1x1x32xf32> to vector<1x32xf32>
    %cst_17 = arith.constant dense<0.000000e+00> : vector<8xf32>
    %26 = vector.multi_reduction <add>, %7, %cst_17 [1] : vector<8x32xf32> to vector<8xf32>
    %27 = vector.shape_cast %26 : vector<8xf32> to vector<8x1xf32>
    %cst_18 = arith.constant 3.200000e+01 : f32
    %28 = vector.broadcast %cst_18 : f32 to vector<8x1xf32>
    %29 = arith.divf %27, %28 : vector<8x1xf32>
    %30 = vector.broadcast %29 : vector<8x1xf32> to vector<8x32xf32>
    %31 = arith.subf %7, %30 : vector<8x32xf32>
    %32 = arith.mulf %31, %31 : vector<8x32xf32>
    %cst_19 = arith.constant dense<0.000000e+00> : vector<8xf32>
    %33 = vector.multi_reduction <add>, %32, %cst_19 [1] : vector<8x32xf32> to vector<8xf32>
    %34 = vector.shape_cast %33 : vector<8xf32> to vector<8x1xf32>
    %cst_20 = arith.constant 3.200000e+01 : f32
    %35 = vector.broadcast %cst_20 : f32 to vector<8x1xf32>
    %36 = arith.divf %34, %35 : vector<8x1xf32>
    %37 = vector.broadcast %29 : vector<8x1xf32> to vector<8x32xf32>
    %38 = arith.subf %7, %37 : vector<8x32xf32>
    %cst_21 = arith.constant 9.99999974E-6 : f32
    %39 = vector.broadcast %cst_21 : f32 to vector<8x1xf32>
    %40 = arith.addf %36, %39 : vector<8x1xf32>
    %41 = math.rsqrt %40 : vector<8x1xf32>
    %42 = vector.broadcast %41 : vector<8x1xf32> to vector<8x32xf32>
    %43 = arith.mulf %38, %42 : vector<8x32xf32>
    %44 = vector.broadcast %23 : vector<1x32xf32> to vector<8x32xf32>
    %45 = arith.mulf %43, %44 : vector<8x32xf32>
    %46 = vector.broadcast %25 : vector<1x32xf32> to vector<8x32xf32>
    %47 = arith.addf %45, %46 : vector<8x32xf32>
    %48 = arith.truncf %47 : vector<8x32xf32> to vector<8x32xbf16>
    %c0_22 = arith.constant 0 : index
    %c0_23 = arith.constant 0 : index
    %c0_24 = arith.constant 0 : index
    %49 = vector.load %arg8[%c0_22, %c0_23, %c0_24] : memref<2x32x32xbf16, #tpu.memory_space<vmem>>, vector<1x32x32xbf16>
    %50 = vector.shape_cast %49 : vector<1x32x32xbf16> to vector<32x32xbf16>
    %cst_25 = arith.constant dense<0.000000e+00> : vector<8x32xf32>
    %51 = tpu.matmul %48, %50, %cst_25 {dimension_numbers = #tpu.dot_dimension_numbers<[1], [0], [0], [1], [0, 0, 1, 1], [], []>} : vector<8x32xbf16>, vector<32x32xbf16>, vector<8x32xf32> -> vector<8x32xf32>
    %c0_26 = arith.constant 0 : index
    %c0_27 = arith.constant 0 : index
    %c0_28 = arith.constant 0 : index
    %52 = vector.load %arg9[%c0_26, %c0_27, %c0_28] : memref<2x1x32xf32, #tpu.memory_space<vmem>>, vector<1x1x32xf32>
    %53 = vector.shape_cast %52 : vector<1x1x32xf32> to vector<1x32xf32>
    %54 = vector.broadcast %53 : vector<1x32xf32> to vector<8x32xf32>
    %55 = arith.addf %51, %54 : vector<8x32xf32>
    %cst_29 = arith.constant 0.353553385 : f32
    %56 = vector.broadcast %cst_29 : f32 to vector<8x32xf32>
    %57 = arith.mulf %55, %56 : vector<8x32xf32>
    %58 = arith.truncf %57 : vector<8x32xf32> to vector<8x32xbf16>
    %59 = tpu.transpose %58, [1, 0] : vector<8x32xbf16> -> vector<32x8xbf16>
    %60 = vector.shape_cast %59 : vector<32x8xbf16> to vector<4x8x8xbf16>
    %61 = tpu.transpose %60, [0, 2, 1] : vector<4x8x8xbf16> -> vector<4x8x8xbf16>
    %c0_30 = arith.constant 0 : index
    %c0_31 = arith.constant 0 : index
    %c0_32 = arith.constant 0 : index
    %62 = vector.load %arg21[%c0_30, %c0_31, %c0_32] : memref<4x8x8xbf16, #tpu.memory_space<vmem>>, vector<4x8x8xbf16>
    %c0_33 = arith.constant 0 : index
    %c0_34 = arith.constant 0 : index
    %c0_35 = arith.constant 0 : index
    %63 = vector.load %arg22[%c0_33, %c0_34, %c0_35] : memref<4x8x8xbf16, #tpu.memory_space<vmem>>, vector<4x8x8xbf16>
    "tpu.trace_start"() <{level = 10 : i32, message = "hqd,hkd->hqk"}> : () -> ()
    %cst_36 = arith.constant dense<0.000000e+00> : vector<4x8x8xf32>
    %64 = tpu.matmul %61, %62, %cst_36 {dimension_numbers = #tpu.dot_dimension_numbers<[2], [2], [1], [1], [0, 0, 0, 1, 1, 1], [0], [0]>} : vector<4x8x8xbf16>, vector<4x8x8xbf16>, vector<4x8x8xf32> -> vector<4x8x8xf32>
    "tpu.trace_stop"() : () -> ()
    %65 = vector.shape_cast %14 : vector<8x8xf32> to vector<1x8x8xf32>
    %66 = vector.broadcast %65 : vector<1x8x8xf32> to vector<4x8x8xf32>
    %67 = arith.addf %64, %66 : vector<4x8x8xf32>
    %cst_37 = arith.constant dense<0xFF800000> : vector<4x8xf32>
    %68 = vector.multi_reduction <maximumf>, %67, %cst_37 [2] : vector<4x8x8xf32> to vector<4x8xf32>
    %cst_38 = arith.constant 0xFF800000 : f32
    %69 = vector.broadcast %cst_38 : f32 to vector<4x8xf32>
    %70 = arith.maximumf %69, %68 : vector<4x8xf32>
    %71 = vector.shape_cast %70 : vector<4x8xf32> to vector<4x8x1xf32>
    %72 = vector.broadcast %71 : vector<4x8x1xf32> to vector<4x8x8xf32>
    %73 = arith.subf %67, %72 : vector<4x8x8xf32>
    %74 = math.exp %73 : vector<4x8x8xf32>
    %cst_39 = arith.constant dense<0.000000e+00> : vector<4x8xf32>
    %75 = vector.multi_reduction <add>, %74, %cst_39 [2] : vector<4x8x8xf32> to vector<4x8xf32>
    %76 = vector.shape_cast %75 : vector<4x8xf32> to vector<4x8x1xf32>
    %77 = vector.broadcast %76 : vector<4x8x1xf32> to vector<4x8x8xf32>
    %78 = arith.divf %74, %77 : vector<4x8x8xf32>
    %79 = arith.truncf %78 : vector<4x8x8xf32> to vector<4x8x8xbf16>
    "tpu.trace_start"() <{level = 10 : i32, message = "hqk,hkd->hqd"}> : () -> ()
    %cst_40 = arith.constant dense<0.000000e+00> : vector<4x8x8xf32>
    %80 = tpu.matmul %79, %63, %cst_40 {dimension_numbers = #tpu.dot_dimension_numbers<[2], [1], [1], [2], [0, 0, 0, 1, 1, 2], [0], [0]>} : vector<4x8x8xbf16>, vector<4x8x8xbf16>, vector<4x8x8xf32> -> vector<4x8x8xf32>
    "tpu.trace_stop"() : () -> ()
    %81 = arith.truncf %80 : vector<4x8x8xf32> to vector<4x8x8xbf16>
    %82 = vector.extract_strided_slice %81 {offsets = [0, 0, 0], sizes = [1, 8, 8], strides = [1, 1, 1]} : vector<4x8x8xbf16> to vector<1x8x8xbf16>
    %83 = vector.shape_cast %82 : vector<1x8x8xbf16> to vector<8x8xbf16>
    %84 = vector.extract_strided_slice %81 {offsets = [1, 0, 0], sizes = [1, 8, 8], strides = [1, 1, 1]} : vector<4x8x8xbf16> to vector<1x8x8xbf16>
    %85 = vector.shape_cast %84 : vector<1x8x8xbf16> to vector<8x8xbf16>
    %86 = vector.extract_strided_slice %81 {offsets = [2, 0, 0], sizes = [1, 8, 8], strides = [1, 1, 1]} : vector<4x8x8xbf16> to vector<1x8x8xbf16>
    %87 = vector.shape_cast %86 : vector<1x8x8xbf16> to vector<8x8xbf16>
    %88 = vector.extract_strided_slice %81 {offsets = [3, 0, 0], sizes = [1, 8, 8], strides = [1, 1, 1]} : vector<4x8x8xbf16> to vector<1x8x8xbf16>
    %89 = vector.shape_cast %88 : vector<1x8x8xbf16> to vector<8x8xbf16>
    %90 = tpu.concatenate %83, %85, %87, %89 in 1 : vector<8x8xbf16>, vector<8x8xbf16>, vector<8x8xbf16>, vector<8x8xbf16> -> vector<8x32xbf16>
    %c0_41 = arith.constant 0 : index
    %c0_42 = arith.constant 0 : index
    %c0_43 = arith.constant 0 : index
    %91 = vector.load %arg12[%c0_41, %c0_42, %c0_43] : memref<2x32x32xbf16, #tpu.memory_space<vmem>>, vector<1x32x32xbf16>
    %92 = vector.shape_cast %91 : vector<1x32x32xbf16> to vector<32x32xbf16>
    %cst_44 = arith.constant dense<0.000000e+00> : vector<8x32xf32>
    %93 = tpu.matmul %90, %92, %cst_44 {dimension_numbers = #tpu.dot_dimension_numbers<[1], [0], [0], [1], [0, 0, 1, 1], [], []>} : vector<8x32xbf16>, vector<32x32xbf16>, vector<8x32xf32> -> vector<8x32xf32>
    %c0_45 = arith.constant 0 : index
    %c0_46 = arith.constant 0 : index
    %c0_47 = arith.constant 0 : index
    %94 = vector.load %arg13[%c0_45, %c0_46, %c0_47] : memref<2x1x32xf32, #tpu.memory_space<vmem>>, vector<1x1x32xf32>
    %95 = vector.shape_cast %94 : vector<1x1x32xf32> to vector<1x32xf32>
    %96 = vector.broadcast %95 : vector<1x32xf32> to vector<8x32xf32>
    %97 = arith.addf %93, %96 : vector<8x32xf32>
    %98 = arith.addf %7, %97 : vector<8x32xf32>
    %c1 = arith.constant 1 : index
    %c0_48 = arith.constant 0 : index
    %c0_49 = arith.constant 0 : index
    %99 = vector.load %arg6[%c1, %c0_48, %c0_49] : memref<3x1x32xf32, #tpu.memory_space<vmem>>, vector<1x1x32xf32>
    %100 = vector.shape_cast %99 : vector<1x1x32xf32> to vector<1x32xf32>
    %c1_50 = arith.constant 1 : index
    %c0_51 = arith.constant 0 : index
    %c0_52 = arith.constant 0 : index
    %101 = vector.load %arg7[%c1_50, %c0_51, %c0_52] : memref<3x1x32xf32, #tpu.memory_space<vmem>>, vector<1x1x32xf32>
    %102 = vector.shape_cast %101 : vector<1x1x32xf32> to vector<1x32xf32>
    %cst_53 = arith.constant dense<0.000000e+00> : vector<8xf32>
    %103 = vector.multi_reduction <add>, %98, %cst_53 [1] : vector<8x32xf32> to vector<8xf32>
    %104 = vector.shape_cast %103 : vector<8xf32> to vector<8x1xf32>
    %cst_54 = arith.constant 3.200000e+01 : f32
    %105 = vector.broadcast %cst_54 : f32 to vector<8x1xf32>
    %106 = arith.divf %104, %105 : vector<8x1xf32>
    %107 = vector.broadcast %106 : vector<8x1xf32> to vector<8x32xf32>
    %108 = arith.subf %98, %107 : vector<8x32xf32>
    %109 = arith.mulf %108, %108 : vector<8x32xf32>
    %cst_55 = arith.constant dense<0.000000e+00> : vector<8xf32>
    %110 = vector.multi_reduction <add>, %109, %cst_55 [1] : vector<8x32xf32> to vector<8xf32>
    %111 = vector.shape_cast %110 : vector<8xf32> to vector<8x1xf32>
    %cst_56 = arith.constant 3.200000e+01 : f32
    %112 = vector.broadcast %cst_56 : f32 to vector<8x1xf32>
    %113 = arith.divf %111, %112 : vector<8x1xf32>
    %114 = vector.broadcast %106 : vector<8x1xf32> to vector<8x32xf32>
    %115 = arith.subf %98, %114 : vector<8x32xf32>
    %cst_57 = arith.constant 9.99999974E-6 : f32
    %116 = vector.broadcast %cst_57 : f32 to vector<8x1xf32>
    %117 = arith.addf %113, %116 : vector<8x1xf32>
    %118 = math.rsqrt %117 : vector<8x1xf32>
    %119 = vector.broadcast %118 : vector<8x1xf32> to vector<8x32xf32>
    %120 = arith.mulf %115, %119 : vector<8x32xf32>
    %121 = vector.broadcast %100 : vector<1x32xf32> to vector<8x32xf32>
    %122 = arith.mulf %120, %121 : vector<8x32xf32>
    %123 = vector.broadcast %102 : vector<1x32xf32> to vector<8x32xf32>
    %124 = arith.addf %122, %123 : vector<8x32xf32>
    %125 = arith.truncf %124 : vector<8x32xf32> to vector<8x32xbf16>
    %c1_58 = arith.constant 1 : index
    %c0_59 = arith.constant 0 : index
    %c0_60 = arith.constant 0 : index
    %126 = vector.load %arg8[%c1_58, %c0_59, %c0_60] : memref<2x32x32xbf16, #tpu.memory_space<vmem>>, vector<1x32x32xbf16>
    %127 = vector.shape_cast %126 : vector<1x32x32xbf16> to vector<32x32xbf16>
    %cst_61 = arith.constant dense<0.000000e+00> : vector<8x32xf32>
    %128 = tpu.matmul %125, %127, %cst_61 {dimension_numbers = #tpu.dot_dimension_numbers<[1], [0], [0], [1], [0, 0, 1, 1], [], []>} : vector<8x32xbf16>, vector<32x32xbf16>, vector<8x32xf32> -> vector<8x32xf32>
    %c1_62 = arith.constant 1 : index
    %c0_63 = arith.constant 0 : index
    %c0_64 = arith.constant 0 : index
    %129 = vector.load %arg9[%c1_62, %c0_63, %c0_64] : memref<2x1x32xf32, #tpu.memory_space<vmem>>, vector<1x1x32xf32>
    %130 = vector.shape_cast %129 : vector<1x1x32xf32> to vector<1x32xf32>
    %131 = vector.broadcast %130 : vector<1x32xf32> to vector<8x32xf32>
    %132 = arith.addf %128, %131 : vector<8x32xf32>
    %cst_65 = arith.constant 0.353553385 : f32
    %133 = vector.broadcast %cst_65 : f32 to vector<8x32xf32>
    %134 = arith.mulf %132, %133 : vector<8x32xf32>
    %135 = arith.truncf %134 : vector<8x32xf32> to vector<8x32xbf16>
    %136 = tpu.transpose %135, [1, 0] : vector<8x32xbf16> -> vector<32x8xbf16>
    %137 = vector.shape_cast %136 : vector<32x8xbf16> to vector<4x8x8xbf16>
    %138 = tpu.transpose %137, [0, 2, 1] : vector<4x8x8xbf16> -> vector<4x8x8xbf16>
    %c0_66 = arith.constant 0 : index
    %c0_67 = arith.constant 0 : index
    %c0_68 = arith.constant 0 : index
    %139 = vector.load %arg23[%c0_66, %c0_67, %c0_68] : memref<4x8x8xbf16, #tpu.memory_space<vmem>>, vector<4x8x8xbf16>
    %c0_69 = arith.constant 0 : index
    %c0_70 = arith.constant 0 : index
    %c0_71 = arith.constant 0 : index
    %140 = vector.load %arg24[%c0_69, %c0_70, %c0_71] : memref<4x8x8xbf16, #tpu.memory_space<vmem>>, vector<4x8x8xbf16>
    "tpu.trace_start"() <{level = 10 : i32, message = "hqd,hkd->hqk"}> : () -> ()
    %cst_72 = arith.constant dense<0.000000e+00> : vector<4x8x8xf32>
    %141 = tpu.matmul %138, %139, %cst_72 {dimension_numbers = #tpu.dot_dimension_numbers<[2], [2], [1], [1], [0, 0, 0, 1, 1, 1], [0], [0]>} : vector<4x8x8xbf16>, vector<4x8x8xbf16>, vector<4x8x8xf32> -> vector<4x8x8xf32>
    "tpu.trace_stop"() : () -> ()
    %142 = vector.shape_cast %21 : vector<8x8xf32> to vector<1x8x8xf32>
    %143 = vector.broadcast %142 : vector<1x8x8xf32> to vector<4x8x8xf32>
    %144 = arith.addf %141, %143 : vector<4x8x8xf32>
    %cst_73 = arith.constant dense<0xFF800000> : vector<4x8xf32>
    %145 = vector.multi_reduction <maximumf>, %144, %cst_73 [2] : vector<4x8x8xf32> to vector<4x8xf32>
    %cst_74 = arith.constant 0xFF800000 : f32
    %146 = vector.broadcast %cst_74 : f32 to vector<4x8xf32>
    %147 = arith.maximumf %146, %145 : vector<4x8xf32>
    %148 = vector.shape_cast %147 : vector<4x8xf32> to vector<4x8x1xf32>
    %149 = vector.broadcast %148 : vector<4x8x1xf32> to vector<4x8x8xf32>
    %150 = arith.subf %144, %149 : vector<4x8x8xf32>
    %151 = math.exp %150 : vector<4x8x8xf32>
    %cst_75 = arith.constant dense<0.000000e+00> : vector<4x8xf32>
    %152 = vector.multi_reduction <add>, %151, %cst_75 [2] : vector<4x8x8xf32> to vector<4x8xf32>
    %153 = vector.shape_cast %152 : vector<4x8xf32> to vector<4x8x1xf32>
    %154 = vector.broadcast %153 : vector<4x8x1xf32> to vector<4x8x8xf32>
    %155 = arith.divf %151, %154 : vector<4x8x8xf32>
    %156 = arith.truncf %155 : vector<4x8x8xf32> to vector<4x8x8xbf16>
    "tpu.trace_start"() <{level = 10 : i32, message = "hqk,hkd->hqd"}> : () -> ()
    %cst_76 = arith.constant dense<0.000000e+00> : vector<4x8x8xf32>
    %157 = tpu.matmul %156, %140, %cst_76 {dimension_numbers = #tpu.dot_dimension_numbers<[2], [1], [1], [2], [0, 0, 0, 1, 1, 2], [0], [0]>} : vector<4x8x8xbf16>, vector<4x8x8xbf16>, vector<4x8x8xf32> -> vector<4x8x8xf32>
    "tpu.trace_stop"() : () -> ()
    %158 = arith.truncf %157 : vector<4x8x8xf32> to vector<4x8x8xbf16>
    %159 = vector.extract_strided_slice %158 {offsets = [0, 0, 0], sizes = [1, 8, 8], strides = [1, 1, 1]} : vector<4x8x8xbf16> to vector<1x8x8xbf16>
    %160 = vector.shape_cast %159 : vector<1x8x8xbf16> to vector<8x8xbf16>
    %161 = vector.extract_strided_slice %158 {offsets = [1, 0, 0], sizes = [1, 8, 8], strides = [1, 1, 1]} : vector<4x8x8xbf16> to vector<1x8x8xbf16>
    %162 = vector.shape_cast %161 : vector<1x8x8xbf16> to vector<8x8xbf16>
    %163 = vector.extract_strided_slice %158 {offsets = [2, 0, 0], sizes = [1, 8, 8], strides = [1, 1, 1]} : vector<4x8x8xbf16> to vector<1x8x8xbf16>
    %164 = vector.shape_cast %163 : vector<1x8x8xbf16> to vector<8x8xbf16>
    %165 = vector.extract_strided_slice %158 {offsets = [3, 0, 0], sizes = [1, 8, 8], strides = [1, 1, 1]} : vector<4x8x8xbf16> to vector<1x8x8xbf16>
    %166 = vector.shape_cast %165 : vector<1x8x8xbf16> to vector<8x8xbf16>
    %167 = tpu.concatenate %160, %162, %164, %166 in 1 : vector<8x8xbf16>, vector<8x8xbf16>, vector<8x8xbf16>, vector<8x8xbf16> -> vector<8x32xbf16>
    %c1_77 = arith.constant 1 : index
    %c0_78 = arith.constant 0 : index
    %c0_79 = arith.constant 0 : index
    %168 = vector.load %arg12[%c1_77, %c0_78, %c0_79] : memref<2x32x32xbf16, #tpu.memory_space<vmem>>, vector<1x32x32xbf16>
    %169 = vector.shape_cast %168 : vector<1x32x32xbf16> to vector<32x32xbf16>
    %cst_80 = arith.constant dense<0.000000e+00> : vector<8x32xf32>
    %170 = tpu.matmul %167, %169, %cst_80 {dimension_numbers = #tpu.dot_dimension_numbers<[1], [0], [0], [1], [0, 0, 1, 1], [], []>} : vector<8x32xbf16>, vector<32x32xbf16>, vector<8x32xf32> -> vector<8x32xf32>
    %c1_81 = arith.constant 1 : index
    %c0_82 = arith.constant 0 : index
    %c0_83 = arith.constant 0 : index
    %171 = vector.load %arg13[%c1_81, %c0_82, %c0_83] : memref<2x1x32xf32, #tpu.memory_space<vmem>>, vector<1x1x32xf32>
    %172 = vector.shape_cast %171 : vector<1x1x32xf32> to vector<1x32xf32>
    %173 = vector.broadcast %172 : vector<1x32xf32> to vector<8x32xf32>
    %174 = arith.addf %170, %173 : vector<8x32xf32>
    %175 = arith.addf %98, %174 : vector<8x32xf32>
    %c2 = arith.constant 2 : index
    %c0_84 = arith.constant 0 : index
    %c0_85 = arith.constant 0 : index
    %176 = vector.load %arg6[%c2, %c0_84, %c0_85] : memref<3x1x32xf32, #tpu.memory_space<vmem>>, vector<1x1x32xf32>
    %177 = vector.shape_cast %176 : vector<1x1x32xf32> to vector<1x32xf32>
    %c2_86 = arith.constant 2 : index
    %c0_87 = arith.constant 0 : index
    %c0_88 = arith.constant 0 : index
    %178 = vector.load %arg7[%c2_86, %c0_87, %c0_88] : memref<3x1x32xf32, #tpu.memory_space<vmem>>, vector<1x1x32xf32>
    %179 = vector.shape_cast %178 : vector<1x1x32xf32> to vector<1x32xf32>
    %cst_89 = arith.constant dense<0.000000e+00> : vector<8xf32>
    %180 = vector.multi_reduction <add>, %175, %cst_89 [1] : vector<8x32xf32> to vector<8xf32>
    %181 = vector.shape_cast %180 : vector<8xf32> to vector<8x1xf32>
    %cst_90 = arith.constant 3.200000e+01 : f32
    %182 = vector.broadcast %cst_90 : f32 to vector<8x1xf32>
    %183 = arith.divf %181, %182 : vector<8x1xf32>
    %184 = vector.broadcast %183 : vector<8x1xf32> to vector<8x32xf32>
    %185 = arith.subf %175, %184 : vector<8x32xf32>
    %186 = arith.mulf %185, %185 : vector<8x32xf32>
    %cst_91 = arith.constant dense<0.000000e+00> : vector<8xf32>
    %187 = vector.multi_reduction <add>, %186, %cst_91 [1] : vector<8x32xf32> to vector<8xf32>
    %188 = vector.shape_cast %187 : vector<8xf32> to vector<8x1xf32>
    %cst_92 = arith.constant 3.200000e+01 : f32
    %189 = vector.broadcast %cst_92 : f32 to vector<8x1xf32>
    %190 = arith.divf %188, %189 : vector<8x1xf32>
    %191 = vector.broadcast %183 : vector<8x1xf32> to vector<8x32xf32>
    %192 = arith.subf %175, %191 : vector<8x32xf32>
    %cst_93 = arith.constant 9.99999974E-6 : f32
    %193 = vector.broadcast %cst_93 : f32 to vector<8x1xf32>
    %194 = arith.addf %190, %193 : vector<8x1xf32>
    %195 = math.rsqrt %194 : vector<8x1xf32>
    %196 = vector.broadcast %195 : vector<8x1xf32> to vector<8x32xf32>
    %197 = arith.mulf %192, %196 : vector<8x32xf32>
    %198 = vector.broadcast %177 : vector<1x32xf32> to vector<8x32xf32>
    %199 = arith.mulf %197, %198 : vector<8x32xf32>
    %200 = vector.broadcast %179 : vector<1x32xf32> to vector<8x32xf32>
    %201 = arith.addf %199, %200 : vector<8x32xf32>
    %202 = arith.truncf %201 : vector<8x32xf32> to vector<8x32xbf16>
    %c0_94 = arith.constant 0 : index
    %c0_95 = arith.constant 0 : index
    %203 = vector.load %arg14[%c0_94, %c0_95] : memref<32x64xbf16, #tpu.memory_space<vmem>>, vector<32x64xbf16>
    %cst_96 = arith.constant dense<0.000000e+00> : vector<8x64xf32>
    %204 = tpu.matmul %202, %203, %cst_96 {dimension_numbers = #tpu.dot_dimension_numbers<[1], [0], [0], [1], [0, 0, 1, 1], [], []>} : vector<8x32xbf16>, vector<32x64xbf16>, vector<8x64xf32> -> vector<8x64xf32>
    %c0_97 = arith.constant 0 : index
    %c0_98 = arith.constant 0 : index
    %205 = vector.load %arg15[%c0_97, %c0_98] : memref<1x64xf32, #tpu.memory_space<vmem>>, vector<1x64xf32>
    %206 = vector.broadcast %205 : vector<1x64xf32> to vector<8x64xf32>
    %207 = arith.addf %204, %206 : vector<8x64xf32>
    %cst_99 = arith.constant 0.000000e+00 : f32
    %208 = vector.broadcast %cst_99 : f32 to vector<8x64xf32>
    %209 = arith.maximumf %207, %208 : vector<8x64xf32>
    %210 = arith.truncf %209 : vector<8x64xf32> to vector<8x64xbf16>
    %c0_100 = arith.constant 0 : index
    %c0_101 = arith.constant 0 : index
    %211 = vector.load %arg16[%c0_100, %c0_101] : memref<64x32xbf16, #tpu.memory_space<vmem>>, vector<64x32xbf16>
    %cst_102 = arith.constant dense<0.000000e+00> : vector<8x32xf32>
    %212 = tpu.matmul %210, %211, %cst_102 {dimension_numbers = #tpu.dot_dimension_numbers<[1], [0], [0], [1], [0, 0, 1, 1], [], []>} : vector<8x64xbf16>, vector<64x32xbf16>, vector<8x32xf32> -> vector<8x32xf32>
    %213 = arith.addf %175, %212 : vector<8x32xf32>
    %c0_103 = arith.constant 0 : index
    %c0_104 = arith.constant 0 : index
    %214 = vector.load %arg17[%c0_103, %c0_104] : memref<1x32xf32, #tpu.memory_space<vmem>>, vector<1x32xf32>
    %215 = vector.broadcast %214 : vector<1x32xf32> to vector<8x32xf32>
    %216 = arith.addf %213, %215 : vector<8x32xf32>
    %c0_105 = arith.constant 0 : index
    %c0_106 = arith.constant 0 : index
    %c0_107 = arith.constant 0 : index
    %217 = vector.load %arg20[%c0_105, %c0_106, %c0_107] : memref<1x8x32xf32, #tpu.memory_space<vmem>>, vector<1x8x32xf32>
    %218 = vector.shape_cast %217 : vector<1x8x32xf32> to vector<8x32xf32>
    %219 = vector.shape_cast %216 : vector<8x32xf32> to vector<1x8x32xf32>
    tpu.vector_store %arg20[%c0_105, %c0_106, %c0_107], %219 {strides = array<i32>} : memref<1x8x32xf32, #tpu.memory_space<vmem>>, vector<1x8x32xf32>,
    return
  }
  func.func @transform_0(%arg0: i32, %arg1: i32) -> (i32, i32, i32) {
    %c0_i32 = arith.constant 0 : i32
    %c0_i32_0 = arith.constant 0 : i32
    %c0_i32_1 = arith.constant 0 : i32
    return %arg0, %c0_i32, %c0_i32_0 : i32, i32, i32
  }
  func.func @transform_1(%arg0: i32, %arg1: i32) -> (i32, i32, i32) {
    %c0_i32 = arith.constant 0 : i32
    %c0_i32_0 = arith.constant 0 : i32
    %c0_i32_1 = arith.constant 0 : i32
    return %arg0, %c0_i32, %c0_i32_0 : i32, i32, i32
  }
  func.func @transform_2(%arg0: i32, %arg1: i32) -> (i32, i32, i32) {
    %c0_i32 = arith.constant 0 : i32
    %c0_i32_0 = arith.constant 0 : i32
    return %arg0, %arg1, %c0_i32 : i32, i32, i32
  }
  func.func @transform_3(%arg0: i32, %arg1: i32) -> (i32, i32, i32) {
    %c0_i32 = arith.constant 0 : i32
    %c0_i32_0 = arith.constant 0 : i32
    return %arg0, %arg1, %c0_i32 : i32, i32, i32
  }
  func.func @transform_4(%arg0: i32, %arg1: i32) -> (i32, i32, i32) {
    %c0_i32 = arith.constant 0 : i32
    %c0_i32_0 = arith.constant 0 : i32
    %c0_i32_1 = arith.constant 0 : i32
    %c0_i32_2 = arith.constant 0 : i32
    return %c0_i32, %c0_i32_0, %c0_i32_1 : i32, i32, i32
  }
  func.func @transform_5(%arg0: i32, %arg1: i32) -> (i32, i32, i32) {
    %c0_i32 = arith.constant 0 : i32
    %c0_i32_0 = arith.constant 0 : i32
    %c0_i32_1 = arith.constant 0 : i32
    %c0_i32_2 = arith.constant 0 : i32
    return %c0_i32, %c0_i32_0, %c0_i32_1 : i32, i32, i32
  }
  func.func @transform_6(%arg0: i32, %arg1: i32) -> (i32, i32, i32) {
    %c0_i32 = arith.constant 0 : i32
    %c0_i32_0 = arith.constant 0 : i32
    %c0_i32_1 = arith.constant 0 : i32
    %c0_i32_2 = arith.constant 0 : i32
    return %c0_i32, %c0_i32_0, %c0_i32_1 : i32, i32, i32
  }
  func.func @transform_7(%arg0: i32, %arg1: i32) -> (i32, i32, i32) {
    %c0_i32 = arith.constant 0 : i32
    %c0_i32_0 = arith.constant 0 : i32
    %c0_i32_1 = arith.constant 0 : i32
    %c0_i32_2 = arith.constant 0 : i32
    return %c0_i32, %c0_i32_0, %c0_i32_1 : i32, i32, i32
  }
  func.func @transform_8(%arg0: i32, %arg1: i32) -> (i32, i32, i32) {
    %c0_i32 = arith.constant 0 : i32
    %c0_i32_0 = arith.constant 0 : i32
    %c0_i32_1 = arith.constant 0 : i32
    %c0_i32_2 = arith.constant 0 : i32
    return %c0_i32, %c0_i32_0, %c0_i32_1 : i32, i32, i32
  }
  func.func @transform_9(%arg0: i32, %arg1: i32) -> (i32, i32, i32) {
    %c0_i32 = arith.constant 0 : i32
    %c0_i32_0 = arith.constant 0 : i32
    %c0_i32_1 = arith.constant 0 : i32
    %c0_i32_2 = arith.constant 0 : i32
    return %c0_i32, %c0_i32_0, %c0_i32_1 : i32, i32, i32
  }
  func.func @transform_10(%arg0: i32, %arg1: i32) -> (i32, i32, i32) {
    %c0_i32 = arith.constant 0 : i32
    %c0_i32_0 = arith.constant 0 : i32
    %c0_i32_1 = arith.constant 0 : i32
    %c0_i32_2 = arith.constant 0 : i32
    return %c0_i32, %c0_i32_0, %c0_i32_1 : i32, i32, i32
  }
  func.func @transform_11(%arg0: i32, %arg1: i32) -> (i32, i32, i32) {
    %c0_i32 = arith.constant 0 : i32
    %c0_i32_0 = arith.constant 0 : i32
    %c0_i32_1 = arith.constant 0 : i32
    %c0_i32_2 = arith.constant 0 : i32
    return %c0_i32, %c0_i32_0, %c0_i32_1 : i32, i32, i32
  }
  func.func @transform_12(%arg0: i32, %arg1: i32) -> (i32, i32) {
    %c0_i32 = arith.constant 0 : i32
    %c0_i32_0 = arith.constant 0 : i32
    %c0_i32_1 = arith.constant 0 : i32
    return %c0_i32, %c0_i32_0 : i32, i32
  }
  func.func @transform_13(%arg0: i32, %arg1: i32) -> (i32, i32) {
    %c0_i32 = arith.constant 0 : i32
    %c0_i32_0 = arith.constant 0 : i32
    %c0_i32_1 = arith.constant 0 : i32
    return %c0_i32, %c0_i32_0 : i32, i32
  }
  func.func @transform_14(%arg0: i32, %arg1: i32) -> (i32, i32) {
    %c0_i32 = arith.constant 0 : i32
    %c0_i32_0 = arith.constant 0 : i32
    %c0_i32_1 = arith.constant 0 : i32
    return %c0_i32, %c0_i32_0 : i32, i32
  }
  func.func @transform_15(%arg0: i32, %arg1: i32) -> (i32, i32) {
    %c0_i32 = arith.constant 0 : i32
    %c0_i32_0 = arith.constant 0 : i32
    %c0_i32_1 = arith.constant 0 : i32
    return %c0_i32, %c0_i32_0 : i32, i32
  }
  func.func @transform_16(%arg0: i32, %arg1: i32) -> (i32, i32) {
    %c0_i32 = arith.constant 0 : i32
    %c0_i32_0 = arith.constant 0 : i32
    %c0_i32_1 = arith.constant 0 : i32
    return %c0_i32, %c0_i32_0 : i32, i32
  }
  func.func @transform_17(%arg0: i32, %arg1: i32) -> (i32, i32) {
    %c0_i32 = arith.constant 0 : i32
    %c0_i32_0 = arith.constant 0 : i32
    %c0_i32_1 = arith.constant 0 : i32
    return %c0_i32, %c0_i32_0 : i32, i32
  }
  func.func @transform_18(%arg0: i32, %arg1: i32) -> (i32, i32, i32) {
    %c0_i32 = arith.constant 0 : i32
    %c0_i32_0 = arith.constant 0 : i32
    return %arg0, %arg1, %c0_i32 : i32, i32, i32
  }
}

module attributes {stable_mosaic.version = 11 : i64} {
  func.func @_decoder_layer_kernel(%arg0: i32, %arg1: i32, %arg2: memref<1x8x32xf32, #tpu.memory_space<vmem>>, %arg3: memref<1x8x32xbf16, #tpu.memory_space<vmem>>, %arg4: memref<1x8x8xbf16, #tpu.memory_space<vmem>>, %arg5: memref<1x8x8xbf16, #tpu.memory_space<vmem>>, %arg6: memref<3x1x32xf32, #tpu.memory_space<vmem>>, %arg7: memref<3x1x32xf32, #tpu.memory_space<vmem>>, %arg8: memref<2x32x32xbf16, #tpu.memory_space<vmem>>, %arg9: memref<2x1x32xf32, #tpu.memory_space<vmem>>, %arg10: memref<2x32x64xbf16, #tpu.memory_space<vmem>>, %arg11: memref<2x1x64xf32, #tpu.memory_space<vmem>>, %arg12: memref<2x32x32xbf16, #tpu.memory_space<vmem>>, %arg13: memref<2x1x32xf32, #tpu.memory_space<vmem>>, %arg14: memref<32x64xbf16, #tpu.memory_space<vmem>>, %arg15: memref<1x64xf32, #tpu.memory_space<vmem>>, %arg16: memref<64x32xbf16, #tpu.memory_space<vmem>>, %arg17: memref<1x32xf32, #tpu.memory_space<vmem>>, %arg18: memref<1x32xf32, #tpu.memory_space<vmem>>, %arg19: memref<1x32xf32, #tpu.memory_space<vmem>>, %arg20: memref<1x8x32xf32, #tpu.memory_space<vmem>>, %arg21: memref<4x8x8xbf16, #tpu.memory_space<vmem>>, %arg22: memref<4x8x8xbf16, #tpu.memory_space<vmem>>, %arg23: memref<4x8x8xbf16, #tpu.memory_space<vmem>>, %arg24: memref<4x8x8xbf16, #tpu.memory_space<vmem>>) attributes {dimension_semantics = [#tpu.dimension_semantics<parallel>, #tpu.dimension_semantics<arbitrary>], iteration_bounds = array<i64: 2, 1>, scalar_prefetch = 0 : i64, scratch_operands = 4 : i64, tpu.core_type = #tpu.core_type<tc>, window_params = [{transform_indices = @transform_0, window_bounds = array<i64: 1, 8, 32>}, {transform_indices = @transform_1, window_bounds = array<i64: 1, 8, 32>}, {transform_indices = @transform_2, window_bounds = array<i64: 1, 8, 8>}, {transform_indices = @transform_3, window_bounds = array<i64: 1, 8, 8>}, {pipeline_mode = #tpu.pipeline_mode<synchronous>, transform_indices = @transform_4, window_bounds = array<i64: 3, 1, 32>}, {pipeline_mode = #tpu.pipeline_mode<synchronous>, transform_indices = @transform_5, window_bounds = array<i64: 3, 1, 32>}, {pipeline_mode = #tpu.pipeline_mode<synchronous>, transform_indices = @transform_6, window_bounds = array<i64: 2, 32, 32>}, {pipeline_mode = #tpu.pipeline_mode<synchronous>, transform_indices = @transform_7, window_bounds = array<i64: 2, 1, 32>}, {pipeline_mode = #tpu.pipeline_mode<synchronous>, transform_indices = @transform_8, window_bounds = array<i64: 2, 32, 64>}, {pipeline_mode = #tpu.pipeline_mode<synchronous>, transform_indices = @transform_9, window_bounds = array<i64: 2, 1, 64>}, {pipeline_mode = #tpu.pipeline_mode<synchronous>, transform_indices = @transform_10, window_bounds = array<i64: 2, 32, 32>}, {pipeline_mode = #tpu.pipeline_mode<synchronous>, transform_indices = @transform_11, window_bounds = array<i64: 2, 1, 32>}, {pipeline_mode = #tpu.pipeline_mode<synchronous>, transform_indices = @transform_12, window_bounds = array<i64: 32, 64>}, {pipeline_mode = #tpu.pipeline_mode<synchronous>, transform_indices = @transform_13, window_bounds = array<i64: 1, 64>}, {pipeline_mode = #tpu.pipeline_mode<synchronous>, transform_indices = @transform_14, window_bounds = array<i64: 64, 32>}, {pipeline_mode = #tpu.pipeline_mode<synchronous>, transform_indices = @transform_15, window_bounds = array<i64: 1, 32>}, {pipeline_mode = #tpu.pipeline_mode<synchronous>, transform_indices = @transform_16, window_bounds = array<i64: 1, 32>}, {pipeline_mode = #tpu.pipeline_mode<synchronous>, transform_indices = @transform_17, window_bounds = array<i64: 1, 32>}, {transform_indices = @transform_18, window_bounds = array<i64: 1, 8, 32>}]} {
    %c0_i32 = arith.constant 0 : i32
    %0 = arith.cmpi eq, %arg1, %c0_i32 : i32
    %1 = arith.extui %0 : i1 to i32
    %c0_i32_0 = arith.constant 0 : i32
    %2 = arith.cmpi ne, %1, %c0_i32_0 : i32
    scf.if %2 {
      %c0_108 = arith.constant 0 : index
      %c0_109 = arith.constant 0 : index
      %c0_110 = arith.constant 0 : index
      %220 = vector.load %arg2[%c0_108, %c0_109, %c0_110] : memref<1x8x32xf32, #tpu.memory_space<vmem>>, vector<1x8x32xf32>
      %221 = vector.shape_cast %220 : vector<1x8x32xf32> to vector<8x32xf32>
      %c0_111 = arith.constant 0 : index
      %c0_112 = arith.constant 0 : index
      %c0_113 = arith.constant 0 : index
      %222 = vector.load %arg6[%c0_111, %c0_112, %c0_113] : memref<3x1x32xf32, #tpu.memory_space<vmem>>, vector<1x1x32xf32>
      %223 = vector.shape_cast %222 : vector<1x1x32xf32> to vector<1x32xf32>
      %c0_114 = arith.constant 0 : index
      %c0_115 = arith.constant 0 : index
      %c0_116 = arith.constant 0 : index
      %224 = vector.load %arg7[%c0_114, %c0_115, %c0_116] : memref<3x1x32xf32, #tpu.memory_space<vmem>>, vector<1x1x32xf32>
      %225 = vector.shape_cast %224 : vector<1x1x32xf32> to vector<1x32xf32>
      %cst_117 = arith.constant dense<0.000000e+00> : vector<8xf32>
      %226 = vector.multi_reduction <add>, %221, %cst_117 [1] : vector<8x32xf32> to vector<8xf32>
      %227 = vector.shape_cast %226 : vector<8xf32> to vector<8x1xf32>
      %cst_118 = arith.constant 3.200000e+01 : f32
      %228 = vector.broadcast %cst_118 : f32 to vector<8x1xf32>
      %229 = arith.divf %227, %228 : vector<8x1xf32>
      %230 = vector.broadcast %229 : vector<8x1xf32> to vector<8x32xf32>
      %231 = arith.subf %221, %230 : vector<8x32xf32>
      %232 = arith.mulf %231, %231 : vector<8x32xf32>
      %cst_119 = arith.constant dense<0.000000e+00> : vector<8xf32>
      %233 = vector.multi_reduction <add>, %232, %cst_119 [1] : vector<8x32xf32> to vector<8xf32>
      %234 = vector.shape_cast %233 : vector<8xf32> to vector<8x1xf32>
      %cst_120 = arith.constant 3.200000e+01 : f32
      %235 = vector.broadcast %cst_120 : f32 to vector<8x1xf32>
      %236 = arith.divf %234, %235 : vector<8x1xf32>
      %237 = vector.broadcast %229 : vector<8x1xf32> to vector<8x32xf32>
      %238 = arith.subf %221, %237 : vector<8x32xf32>
      %cst_121 = arith.constant 9.99999974E-6 : f32
      %239 = vector.broadcast %cst_121 : f32 to vector<8x1xf32>
      %240 = arith.addf %236, %239 : vector<8x1xf32>
      %241 = math.rsqrt %240 : vector<8x1xf32>
      %242 = vector.broadcast %241 : vector<8x1xf32> to vector<8x32xf32>
      %243 = arith.mulf %238, %242 : vector<8x32xf32>
      %244 = vector.broadcast %223 : vector<1x32xf32> to vector<8x32xf32>
      %245 = arith.mulf %243, %244 : vector<8x32xf32>
      %246 = vector.broadcast %225 : vector<1x32xf32> to vector<8x32xf32>
      %247 = arith.addf %245, %246 : vector<8x32xf32>
      %248 = arith.truncf %247 : vector<8x32xf32> to vector<8x32xbf16>
      %c0_122 = arith.constant 0 : index
      %c0_123 = arith.constant 0 : index
      %c0_124 = arith.constant 0 : index
      %249 = vector.load %arg10[%c0_122, %c0_123, %c0_124] : memref<2x32x64xbf16, #tpu.memory_space<vmem>>, vector<1x32x64xbf16>
      %250 = vector.shape_cast %249 : vector<1x32x64xbf16> to vector<32x64xbf16>
      %cst_125 = arith.constant dense<0.000000e+00> : vector<8x64xf32>
      %251 = tpu.matmul %248, %250, %cst_125 {dimension_numbers = #tpu.dot_dimension_numbers<[1], [0], [0], [1], [0, 0, 1, 1], [], []>} : vector<8x32xbf16>, vector<32x64xbf16>, vector<8x64xf32> -> vector<8x64xf32>
      %c0_126 = arith.constant 0 : index
      %c0_127 = arith.constant 0 : index
      %c0_128 = arith.constant 0 : index
      %252 = vector.load %arg11[%c0_126, %c0_127, %c0_128] : memref<2x1x64xf32, #tpu.memory_space<vmem>>, vector<1x1x64xf32>
      %253 = vector.shape_cast %252 : vector<1x1x64xf32> to vector<1x64xf32>
      %254 = vector.broadcast %253 : vector<1x64xf32> to vector<8x64xf32>
      %255 = arith.addf %251, %254 : vector<8x64xf32>
      %256 = vector.extract_strided_slice %255 {offsets = [0, 0], sizes = [8, 32], strides = [1, 1]} : vector<8x64xf32> to vector<8x32xf32>
      %257 = arith.truncf %256 : vector<8x32xf32> to vector<8x32xbf16>
      %258 = tpu.transpose %257, [1, 0] : vector<8x32xbf16> -> vector<32x8xbf16>
      %259 = vector.shape_cast %258 : vector<32x8xbf16> to vector<4x8x8xbf16>
      %260 = tpu.transpose %259, [0, 2, 1] : vector<4x8x8xbf16> -> vector<4x8x8xbf16>
      %c0_129 = arith.constant 0 : index
      %c0_130 = arith.constant 0 : index
      %c0_131 = arith.constant 0 : index
      %261 = vector.load %arg21[%c0_129, %c0_130, %c0_131] : memref<4x8x8xbf16, #tpu.memory_space<vmem>>, vector<4x8x8xbf16>
      tpu.vector_store %arg21[%c0_129, %c0_130, %c0_131], %260 {strides = array<i32>} : memref<4x8x8xbf16, #tpu.memory_space<vmem>>, vector<4x8x8xbf16>,
      %262 = vector.extract_strided_slice %255 {offsets = [0, 32], sizes = [8, 32], strides = [1, 1]} : vector<8x64xf32> to vector<8x32xf32>
      %263 = arith.truncf %262 : vector<8x32xf32> to vector<8x32xbf16>
      %264 = tpu.transpose %263, [1, 0] : vector<8x32xbf16> -> vector<32x8xbf16>
      %265 = vector.shape_cast %264 : vector<32x8xbf16> to vector<4x8x8xbf16>
      %266 = tpu.transpose %265, [0, 2, 1] : vector<4x8x8xbf16> -> vector<4x8x8xbf16>
      %c0_132 = arith.constant 0 : index
      %c0_133 = arith.constant 0 : index
      %c0_134 = arith.constant 0 : index
      %267 = vector.load %arg22[%c0_132, %c0_133, %c0_134] : memref<4x8x8xbf16, #tpu.memory_space<vmem>>, vector<4x8x8xbf16>
      tpu.vector_store %arg22[%c0_132, %c0_133, %c0_134], %266 {strides = array<i32>} : memref<4x8x8xbf16, #tpu.memory_space<vmem>>, vector<4x8x8xbf16>,
      %c0_135 = arith.constant 0 : index
      %c0_136 = arith.constant 0 : index
      %c0_137 = arith.constant 0 : index
      %268 = vector.load %arg3[%c0_135, %c0_136, %c0_137] : memref<1x8x32xbf16, #tpu.memory_space<vmem>>, vector<1x8x32xbf16>
      %269 = vector.shape_cast %268 : vector<1x8x32xbf16> to vector<8x32xbf16>
      %c1_138 = arith.constant 1 : index
      %c0_139 = arith.constant 0 : index
      %c0_140 = arith.constant 0 : index
      %270 = vector.load %arg10[%c1_138, %c0_139, %c0_140] : memref<2x32x64xbf16, #tpu.memory_space<vmem>>, vector<1x32x64xbf16>
      %271 = vector.shape_cast %270 : vector<1x32x64xbf16> to vector<32x64xbf16>
      %cst_141 = arith.constant dense<0.000000e+00> : vector<8x64xf32>
      %272 = tpu.matmul %269, %271, %cst_141 {dimension_numbers = #tpu.dot_dimension_numbers<[1], [0], [0], [1], [0, 0, 1, 1], [], []>} : vector<8x32xbf16>, vector<32x64xbf16>, vector<8x64xf32> -> vector<8x64xf32>
      %c1_142 = arith.constant 1 : index
      %c0_143 = arith.constant 0 : index
      %c0_144 = arith.constant 0 : index
      %273 = vector.load %arg11[%c1_142, %c0_143, %c0_144] : memref<2x1x64xf32, #tpu.memory_space<vmem>>, vector<1x1x64xf32>
      %274 = vector.shape_cast %273 : vector<1x1x64xf32> to vector<1x64xf32>
      %275 = vector.broadcast %274 : vector<1x64xf32> to vector<8x64xf32>
      %276 = arith.addf %272, %275 : vector<8x64xf32>
      %277 = vector.extract_strided_slice %276 {offsets = [0, 0], sizes = [8, 32], strides = [1, 1]} : vector<8x64xf32> to vector<8x32xf32>
      %278 = arith.truncf %277 : vector<8x32xf32> to vector<8x32xbf16>
      %279 = tpu.transpose %278, [1, 0] : vector<8x32xbf16> -> vector<32x8xbf16>
      %280 = vector.shape_cast %279 : vector<32x8xbf16> to vector<4x8x8xbf16>
      %281 = tpu.transpose %280, [0, 2, 1] : vector<4x8x8xbf16> -> vector<4x8x8xbf16>
      %c0_145 = arith.constant 0 : index
      %c0_146 = arith.constant 0 : index
      %c0_147 = arith.constant 0 : index
      %282 = vector.load %arg23[%c0_145, %c0_146, %c0_147] : memref<4x8x8xbf16, #tpu.memory_space<vmem>>, vector<4x8x8xbf16>
      tpu.vector_store %arg23[%c0_145, %c0_146, %c0_147], %281 {strides = array<i32>} : memref<4x8x8xbf16, #tpu.memory_space<vmem>>, vector<4x8x8xbf16>,
      %283 = vector.extract_strided_slice %276 {offsets = [0, 32], sizes = [8, 32], strides = [1, 1]} : vector<8x64xf32> to vector<8x32xf32>
      %284 = arith.truncf %283 : vector<8x32xf32> to vector<8x32xbf16>
      %285 = tpu.transpose %284, [1, 0] : vector<8x32xbf16> -> vector<32x8xbf16>
      %286 = vector.shape_cast %285 : vector<32x8xbf16> to vector<4x8x8xbf16>
      %287 = tpu.transpose %286, [0, 2, 1] : vector<4x8x8xbf16> -> vector<4x8x8xbf16>
      %c0_148 = arith.constant 0 : index
      %c0_149 = arith.constant 0 : index
      %c0_150 = arith.constant 0 : index
      %288 = vector.load %arg24[%c0_148, %c0_149, %c0_150] : memref<4x8x8xbf16, #tpu.memory_space<vmem>>, vector<4x8x8xbf16>
      tpu.vector_store %arg24[%c0_148, %c0_149, %c0_150], %287 {strides = array<i32>} : memref<4x8x8xbf16, #tpu.memory_space<vmem>>, vector<4x8x8xbf16>,
    } else {
    }
    %c8_i32 = arith.constant 8 : i32
    %3 = arith.muli %arg1, %c8_i32 : i32
    %4 = tpu.assume_multiple %3, 8 : i32
    %c0 = arith.constant 0 : index
    %5 = arith.index_cast %4 : i32 to index
    %c0_1 = arith.constant 0 : index
    %6 = vector.load %arg2[%c0, %5, %c0_1] : memref<1x8x32xf32, #tpu.memory_space<vmem>>, vector<1x8x32xf32>
    %7 = vector.shape_cast %6 : vector<1x8x32xf32> to vector<8x32xf32>
    %c0_2 = arith.constant 0 : index
    %c0_3 = arith.constant 0 : index
    %c0_4 = arith.constant 0 : index
    %8 = vector.load %arg4[%c0_2, %c0_3, %c0_4] : memref<1x8x8xbf16, #tpu.memory_space<vmem>>, vector<1x8x8xbf16>
    %9 = vector.shape_cast %8 : vector<1x8x8xbf16> to vector<8x8xbf16>
    %10 = arith.extf %9 : vector<8x8xbf16> to vector<8x8xf32>
    %cst = arith.constant 1.000000e+00 : f32
    %11 = vector.broadcast %cst : f32 to vector<8x8xf32>
    %12 = arith.subf %10, %11 : vector<8x8xf32>
    %cst_5 = arith.constant 1.000000e+09 : f32
    %13 = vector.broadcast %cst_5 : f32 to vector<8x8xf32>
    %14 = arith.mulf %12, %13 : vector<8x8xf32>
    %c0_6 = arith.constant 0 : index
    %c0_7 = arith.constant 0 : index
    %c0_8 = arith.constant 0 : index
    %15 = vector.load %arg5[%c0_6, %c0_7, %c0_8] : memref<1x8x8xbf16, #tpu.memory_space<vmem>>, vector<1x8x8xbf16>
    %16 = vector.shape_cast %15 : vector<1x8x8xbf16> to vector<8x8xbf16>
    %17 = arith.extf %16 : vector<8x8xbf16> to vector<8x8xf32>
    %cst_9 = arith.constant 1.000000e+00 : f32
    %18 = vector.broadcast %cst_9 : f32 to vector<8x8xf32>
    %19 = arith.subf %17, %18 : vector<8x8xf32>
    %cst_10 = arith.constant 1.000000e+09 : f32
    %20 = vector.broadcast %cst_10 : f32 to vector<8x8xf32>
    %21 = arith.mulf %19, %20 : vector<8x8xf32>
    %c0_11 = arith.constant 0 : index
    %c0_12 = arith.constant 0 : index
    %c0_13 = arith.constant 0 : index
    %22 = vector.load %arg6[%c0_11, %c0_12, %c0_13] : memref<3x1x32xf32, #tpu.memory_space<vmem>>, vector<1x1x32xf32>
    %23 = vector.shape_cast %22 : vector<1x1x32xf32> to vector<1x32xf32>
    %c0_14 = arith.constant 0 : index
    %c0_15 = arith.constant 0 : index
    %c0_16 = arith.constant 0 : index
    %24 = vector.load %arg7[%c0_14, %c0_15, %c0_16] : memref<3x1x32xf32, #tpu.memory_space<vmem>>, vector<1x1x32xf32>
    %25 = vector.shape_cast %24 : vector<1x1x32xf32> to vector<1x32xf32>
    %cst_17 = arith.constant dense<0.000000e+00> : vector<8xf32>
    %26 = vector.multi_reduction <add>, %7, %cst_17 [1] : vector<8x32xf32> to vector<8xf32>
    %27 = vector.shape_cast %26 : vector<8xf32> to vector<8x1xf32>
    %cst_18 = arith.constant 3.200000e+01 : f32
    %28 = vector.broadcast %cst_18 : f32 to vector<8x1xf32>
    %29 = arith.divf %27, %28 : vector<8x1xf32>
    %30 = vector.broadcast %29 : vector<8x1xf32> to vector<8x32xf32>
    %31 = arith.subf %7, %30 : vector<8x32xf32>
    %32 = arith.mulf %31, %31 : vector<8x32xf32>
    %cst_19 = arith.constant dense<0.000000e+00> : vector<8xf32>
    %33 = vector.multi_reduction <add>, %32, %cst_19 [1] : vector<8x32xf32> to vector<8xf32>
    %34 = vector.shape_cast %33 : vector<8xf32> to vector<8x1xf32>
    %cst_20 = arith.constant 3.200000e+01 : f32
    %35 = vector.broadcast %cst_20 : f32 to vector<8x1xf32>
    %36 = arith.divf %34, %35 : vector<8x1xf32>
    %37 = vector.broadcast %29 : vector<8x1xf32> to vector<8x32xf32>
    %38 = arith.subf %7, %37 : vector<8x32xf32>
    %cst_21 = arith.constant 9.99999974E-6 : f32
    %39 = vector.broadcast %cst_21 : f32 to vector<8x1xf32>
    %40 = arith.addf %36, %39 : vector<8x1xf32>
    %41 = math.rsqrt %40 : vector<8x1xf32>
    %42 = vector.broadcast %41 : vector<8x1xf32> to vector<8x32xf32>
    %43 = arith.mulf %38, %42 : vector<8x32xf32>
    %44 = vector.broadcast %23 : vector<1x32xf32> to vector<8x32xf32>
    %45 = arith.mulf %43, %44 : vector<8x32xf32>
    %46 = vector.broadcast %25 : vector<1x32xf32> to vector<8x32xf32>
    %47 = arith.addf %45, %46 : vector<8x32xf32>
    %48 = arith.truncf %47 : vector<8x32xf32> to vector<8x32xbf16>
    %c0_22 = arith.constant 0 : index
    %c0_23 = arith.constant 0 : index
    %c0_24 = arith.constant 0 : index
    %49 = vector.load %arg8[%c0_22, %c0_23, %c0_24] : memref<2x32x32xbf16, #tpu.memory_space<vmem>>, vector<1x32x32xbf16>
    %50 = vector.shape_cast %49 : vector<1x32x32xbf16> to vector<32x32xbf16>
    %cst_25 = arith.constant dense<0.000000e+00> : vector<8x32xf32>
    %51 = tpu.matmul %48, %50, %cst_25 {dimension_numbers = #tpu.dot_dimension_numbers<[1], [0], [0], [1], [0, 0, 1, 1], [], []>} : vector<8x32xbf16>, vector<32x32xbf16>, vector<8x32xf32> -> vector<8x32xf32>
    %c0_26 = arith.constant 0 : index
    %c0_27 = arith.constant 0 : index
    %c0_28 = arith.constant 0 : index
    %52 = vector.load %arg9[%c0_26, %c0_27, %c0_28] : memref<2x1x32xf32, #tpu.memory_space<vmem>>, vector<1x1x32xf32>
    %53 = vector.shape_cast %52 : vector<1x1x32xf32> to vector<1x32xf32>
    %54 = vector.broadcast %53 : vector<1x32xf32> to vector<8x32xf32>
    %55 = arith.addf %51, %54 : vector<8x32xf32>
    %cst_29 = arith.constant 0.353553385 : f32
    %56 = vector.broadcast %cst_29 : f32 to vector<8x32xf32>
    %57 = arith.mulf %55, %56 : vector<8x32xf32>
    %58 = arith.truncf %57 : vector<8x32xf32> to vector<8x32xbf16>
    %59 = tpu.transpose %58, [1, 0] : vector<8x32xbf16> -> vector<32x8xbf16>
    %60 = vector.shape_cast %59 : vector<32x8xbf16> to vector<4x8x8xbf16>
    %61 = tpu.transpose %60, [0, 2, 1] : vector<4x8x8xbf16> -> vector<4x8x8xbf16>
    %c0_30 = arith.constant 0 : index
    %c0_31 = arith.constant 0 : index
    %c0_32 = arith.constant 0 : index
    %62 = vector.load %arg21[%c0_30, %c0_31, %c0_32] : memref<4x8x8xbf16, #tpu.memory_space<vmem>>, vector<4x8x8xbf16>
    %c0_33 = arith.constant 0 : index
    %c0_34 = arith.constant 0 : index
    %c0_35 = arith.constant 0 : index
    %63 = vector.load %arg22[%c0_33, %c0_34, %c0_35] : memref<4x8x8xbf16, #tpu.memory_space<vmem>>, vector<4x8x8xbf16>
    "tpu.trace_start"() <{level = 10 : i32, message = "hqd,hkd->hqk"}> : () -> ()
    %cst_36 = arith.constant dense<0.000000e+00> : vector<4x8x8xf32>
    %64 = tpu.matmul %61, %62, %cst_36 {dimension_numbers = #tpu.dot_dimension_numbers<[2], [2], [1], [1], [0, 0, 0, 1, 1, 1], [0], [0]>} : vector<4x8x8xbf16>, vector<4x8x8xbf16>, vector<4x8x8xf32> -> vector<4x8x8xf32>
    "tpu.trace_stop"() : () -> ()
    %65 = vector.shape_cast %14 : vector<8x8xf32> to vector<1x8x8xf32>
    %66 = vector.broadcast %65 : vector<1x8x8xf32> to vector<4x8x8xf32>
    %67 = arith.addf %64, %66 : vector<4x8x8xf32>
    %cst_37 = arith.constant dense<0xFF800000> : vector<4x8xf32>
    %68 = vector.multi_reduction <maximumf>, %67, %cst_37 [2] : vector<4x8x8xf32> to vector<4x8xf32>
    %cst_38 = arith.constant 0xFF800000 : f32
    %69 = vector.broadcast %cst_38 : f32 to vector<4x8xf32>
    %70 = arith.maximumf %69, %68 : vector<4x8xf32>
    %71 = vector.shape_cast %70 : vector<4x8xf32> to vector<4x8x1xf32>
    %72 = vector.broadcast %71 : vector<4x8x1xf32> to vector<4x8x8xf32>
    %73 = arith.subf %67, %72 : vector<4x8x8xf32>
    %74 = math.exp %73 : vector<4x8x8xf32>
    %cst_39 = arith.constant dense<0.000000e+00> : vector<4x8xf32>
    %75 = vector.multi_reduction <add>, %74, %cst_39 [2] : vector<4x8x8xf32> to vector<4x8xf32>
    %76 = vector.shape_cast %75 : vector<4x8xf32> to vector<4x8x1xf32>
    %77 = vector.broadcast %76 : vector<4x8x1xf32> to vector<4x8x8xf32>
    %78 = arith.divf %74, %77 : vector<4x8x8xf32>
    %79 = arith.truncf %78 : vector<4x8x8xf32> to vector<4x8x8xbf16>
    "tpu.trace_start"() <{level = 10 : i32, message = "hqk,hkd->hqd"}> : () -> ()
    %cst_40 = arith.constant dense<0.000000e+00> : vector<4x8x8xf32>
    %80 = tpu.matmul %79, %63, %cst_40 {dimension_numbers = #tpu.dot_dimension_numbers<[2], [1], [1], [2], [0, 0, 0, 1, 1, 2], [0], [0]>} : vector<4x8x8xbf16>, vector<4x8x8xbf16>, vector<4x8x8xf32> -> vector<4x8x8xf32>
    "tpu.trace_stop"() : () -> ()
    %81 = arith.truncf %80 : vector<4x8x8xf32> to vector<4x8x8xbf16>
    %82 = vector.extract_strided_slice %81 {offsets = [0, 0, 0], sizes = [1, 8, 8], strides = [1, 1, 1]} : vector<4x8x8xbf16> to vector<1x8x8xbf16>
    %83 = vector.shape_cast %82 : vector<1x8x8xbf16> to vector<8x8xbf16>
    %84 = vector.extract_strided_slice %81 {offsets = [1, 0, 0], sizes = [1, 8, 8], strides = [1, 1, 1]} : vector<4x8x8xbf16> to vector<1x8x8xbf16>
    %85 = vector.shape_cast %84 : vector<1x8x8xbf16> to vector<8x8xbf16>
    %86 = vector.extract_strided_slice %81 {offsets = [2, 0, 0], sizes = [1, 8, 8], strides = [1, 1, 1]} : vector<4x8x8xbf16> to vector<1x8x8xbf16>
    %87 = vector.shape_cast %86 : vector<1x8x8xbf16> to vector<8x8xbf16>
    %88 = vector.extract_strided_slice %81 {offsets = [3, 0, 0], sizes = [1, 8, 8], strides = [1, 1, 1]} : vector<4x8x8xbf16> to vector<1x8x8xbf16>
    %89 = vector.shape_cast %88 : vector<1x8x8xbf16> to vector<8x8xbf16>
    %90 = tpu.concatenate %83, %85, %87, %89 in 1 : vector<8x8xbf16>, vector<8x8xbf16>, vector<8x8xbf16>, vector<8x8xbf16> -> vector<8x32xbf16>
    %c0_41 = arith.constant 0 : index
    %c0_42 = arith.constant 0 : index
    %c0_43 = arith.constant 0 : index
    %91 = vector.load %arg12[%c0_41, %c0_42, %c0_43] : memref<2x32x32xbf16, #tpu.memory_space<vmem>>, vector<1x32x32xbf16>
    %92 = vector.shape_cast %91 : vector<1x32x32xbf16> to vector<32x32xbf16>
    %cst_44 = arith.constant dense<0.000000e+00> : vector<8x32xf32>
    %93 = tpu.matmul %90, %92, %cst_44 {dimension_numbers = #tpu.dot_dimension_numbers<[1], [0], [0], [1], [0, 0, 1, 1], [], []>} : vector<8x32xbf16>, vector<32x32xbf16>, vector<8x32xf32> -> vector<8x32xf32>
    %c0_45 = arith.constant 0 : index
    %c0_46 = arith.constant 0 : index
    %c0_47 = arith.constant 0 : index
    %94 = vector.load %arg13[%c0_45, %c0_46, %c0_47] : memref<2x1x32xf32, #tpu.memory_space<vmem>>, vector<1x1x32xf32>
    %95 = vector.shape_cast %94 : vector<1x1x32xf32> to vector<1x32xf32>
    %96 = vector.broadcast %95 : vector<1x32xf32> to vector<8x32xf32>
    %97 = arith.addf %93, %96 : vector<8x32xf32>
    %98 = arith.addf %7, %97 : vector<8x32xf32>
    %c1 = arith.constant 1 : index
    %c0_48 = arith.constant 0 : index
    %c0_49 = arith.constant 0 : index
    %99 = vector.load %arg6[%c1, %c0_48, %c0_49] : memref<3x1x32xf32, #tpu.memory_space<vmem>>, vector<1x1x32xf32>
    %100 = vector.shape_cast %99 : vector<1x1x32xf32> to vector<1x32xf32>
    %c1_50 = arith.constant 1 : index
    %c0_51 = arith.constant 0 : index
    %c0_52 = arith.constant 0 : index
    %101 = vector.load %arg7[%c1_50, %c0_51, %c0_52] : memref<3x1x32xf32, #tpu.memory_space<vmem>>, vector<1x1x32xf32>
    %102 = vector.shape_cast %101 : vector<1x1x32xf32> to vector<1x32xf32>
    %cst_53 = arith.constant dense<0.000000e+00> : vector<8xf32>
    %103 = vector.multi_reduction <add>, %98, %cst_53 [1] : vector<8x32xf32> to vector<8xf32>
    %104 = vector.shape_cast %103 : vector<8xf32> to vector<8x1xf32>
    %cst_54 = arith.constant 3.200000e+01 : f32
    %105 = vector.broadcast %cst_54 : f32 to vector<8x1xf32>
    %106 = arith.divf %104, %105 : vector<8x1xf32>
    %107 = vector.broadcast %106 : vector<8x1xf32> to vector<8x32xf32>
    %108 = arith.subf %98, %107 : vector<8x32xf32>
    %109 = arith.mulf %108, %108 : vector<8x32xf32>
    %cst_55 = arith.constant dense<0.000000e+00> : vector<8xf32>
    %110 = vector.multi_reduction <add>, %109, %cst_55 [1] : vector<8x32xf32> to vector<8xf32>
    %111 = vector.shape_cast %110 : vector<8xf32> to vector<8x1xf32>
    %cst_56 = arith.constant 3.200000e+01 : f32
    %112 = vector.broadcast %cst_56 : f32 to vector<8x1xf32>
    %113 = arith.divf %111, %112 : vector<8x1xf32>
    %114 = vector.broadcast %106 : vector<8x1xf32> to vector<8x32xf32>
    %115 = arith.subf %98, %114 : vector<8x32xf32>
    %cst_57 = arith.constant 9.99999974E-6 : f32
    %116 = vector.broadcast %cst_57 : f32 to vector<8x1xf32>
    %117 = arith.addf %113, %116 : vector<8x1xf32>
    %118 = math.rsqrt %117 : vector<8x1xf32>
    %119 = vector.broadcast %118 : vector<8x1xf32> to vector<8x32xf32>
    %120 = arith.mulf %115, %119 : vector<8x32xf32>
    %121 = vector.broadcast %100 : vector<1x32xf32> to vector<8x32xf32>
    %122 = arith.mulf %120, %121 : vector<8x32xf32>
    %123 = vector.broadcast %102 : vector<1x32xf32> to vector<8x32xf32>
    %124 = arith.addf %122, %123 : vector<8x32xf32>
    %125 = arith.truncf %124 : vector<8x32xf32> to vector<8x32xbf16>
    %c1_58 = arith.constant 1 : index
    %c0_59 = arith.constant 0 : index
    %c0_60 = arith.constant 0 : index
    %126 = vector.load %arg8[%c1_58, %c0_59, %c0_60] : memref<2x32x32xbf16, #tpu.memory_space<vmem>>, vector<1x32x32xbf16>
    %127 = vector.shape_cast %126 : vector<1x32x32xbf16> to vector<32x32xbf16>
    %cst_61 = arith.constant dense<0.000000e+00> : vector<8x32xf32>
    %128 = tpu.matmul %125, %127, %cst_61 {dimension_numbers = #tpu.dot_dimension_numbers<[1], [0], [0], [1], [0, 0, 1, 1], [], []>} : vector<8x32xbf16>, vector<32x32xbf16>, vector<8x32xf32> -> vector<8x32xf32>
    %c1_62 = arith.constant 1 : index
    %c0_63 = arith.constant 0 : index
    %c0_64 = arith.constant 0 : index
    %129 = vector.load %arg9[%c1_62, %c0_63, %c0_64] : memref<2x1x32xf32, #tpu.memory_space<vmem>>, vector<1x1x32xf32>
    %130 = vector.shape_cast %129 : vector<1x1x32xf32> to vector<1x32xf32>
    %131 = vector.broadcast %130 : vector<1x32xf32> to vector<8x32xf32>
    %132 = arith.addf %128, %131 : vector<8x32xf32>
    %cst_65 = arith.constant 0.353553385 : f32
    %133 = vector.broadcast %cst_65 : f32 to vector<8x32xf32>
    %134 = arith.mulf %132, %133 : vector<8x32xf32>
    %135 = arith.truncf %134 : vector<8x32xf32> to vector<8x32xbf16>
    %136 = tpu.transpose %135, [1, 0] : vector<8x32xbf16> -> vector<32x8xbf16>
    %137 = vector.shape_cast %136 : vector<32x8xbf16> to vector<4x8x8xbf16>
    %138 = tpu.transpose %137, [0, 2, 1] : vector<4x8x8xbf16> -> vector<4x8x8xbf16>
    %c0_66 = arith.constant 0 : index
    %c0_67 = arith.constant 0 : index
    %c0_68 = arith.constant 0 : index
    %139 = vector.load %arg23[%c0_66, %c0_67, %c0_68] : memref<4x8x8xbf16, #tpu.memory_space<vmem>>, vector<4x8x8xbf16>
    %c0_69 = arith.constant 0 : index
    %c0_70 = arith.constant 0 : index
    %c0_71 = arith.constant 0 : index
    %140 = vector.load %arg24[%c0_69, %c0_70, %c0_71] : memref<4x8x8xbf16, #tpu.memory_space<vmem>>, vector<4x8x8xbf16>
    "tpu.trace_start"() <{level = 10 : i32, message = "hqd,hkd->hqk"}> : () -> ()
    %cst_72 = arith.constant dense<0.000000e+00> : vector<4x8x8xf32>
    %141 = tpu.matmul %138, %139, %cst_72 {dimension_numbers = #tpu.dot_dimension_numbers<[2], [2], [1], [1], [0, 0, 0, 1, 1, 1], [0], [0]>} : vector<4x8x8xbf16>, vector<4x8x8xbf16>, vector<4x8x8xf32> -> vector<4x8x8xf32>
    "tpu.trace_stop"() : () -> ()
    %142 = vector.shape_cast %21 : vector<8x8xf32> to vector<1x8x8xf32>
    %143 = vector.broadcast %142 : vector<1x8x8xf32> to vector<4x8x8xf32>
    %144 = arith.addf %141, %143 : vector<4x8x8xf32>
    %cst_73 = arith.constant dense<0xFF800000> : vector<4x8xf32>
    %145 = vector.multi_reduction <maximumf>, %144, %cst_73 [2] : vector<4x8x8xf32> to vector<4x8xf32>
    %cst_74 = arith.constant 0xFF800000 : f32
    %146 = vector.broadcast %cst_74 : f32 to vector<4x8xf32>
    %147 = arith.maximumf %146, %145 : vector<4x8xf32>
    %148 = vector.shape_cast %147 : vector<4x8xf32> to vector<4x8x1xf32>
    %149 = vector.broadcast %148 : vector<4x8x1xf32> to vector<4x8x8xf32>
    %150 = arith.subf %144, %149 : vector<4x8x8xf32>
    %151 = math.exp %150 : vector<4x8x8xf32>
    %cst_75 = arith.constant dense<0.000000e+00> : vector<4x8xf32>
    %152 = vector.multi_reduction <add>, %151, %cst_75 [2] : vector<4x8x8xf32> to vector<4x8xf32>
    %153 = vector.shape_cast %152 : vector<4x8xf32> to vector<4x8x1xf32>
    %154 = vector.broadcast %153 : vector<4x8x1xf32> to vector<4x8x8xf32>
    %155 = arith.divf %151, %154 : vector<4x8x8xf32>
    %156 = arith.truncf %155 : vector<4x8x8xf32> to vector<4x8x8xbf16>
    "tpu.trace_start"() <{level = 10 : i32, message = "hqk,hkd->hqd"}> : () -> ()
    %cst_76 = arith.constant dense<0.000000e+00> : vector<4x8x8xf32>
    %157 = tpu.matmul %156, %140, %cst_76 {dimension_numbers = #tpu.dot_dimension_numbers<[2], [1], [1], [2], [0, 0, 0, 1, 1, 2], [0], [0]>} : vector<4x8x8xbf16>, vector<4x8x8xbf16>, vector<4x8x8xf32> -> vector<4x8x8xf32>
    "tpu.trace_stop"() : () -> ()
    %158 = arith.truncf %157 : vector<4x8x8xf32> to vector<4x8x8xbf16>
    %159 = vector.extract_strided_slice %158 {offsets = [0, 0, 0], sizes = [1, 8, 8], strides = [1, 1, 1]} : vector<4x8x8xbf16> to vector<1x8x8xbf16>
    %160 = vector.shape_cast %159 : vector<1x8x8xbf16> to vector<8x8xbf16>
    %161 = vector.extract_strided_slice %158 {offsets = [1, 0, 0], sizes = [1, 8, 8], strides = [1, 1, 1]} : vector<4x8x8xbf16> to vector<1x8x8xbf16>
    %162 = vector.shape_cast %161 : vector<1x8x8xbf16> to vector<8x8xbf16>
    %163 = vector.extract_strided_slice %158 {offsets = [2, 0, 0], sizes = [1, 8, 8], strides = [1, 1, 1]} : vector<4x8x8xbf16> to vector<1x8x8xbf16>
    %164 = vector.shape_cast %163 : vector<1x8x8xbf16> to vector<8x8xbf16>
    %165 = vector.extract_strided_slice %158 {offsets = [3, 0, 0], sizes = [1, 8, 8], strides = [1, 1, 1]} : vector<4x8x8xbf16> to vector<1x8x8xbf16>
    %166 = vector.shape_cast %165 : vector<1x8x8xbf16> to vector<8x8xbf16>
    %167 = tpu.concatenate %160, %162, %164, %166 in 1 : vector<8x8xbf16>, vector<8x8xbf16>, vector<8x8xbf16>, vector<8x8xbf16> -> vector<8x32xbf16>
    %c1_77 = arith.constant 1 : index
    %c0_78 = arith.constant 0 : index
    %c0_79 = arith.constant 0 : index
    %168 = vector.load %arg12[%c1_77, %c0_78, %c0_79] : memref<2x32x32xbf16, #tpu.memory_space<vmem>>, vector<1x32x32xbf16>
    %169 = vector.shape_cast %168 : vector<1x32x32xbf16> to vector<32x32xbf16>
    %cst_80 = arith.constant dense<0.000000e+00> : vector<8x32xf32>
    %170 = tpu.matmul %167, %169, %cst_80 {dimension_numbers = #tpu.dot_dimension_numbers<[1], [0], [0], [1], [0, 0, 1, 1], [], []>} : vector<8x32xbf16>, vector<32x32xbf16>, vector<8x32xf32> -> vector<8x32xf32>
    %c1_81 = arith.constant 1 : index
    %c0_82 = arith.constant 0 : index
    %c0_83 = arith.constant 0 : index
    %171 = vector.load %arg13[%c1_81, %c0_82, %c0_83] : memref<2x1x32xf32, #tpu.memory_space<vmem>>, vector<1x1x32xf32>
    %172 = vector.shape_cast %171 : vector<1x1x32xf32> to vector<1x32xf32>
    %173 = vector.broadcast %172 : vector<1x32xf32> to vector<8x32xf32>
    %174 = arith.addf %170, %173 : vector<8x32xf32>
    %175 = arith.addf %98, %174 : vector<8x32xf32>
    %c2 = arith.constant 2 : index
    %c0_84 = arith.constant 0 : index
    %c0_85 = arith.constant 0 : index
    %176 = vector.load %arg6[%c2, %c0_84, %c0_85] : memref<3x1x32xf32, #tpu.memory_space<vmem>>, vector<1x1x32xf32>
    %177 = vector.shape_cast %176 : vector<1x1x32xf32> to vector<1x32xf32>
    %c2_86 = arith.constant 2 : index
    %c0_87 = arith.constant 0 : index
    %c0_88 = arith.constant 0 : index
    %178 = vector.load %arg7[%c2_86, %c0_87, %c0_88] : memref<3x1x32xf32, #tpu.memory_space<vmem>>, vector<1x1x32xf32>
    %179 = vector.shape_cast %178 : vector<1x1x32xf32> to vector<1x32xf32>
    %cst_89 = arith.constant dense<0.000000e+00> : vector<8xf32>
    %180 = vector.multi_reduction <add>, %175, %cst_89 [1] : vector<8x32xf32> to vector<8xf32>
    %181 = vector.shape_cast %180 : vector<8xf32> to vector<8x1xf32>
    %cst_90 = arith.constant 3.200000e+01 : f32
    %182 = vector.broadcast %cst_90 : f32 to vector<8x1xf32>
    %183 = arith.divf %181, %182 : vector<8x1xf32>
    %184 = vector.broadcast %183 : vector<8x1xf32> to vector<8x32xf32>
    %185 = arith.subf %175, %184 : vector<8x32xf32>
    %186 = arith.mulf %185, %185 : vector<8x32xf32>
    %cst_91 = arith.constant dense<0.000000e+00> : vector<8xf32>
    %187 = vector.multi_reduction <add>, %186, %cst_91 [1] : vector<8x32xf32> to vector<8xf32>
    %188 = vector.shape_cast %187 : vector<8xf32> to vector<8x1xf32>
    %cst_92 = arith.constant 3.200000e+01 : f32
    %189 = vector.broadcast %cst_92 : f32 to vector<8x1xf32>
    %190 = arith.divf %188, %189 : vector<8x1xf32>
    %191 = vector.broadcast %183 : vector<8x1xf32> to vector<8x32xf32>
    %192 = arith.subf %175, %191 : vector<8x32xf32>
    %cst_93 = arith.constant 9.99999974E-6 : f32
    %193 = vector.broadcast %cst_93 : f32 to vector<8x1xf32>
    %194 = arith.addf %190, %193 : vector<8x1xf32>
    %195 = math.rsqrt %194 : vector<8x1xf32>
    %196 = vector.broadcast %195 : vector<8x1xf32> to vector<8x32xf32>
    %197 = arith.mulf %192, %196 : vector<8x32xf32>
    %198 = vector.broadcast %177 : vector<1x32xf32> to vector<8x32xf32>
    %199 = arith.mulf %197, %198 : vector<8x32xf32>
    %200 = vector.broadcast %179 : vector<1x32xf32> to vector<8x32xf32>
    %201 = arith.addf %199, %200 : vector<8x32xf32>
    %202 = arith.truncf %201 : vector<8x32xf32> to vector<8x32xbf16>
    %c0_94 = arith.constant 0 : index
    %c0_95 = arith.constant 0 : index
    %203 = vector.load %arg14[%c0_94, %c0_95] : memref<32x64xbf16, #tpu.memory_space<vmem>>, vector<32x64xbf16>
    %cst_96 = arith.constant dense<0.000000e+00> : vector<8x64xf32>
    %204 = tpu.matmul %202, %203, %cst_96 {dimension_numbers = #tpu.dot_dimension_numbers<[1], [0], [0], [1], [0, 0, 1, 1], [], []>} : vector<8x32xbf16>, vector<32x64xbf16>, vector<8x64xf32> -> vector<8x64xf32>
    %c0_97 = arith.constant 0 : index
    %c0_98 = arith.constant 0 : index
    %205 = vector.load %arg15[%c0_97, %c0_98] : memref<1x64xf32, #tpu.memory_space<vmem>>, vector<1x64xf32>
    %206 = vector.broadcast %205 : vector<1x64xf32> to vector<8x64xf32>
    %207 = arith.addf %204, %206 : vector<8x64xf32>
    %cst_99 = arith.constant 0.000000e+00 : f32
    %208 = vector.broadcast %cst_99 : f32 to vector<8x64xf32>
    %209 = arith.maximumf %207, %208 : vector<8x64xf32>
    %210 = arith.truncf %209 : vector<8x64xf32> to vector<8x64xbf16>
    %c0_100 = arith.constant 0 : index
    %c0_101 = arith.constant 0 : index
    %211 = vector.load %arg16[%c0_100, %c0_101] : memref<64x32xbf16, #tpu.memory_space<vmem>>, vector<64x32xbf16>
    %cst_102 = arith.constant dense<0.000000e+00> : vector<8x32xf32>
    %212 = tpu.matmul %210, %211, %cst_102 {dimension_numbers = #tpu.dot_dimension_numbers<[1], [0], [0], [1], [0, 0, 1, 1], [], []>} : vector<8x64xbf16>, vector<64x32xbf16>, vector<8x32xf32> -> vector<8x32xf32>
    %213 = arith.addf %175, %212 : vector<8x32xf32>
    %c0_103 = arith.constant 0 : index
    %c0_104 = arith.constant 0 : index
    %214 = vector.load %arg17[%c0_103, %c0_104] : memref<1x32xf32, #tpu.memory_space<vmem>>, vector<1x32xf32>
    %215 = vector.broadcast %214 : vector<1x32xf32> to vector<8x32xf32>
    %216 = arith.addf %213, %215 : vector<8x32xf32>
    %c0_105 = arith.constant 0 : index
    %c0_106 = arith.constant 0 : index
    %c0_107 = arith.constant 0 : index
    %217 = vector.load %arg20[%c0_105, %c0_106, %c0_107] : memref<1x8x32xf32, #tpu.memory_space<vmem>>, vector<1x8x32xf32>
    %218 = vector.shape_cast %217 : vector<1x8x32xf32> to vector<8x32xf32>
    %219 = vector.shape_cast %216 : vector<8x32xf32> to vector<1x8x32xf32>
    tpu.vector_store %arg20[%c0_105, %c0_106, %c0_107], %219 {strides = array<i32>} : memref<1x8x32xf32, #tpu.memory_space<vmem>>, vector<1x8x32xf32>,
    return
  }
  func.func @transform_0(%arg0: i32, %arg1: i32) -> (i32, i32, i32) {
    %c0_i32 = arith.constant 0 : i32
    %c0_i32_0 = arith.constant 0 : i32
    %c0_i32_1 = arith.constant 0 : i32
    return %arg0, %c0_i32, %c0_i32_0 : i32, i32, i32
  }
  func.func @transform_1(%arg0: i32, %arg1: i32) -> (i32, i32, i32) {
    %c0_i32 = arith.constant 0 : i32
    %c0_i32_0 = arith.constant 0 : i32
    %c0_i32_1 = arith.constant 0 : i32
    return %arg0, %c0_i32, %c0_i32_0 : i32, i32, i32
  }
  func.func @transform_2(%arg0: i32, %arg1: i32) -> (i32, i32, i32) {
    %c0_i32 = arith.constant 0 : i32
    %c0_i32_0 = arith.constant 0 : i32
    return %arg0, %arg1, %c0_i32 : i32, i32, i32
  }
  func.func @transform_3(%arg0: i32, %arg1: i32) -> (i32, i32, i32) {
    %c0_i32 = arith.constant 0 : i32
    %c0_i32_0 = arith.constant 0 : i32
    return %arg0, %arg1, %c0_i32 : i32, i32, i32
  }
  func.func @transform_4(%arg0: i32, %arg1: i32) -> (i32, i32, i32) {
    %c0_i32 = arith.constant 0 : i32
    %c0_i32_0 = arith.constant 0 : i32
    %c0_i32_1 = arith.constant 0 : i32
    %c0_i32_2 = arith.constant 0 : i32
    return %c0_i32, %c0_i32_0, %c0_i32_1 : i32, i32, i32
  }
  func.func @transform_5(%arg0: i32, %arg1: i32) -> (i32, i32, i32) {
    %c0_i32 = arith.constant 0 : i32
    %c0_i32_0 = arith.constant 0 : i32
    %c0_i32_1 = arith.constant 0 : i32
    %c0_i32_2 = arith.constant 0 : i32
    return %c0_i32, %c0_i32_0, %c0_i32_1 : i32, i32, i32
  }
  func.func @transform_6(%arg0: i32, %arg1: i32) -> (i32, i32, i32) {
    %c0_i32 = arith.constant 0 : i32
    %c0_i32_0 = arith.constant 0 : i32
    %c0_i32_1 = arith.constant 0 : i32
    %c0_i32_2 = arith.constant 0 : i32
    return %c0_i32, %c0_i32_0, %c0_i32_1 : i32, i32, i32
  }
  func.func @transform_7(%arg0: i32, %arg1: i32) -> (i32, i32, i32) {
    %c0_i32 = arith.constant 0 : i32
    %c0_i32_0 = arith.constant 0 : i32
    %c0_i32_1 = arith.constant 0 : i32
    %c0_i32_2 = arith.constant 0 : i32
    return %c0_i32, %c0_i32_0, %c0_i32_1 : i32, i32, i32
  }
  func.func @transform_8(%arg0: i32, %arg1: i32) -> (i32, i32, i32) {
    %c0_i32 = arith.constant 0 : i32
    %c0_i32_0 = arith.constant 0 : i32
    %c0_i32_1 = arith.constant 0 : i32
    %c0_i32_2 = arith.constant 0 : i32
    return %c0_i32, %c0_i32_0, %c0_i32_1 : i32, i32, i32
  }
  func.func @transform_9(%arg0: i32, %arg1: i32) -> (i32, i32, i32) {
    %c0_i32 = arith.constant 0 : i32
    %c0_i32_0 = arith.constant 0 : i32
    %c0_i32_1 = arith.constant 0 : i32
    %c0_i32_2 = arith.constant 0 : i32
    return %c0_i32, %c0_i32_0, %c0_i32_1 : i32, i32, i32
  }
  func.func @transform_10(%arg0: i32, %arg1: i32) -> (i32, i32, i32) {
    %c0_i32 = arith.constant 0 : i32
    %c0_i32_0 = arith.constant 0 : i32
    %c0_i32_1 = arith.constant 0 : i32
    %c0_i32_2 = arith.constant 0 : i32
    return %c0_i32, %c0_i32_0, %c0_i32_1 : i32, i32, i32
  }
  func.func @transform_11(%arg0: i32, %arg1: i32) -> (i32, i32, i32) {
    %c0_i32 = arith.constant 0 : i32
    %c0_i32_0 = arith.constant 0 : i32
    %c0_i32_1 = arith.constant 0 : i32
    %c0_i32_2 = arith.constant 0 : i32
    return %c0_i32, %c0_i32_0, %c0_i32_1 : i32, i32, i32
  }
  func.func @transform_12(%arg0: i32, %arg1: i32) -> (i32, i32) {
    %c0_i32 = arith.constant 0 : i32
    %c0_i32_0 = arith.constant 0 : i32
    %c0_i32_1 = arith.constant 0 : i32
    return %c0_i32, %c0_i32_0 : i32, i32
  }
  func.func @transform_13(%arg0: i32, %arg1: i32) -> (i32, i32) {
    %c0_i32 = arith.constant 0 : i32
    %c0_i32_0 = arith.constant 0 : i32
    %c0_i32_1 = arith.constant 0 : i32
    return %c0_i32, %c0_i32_0 : i32, i32
  }
  func.func @transform_14(%arg0: i32, %arg1: i32) -> (i32, i32) {
    %c0_i32 = arith.constant 0 : i32
    %c0_i32_0 = arith.constant 0 : i32
    %c0_i32_1 = arith.constant 0 : i32
    return %c0_i32, %c0_i32_0 : i32, i32
  }
  func.func @transform_15(%arg0: i32, %arg1: i32) -> (i32, i32) {
    %c0_i32 = arith.constant 0 : i32
    %c0_i32_0 = arith.constant 0 : i32
    %c0_i32_1 = arith.constant 0 : i32
    return %c0_i32, %c0_i32_0 : i32, i32
  }
  func.func @transform_16(%arg0: i32, %arg1: i32) -> (i32, i32) {
    %c0_i32 = arith.constant 0 : i32
    %c0_i32_0 = arith.constant 0 : i32
    %c0_i32_1 = arith.constant 0 : i32
    return %c0_i32, %c0_i32_0 : i32, i32
  }
  func.func @transform_17(%arg0: i32, %arg1: i32) -> (i32, i32) {
    %c0_i32 = arith.constant 0 : i32
    %c0_i32_0 = arith.constant 0 : i32
    %c0_i32_1 = arith.constant 0 : i32
    return %c0_i32, %c0_i32_0 : i32, i32
  }
  func.func @transform_18(%arg0: i32, %arg1: i32) -> (i32, i32, i32) {
    %c0_i32 = arith.constant 0 : i32
    %c0_i32_0 = arith.constant 0 : i32
    return %arg0, %arg1, %c0_i32 : i32, i32, i32
  }
}

</mosaic_0001>

<bundles_post_ra>
// kernel: tpu_custom_call.1
= control target key start
LH: loop header
LB: loop body
LE: loop exit
PB: predicated region body
PF: predicated region fallthrough
CT: control target
= control target key end

     0   :  { %s4914_s0 = inlined_call_operand.hbm [shape: f32[2,8,32], index: 0, kind: input, shape index: {}]   ;;  %s4915_s1 = inlined_call_operand.hbm [shape: bf16[2,8,32], index: 1, kind: input, shape index: {}]   ;;  %s4916_s2 = inlined_call_operand.hbm [shape: bf16[2,8,8], index: 2, kind: input, shape index: {}]   ;;  %s4917_s3 = inlined_call_operand.hbm [shape: bf16[2,8,8], index: 3, kind: input, shape index: {}]   ;;  %s4918_s4 = inlined_call_operand.hbm [shape: f32[3,1,32], index: 4, kind: input, shape index: {}]   ;;  %s4919_s5 = inlined_call_operand.hbm [shape: f32[3,1,32], index: 5, kind: input, shape index: {}]   ;;  %s4920_s6 = inlined_call_operand.vmem [shape: bf16[2,32,32], index: 6, kind: input, shape index: {}]   ;;  %s4921_s7 = inlined_call_operand.vmem [shape: f32[2,1,32], index: 7, kind: input, shape index: {}]   ;;  %s4922_s8 = inlined_call_operand.vmem [shape: bf16[2,32,64], index: 8, kind: input, shape index: {}]   ;;  %s4923_s9 = inlined_call_operand.hbm [shape: f32[2,1,64], index: 9, kind: input, shape index: {}]   ;;  %s4924_s10 = inlined_call_operand.hbm [shape: bf16[2,32,32], index: 10, kind: input, shape index: {}]   ;;  %s4925_s11 = inlined_call_operand.vmem [shape: f32[2,1,32], index: 11, kind: input, shape index: {}]   ;;  %s4926_s12 = inlined_call_operand.hbm [shape: bf16[32,64], index: 12, kind: input, shape index: {}]   ;;  %s4927_s13 = inlined_call_operand.vmem [shape: f32[1,64], index: 13, kind: input, shape index: {}]   ;;  %s4928_s14 = inlined_call_operand.vmem [shape: bf16[64,32], index: 14, kind: input, shape index: {}]   ;;  %s4929_s15 = inlined_call_operand.vmem [shape: f32[1,32], index: 15, kind: input, shape index: {}]   ;;  %s4930_s16 = inlined_call_operand.vmem [shape: f32[1,32], index: 16, kind: input, shape index: {}]   ;;  %s4931_s17 = inlined_call_operand.vmem [shape: f32[1,32], index: 17, kind: input, shape index: {}]   ;;  %s4932_s18 = inlined_call_operand.hbm [shape: f32[2,8,32], index: 18, kind: output, shape index: {}]  }
   0x1   :  { %4965 = sst [smem:[#allocation36_spill]] %s4914_s0 }
   0x2   :  { %4966 = sst [smem:[#allocation37_spill]] %s4915_s1 }
   0x3   :  { %4967 = sst [smem:[#allocation38_spill]] %s4916_s2 }
   0x4   :  { %4968 = sst [smem:[#allocation39_spill]] %s4918_s4 }
   0x5   :  { %4969 = sst [smem:[#allocation40_spill]] %s4919_s5 }
   0x6   :  { %4970 = sst [smem:[#allocation41_spill]] %s4920_s6 }
   0x7   :  { %4971 = sst [smem:[#allocation42_spill]] %s4921_s7 }
   0x8   :  { %4972 = sst [smem:[#allocation43_spill]] %s4923_s9 }
   0x9   :  { %4973 = sst [smem:[#allocation44_spill]] %s4924_s10 }
   0xa   :  { %4974 = sst [smem:[#allocation45_spill]] %s4925_s11 }
   0xb   :  { %4975 = sst [smem:[#allocation46_spill]] %s4927_s13 }
   0xc   :  { %4976 = sst [smem:[#allocation47_spill]] %s4928_s14 }
   0xd   :  { %4977 = sst [smem:[#allocation48_spill]] %s4929_s15 }
   0xe   :  { %4978 = sst [smem:[#allocation49_spill]] %s4932_s18 }
   0xf   :  { %23 = vsyncpa [#allocation7], 0 }
  0x10   :  { %25 = vsyncpa [#allocation7 + $0x1], 0 }
  0x11   :  { %26 = vsyncpa [#allocation10], 0 }
  0x12   :  { %28 = vsyncpa [#allocation10 + $0x1], 0 }
  0x13   :  { %29 = vsyncpa [#allocation13], 0 }
  0x14   :  { %31 = vsyncpa [#allocation13 + $0x1], 0 }
  0x15   :  { %32 = vsyncpa [#allocation16], 0 }
  0x16   :  { %33 = vsyncpa [#allocation19], 0 }
  0x17   :  { %34 = vsyncpa [#allocation8], 0 }
  0x18   :  { %36 = vsyncpa [#allocation8 + $0x1], 0  ;;  %s4215_s27 = smov 0   ;;  %s4217_s28 = smov 0  }
  0x19   :  { %s4219_s16 = smov 0   ;;  %s4221_s17 = smov 0  }
  0x1a   :  { %s4223_s29 = smov 0   ;;  %s4225_s30 = smov 0  }
  0x1b LB: > { %4979 = sst [smem:[#allocation29_spill]] %s4078_s27  ;;  %s4246_s0 = sadd.s32 4294967295, %s4098_s30   ;;  %s4098_s30 = sphi %s4225_s30, %s42_s30   ;;  %s4094_s29 = sphi %s4223_s29, %s5041_s29   ;;  %s4090_s17 = sphi %s4221_s17, %s5040_s17   ;;  %s4086_s16 = sphi %s4219_s16, %s5036_s16   ;;  %s4082_s28 = sphi %s4217_s28, %s5039_s28   ;;  %s4078_s27 = sphi %s4215_s27, %s5038_s27  }
  0x1c   : > { %4980 = sst [smem:[#allocation30_spill]] %s4086_s16  ;;  %p3193_p0 = scmp.ge.s32.totalorder %s4098_s30, 1 }
  0x1d   : > { %4981 = sst [smem:[#allocation31_spill]] %s4090_s17  ;;  %p4940_p1 = scmp.eq.s32.totalorder %s4246_s0, 0 }
  0x1e   : > { %p489_p2 = scmp.lt.s32.totalorder %s4098_s30, 3  ;;  %s4100_s1 = smov [#allocation14]  }
  0x1f   : > { %s501_s20 = sshll.u32 %s4100_s1, 4  ;;  %s4101_s22 = smov [#allocation15]   ;;  %s4255_s20 = int_to_ptr.vmem [resolvable:$true] %s501_s20 }
  0x20   : > { %p4251_p3 = pnand %p3193_p0, %p489_p2  ;;  %s514_s2 = sshll.u32 %s4101_s22, 4  ;;  %s4266_s2 = int_to_ptr.vmem [resolvable:$true] %s514_s2 }
  0x21   : > { %s4102_s23 = smov [#allocation18]   ;;  %s4984_s4 = sld [smem:[#allocation39_spill]] }
  0x22   : > { %s4982_s19 = scalar_select %p4251_p3, 1, 0 }
  0x23   : > { %p3569_p4 = pneg %p4251_p3  ;;  %s4268_s24 = sshll.u32 %s4102_s23, 4  ;;  %s550_s24 = int_to_ptr.vmem [resolvable:$true] %s4268_s24 }
  0x25   : > { %p4262_p6 = pnand %p3569_p4, %p4940_p1 }
  0x27   : > { %s4983_s21 = scalar_select %p4262_p6, 1, 0 }
  0x28   : > { %s3736_s1 = scalar_lea.hbm %s4984_s4, 48  ;;  %p4278_p8 = pneg %p4262_p6 }
  0x29   : > { %p3737_p7 = scmp.ne.s32.totalorder %s4984_s4, %s3736_s1  ;;  %p3743_p11 = scmp.lt.u32.totalorder %s3736_s1, %s4984_s4 }
  0x2a   : > { %s4985_s13 = scalar_select %p4278_p8, 1, 0 }
  0x2b   : > { %p3739_p9 = pnand %p4278_p8, %p3737_p7 }
  0x2d   : > { %p3740_p10 = pneg %p3739_p9 }
  0x2f   : > { %p3745_p12 = pnand %p3743_p11, %p3740_p10 }
  0x31   : > { %3748 = shalt.err (!%p3745_p12)
}
  0x32   : > { %s3749_s15 = scalar_lea.vmem %s4255_s20, 48  ;;  %s3756_s18 = scalar_lea.vmem %s4255_s20, 64 }
  0x33   : > { %p3750_p13 = scmp.ne.s32.totalorder %s4255_s20, %s3749_s15  ;;  %p3757_p4 = scmp.lt.s32.totalorder %s4255_s20, %s4255_s20 }
  0x34   : > { %p3758_p7 = scmp.lt.s32.totalorder %s3756_s18, %s3749_s15 }
  0x35   : > { %p3752_p0 = pnand %p3750_p13, %p4278_p8 }
  0x36   : > { %p3759_p9 = por %p3758_p7, %p3757_p4 }
  0x37   : > { %p3753_p2 = pneg %p3752_p0 }
  0x39   : > { %p3760_p5 = pnand %p3759_p9, %p3753_p2 }
  0x3b   : > { %3763 = shalt.err (!%p3760_p5)
}
  0x3c   : > { %s4944_s25 = smov 16   ;;  %s4945_s26 = smov 1  }
  0x3d   : > { %3572 = dma.hbm_to_vmem [thread:$0]  (!%p4262_p6), %s4984_s4, 48, %s4255_s20, [#allocation13], %s4944_s25, %s4944_s25, %s4945_s26  }
  0x3e   : > { %s4986_s5 = sld [smem:[#allocation40_spill]] }
  0x44   : > { %s3764_s15 = scalar_lea.hbm %s4986_s5, 48 }
  0x45   : > { %p3765_p5 = scmp.ne.s32.totalorder %s4986_s5, %s3764_s15  ;;  %p3771_p12 = scmp.lt.u32.totalorder %s3764_s15, %s4986_s5 }
  0x47   : > { %p3767_p10 = pnand %p3765_p5, %p4278_p8 }
  0x49   : > { %p3768_p11 = pneg %p3767_p10 }
  0x4b   : > { %p3773_p13 = pnand %p3771_p12, %p3768_p11 }
  0x4d   : > { %3776 = shalt.err (!%p3773_p13)
}
  0x4e   : > { %s3777_s17 = scalar_lea.vmem %s4266_s2, 48  ;;  %s3784_s14 = scalar_lea.vmem %s4266_s2, 64 }
  0x4f   : > { %p3778_p0 = scmp.ne.s32.totalorder %s4266_s2, %s3777_s17  ;;  %p3785_p7 = scmp.lt.s32.totalorder %s4266_s2, %s4266_s2 }
  0x50   : > { %p3786_p9 = scmp.lt.s32.totalorder %s3784_s14, %s3777_s17 }
  0x51   : > { %p3780_p2 = pnand %p3778_p0, %p4278_p8 }
  0x52   : > { %p3787_p5 = por %p3786_p9, %p3785_p7 }
  0x53   : > { %p3781_p4 = pneg %p3780_p2 }
  0x55   : > { %p3788_p10 = pnand %p3787_p5, %p3781_p4 }
  0x57   : > { %3791 = shalt.err (!%p3788_p10)
}
  0x58   : > { %3575 = dma.hbm_to_vmem [thread:$0]  (!%p4262_p6), %s4986_s5, 48, %s4266_s2, [#allocation16], %s4944_s25, %s4944_s25, %s4945_s26  }
  0x59   : > { %s4987_s10 = sld [smem:[#allocation44_spill]] }
  0x5f   : > { %s3792_s22 = scalar_lea.hbm %s4987_s10, 512 }
  0x60   : > { %p3793_p11 = scmp.ne.s32.totalorder %s4987_s10, %s3792_s22  ;;  %p3799_p0 = scmp.lt.u32.totalorder %s3792_s22, %s4987_s10 }
  0x62   : > { %p3795_p12 = pnand %p3793_p11, %p4278_p8 }
  0x64   : > { %p3796_p13 = pneg %p3795_p12 }
  0x66   : > { %p3801_p2 = pnand %p3799_p0, %p3796_p13 }
  0x68   : > { %3804 = shalt.err (!%p3801_p2)
}
  0x69   : > { %s3805_s14 = scalar_lea.vmem %s550_s24, 512  ;;  %p3813_p5 = scmp.lt.s32.totalorder %s550_s24, %s550_s24 }
  0x6a   : > { %p3806_p4 = scmp.ne.s32.totalorder %s550_s24, %s3805_s14  ;;  %p3814_p10 = scmp.lt.s32.totalorder %s3805_s14, %s3805_s14 }
  0x6c   : > { %p3808_p7 = pnand %p3806_p4, %p4278_p8  ;;  %p3815_p1 = por %p3814_p10, %p3813_p5 }
  0x6e   : > { %p3809_p9 = pneg %p3808_p7 }
  0x70   : > { %p3816_p3 = pnand %p3815_p1, %p3809_p9 }
  0x72   : > { %3819 = shalt.err (!%p3816_p3)
}
  0x73   : > { %s4942_s2 = smov 64   ;;  %s4943_s7 = smov 4  }
  0x74   : > { %3581 = dma.hbm_to_vmem [thread:$0]  (!%p4262_p6), %s4987_s10, 512, %s550_s24, [#allocation19], %s4942_s2, %s4942_s2, %s4943_s7  }
  0x75   : > { %s3192_s1 = sadd.s32 4294967294, %s4098_s30   ;;  %s54_s22 = sadd.s32 1, %s4094_s29 }
  0x76   : > { %s61_s23 = sadd.s32 1, %s4086_s16  ;;  %p56_p1 = scmp.ge.s32.totalorder %s54_s22, 2 }
  0x77   : > { %p68_p3 = scmp.ne.s32.totalorder %s4086_s16, %s4082_s28  ;;  %p69_p11 = scmp.eq.s32.totalorder %s4098_s30, 0 }
  0x78   : > { %p74_p12 = scmp.ne.s32.totalorder %s4082_s28, %s4078_s27  ;;  %s5043_s22 = smov (%p56_p1, %s54_s22), 0 }
  0x79   : > { %4988 = sst [smem:[#allocation32_spill]] %s5043_s22  ;;  %p70_p13 = por %p69_p11, %p68_p3 }
  0x7a   : > { %p4989_p0 = scmp.eq.s32.totalorder %s4246_s0, 0  ;;  %s58_s24 = ssub.s32 %s4094_s29, %s5043_s22 }
  0x7b   : > { %p476_p4 = scmp.eq.s32.totalorder %s4246_s0, 1  ;;  %p59_p7 = scmp.eq.s32.totalorder %s58_s24, 0 }
  0x7c   : > { %p4364_p2 = por %p4989_p0, %p74_p12  ;;  %p482_p9 = scmp.eq.s32.totalorder %s3192_s1, 1 }
  0x7d   : > { %p4371_p5 = por %p476_p4, %p68_p3  ;;  %p3607_p10 = scmp.lt.s32.totalorder %s4098_s30, 2 }
  0x7e   : > { %s4990_s15 = scalar_select %p4364_p2, 1, 0 }
  0x7f   : > { %s4991_s18 = scalar_select %p4371_p5, 1, 0 }
  0x80   : > { %s4377_s17 = scalar_select %p59_p7, %s4086_s16, %s61_s23  }
  0x81   : > { %4992 = sst [smem:[#allocation33_spill]] %s4991_s18  ;;  %p4379_p1 = por %p482_p9, %p74_p12 }
  0x82   : > { %4993 = sst [smem:[#allocation34_spill]] %s4377_s17  ;;  %s4384_s11 = sand.u32 1, %s4086_s16  }
  0x83   : > { %s4994_s14 = scalar_select %p4379_p1, 1, 0 }
  0x84   : > { %p4386_p11 = pnand %p3607_p10, %p70_p13  ;;  %s4950_s1 = sand.u32 1, %s4098_s30  }
  0x85   : > { %4995 = sst [smem:[#allocation35_spill]] %s4994_s14  ;;  %s4392_s24 = sshll.u32 %s4384_s11, 2 }
  0x86   : > { %s4996_s20 = scalar_select %p4386_p11, 1, 0 }
  0x87   : > { %s4395_s2 = sshll.u32 %s4094_s29, 6  ;;  %s616_s23 = scalar_lea.vmem [#allocation9], %s4392_s24 }
  0x88   : > { %s623_s7 = sshll.u32 %s616_s23, 4  ;;  %s4997_s4 = sld [smem:[#allocation37_spill]]  ;;  %s4404_s7 = int_to_ptr.vmem [resolvable:$true] %s623_s7 }
  0x89   : > { %s4408_s10 = scalar_lea.sflag [#allocation10], %s4950_s1  ;;  %p4414_p12 = pneg %p4386_p11 }
  0x8b   : > { %s4998_s17 = scalar_select %p4414_p12, 1, 0 }
  0x8e   : > { %s4402_s5 = scalar_lea.hbm %s4997_s4, %s4395_s2  ;;  %s3825_s23 = scalar_lea.hbm %s4997_s4, 128 }
  0x8f   : > { %s3820_s22 = scalar_lea.hbm %s4402_s5, 64  ;;  %p3826_p4 = scmp.lt.u32.totalorder %s4402_s5, %s4997_s4 }
  0x90   : > { %p3821_p3 = scmp.ne.s32.totalorder %s4402_s5, %s3820_s22  ;;  %p3827_p7 = scmp.lt.u32.totalorder %s3825_s23, %s3820_s22 }
  0x91   : > { %p3829_p10 = scmp.lt.u32.totalorder %s3820_s22, %s4402_s5 }
  0x92   : > { %p3823_p13 = pnand %p4414_p12, %p3821_p3  ;;  %p3828_p9 = por %p3827_p7, %p3826_p4 }
  0x94   : > { %p3824_p0 = pneg %p3823_p13  ;;  %p3830_p1 = por %p3829_p10, %p3828_p9 }
  0x96   : > { %p3831_p5 = pnand %p3830_p1, %p3824_p0 }
  0x98   : > { %3834 = shalt.err (!%p3831_p5)
}
  0x99   : > { %s3835_s1 = scalar_lea.vmem %s4404_s7, 64  ;;  %s4107_s25 = smov [#allocation9]  }
  0x9a   : > { %p3836_p3 = scmp.ne.s32.totalorder %s4404_s7, %s3835_s1  ;;  %s3840_s26 = sshll.u32 %s4107_s25, 4  ;;  %s3841_s26 = int_to_ptr.vmem [resolvable:$false] %s3840_s26 }
  0x9b   : > { %s3842_s16 = scalar_lea.vmem %s3841_s26, 128  ;;  %p3843_p6 = scmp.lt.s32.totalorder %s4404_s7, %s3841_s26 }
  0x9c   : > { %p3838_p13 = pnand %p3836_p3, %p4414_p12  ;;  %p3844_p8 = scmp.lt.s32.totalorder %s3842_s16, %s3835_s1 }
  0x9e   : > { %p3839_p2 = pneg %p3838_p13  ;;  %p3845_p4 = por %p3844_p8, %p3843_p6 }
  0xa0   : > { %p3846_p7 = pnand %p3845_p4, %p3839_p2 }
  0xa2   : > { %3849 = shalt.err (!%p3846_p7)
}
  0xa3   : > { %3591 = dma.hbm_to_vmem [thread:$0]  (!%p4386_p11), %s4402_s5, 64, %s4404_s7, %s4408_s10  }
  0xa4   : > { %s4108_s22 = smov [#allocation17]   ;;  %s4109_s23 = smov [#allocation20]  }
  0xa5   : > { %s536_s14 = sshll.u32 %s4108_s22, 4  ;;  %s565_s4 = sshll.u32 %s4109_s23, 4  ;;  %s537_s14 = int_to_ptr.vmem [resolvable:$true] %s536_s14  ;;  %s566_s4 = int_to_ptr.vmem [resolvable:$true] %s565_s4 }
  0xa6   : > { %s4999_s9 = sld [smem:[#allocation43_spill]]  ;;  %p5000_p8 = scmp.ne.s32.totalorder %s4985_s13, 0 }
  0xac   : > { %s3850_s26 = scalar_lea.hbm %s4999_s9, 32 }
  0xad   : > { %p3851_p6 = scmp.ne.s32.totalorder %s4999_s9, %s3850_s26  ;;  %p3857_p1 = scmp.lt.u32.totalorder %s3850_s26, %s4999_s9 }
  0xaf   : > { %p3853_p2 = pnand %p3851_p6, %p5000_p8 }
  0xb1   : > { %p3854_p5 = pneg %p3853_p2 }
  0xb3   : > { %p3859_p0 = pnand %p3857_p1, %p3854_p5 }
  0xb5   : > { %3862 = shalt.err (!%p3859_p0)
}
  0xb6   : > { %s3863_s5 = scalar_lea.vmem %s537_s14, 32  ;;  %p3871_p13 = scmp.lt.s32.totalorder %s537_s14, %s537_s14 }
  0xb7   : > { %p3864_p9 = scmp.ne.s32.totalorder %s537_s14, %s3863_s5  ;;  %p3872_p4 = scmp.lt.s32.totalorder %s3863_s5, %s3863_s5 }
  0xb9   : > { %p3866_p10 = pnand %p3864_p9, %p5000_p8  ;;  %p3873_p7 = por %p3872_p4, %p3871_p13 }
  0xbb   : > { %p3867_p3 = pneg %p3866_p10 }
  0xbd   : > { %p3874_p11 = pnand %p3873_p7, %p3867_p3 }
  0xbf   : > { %3877 = shalt.err (!%p3874_p11)
}
  0xc0   : > { %p5001_p6 = scmp.ne.s32.totalorder %s4983_s21, 0  ;;  %s5002_s27 = smov 1  }
  0xc1   : > { %s5003_s7 = smov 16   ;;  %s3878_s25 = scalar_lea.hbm %s4926_s12, 256 }
  0xc2   : > { %3578 = dma.hbm_to_vmem [thread:$0]  (!%p5001_p6), %s4999_s9, 32, %s537_s14, [#allocation16], %s5003_s7, %s5003_s7, %s5002_s27  }
  0xc3   : > { %p3879_p2 = scmp.ne.s32.totalorder %s4926_s12, %s3878_s25  ;;  %p3885_p1 = scmp.lt.u32.totalorder %s3878_s25, %s4926_s12 }
  0xc5   : > { %p3881_p11 = pnand %p3879_p2, %p5000_p8 }
  0xc7   : > { %p3882_p5 = pneg %p3881_p11 }
  0xc9   : > { %p3887_p0 = pnand %p3885_p1, %p3882_p5 }
  0xcb   : > { %3890 = shalt.err (!%p3887_p0)
}
  0xcc   : > { %s3891_s6 = scalar_lea.vmem %s566_s4, 256  ;;  %p3899_p13 = scmp.lt.s32.totalorder %s566_s4, %s566_s4 }
  0xcd   : > { %p3892_p9 = scmp.ne.s32.totalorder %s566_s4, %s3891_s6  ;;  %p3900_p4 = scmp.lt.s32.totalorder %s3891_s6, %s3891_s6 }
  0xcf   : > { %p3894_p10 = pnand %p3892_p9, %p5000_p8  ;;  %p3901_p7 = por %p3900_p4, %p3899_p13 }
  0xd1   : > { %p3895_p3 = pneg %p3894_p10 }
  0xd3   : > { %p3902_p12 = pnand %p3901_p7, %p3895_p3 }
  0xd5   : > { %3905 = shalt.err (!%p3902_p12)
}
  0xd6   : > { %s5004_s14 = smov 4   ;;  %s5005_s27 = smov 64  }
  0xd7   : > { %3584 = dma.hbm_to_vmem [thread:$0]  (!%p5001_p6), %s4926_s12, 256, %s566_s4, [#allocation19], %s5005_s27, %s5005_s27, %s5004_s14  }
  0xd8   : > { %s3200_s13 = sshll.u32 %s4384_s11, 3  ;;  %s3201_s22 = sshll.u32 %s4094_s29, 7 }
  0xd9   : > { %s5006_s26 = sld [smem:[#allocation36_spill]]  ;;  %s598_s21 = scalar_lea.vmem [#allocation6], %s3200_s13 }
  0xda   : > { %s605_s16 = sshll.u32 %s598_s21, 4  ;;  %s5007_s7 = sld [smem:[#allocation38_spill]]  ;;  %s4487_s16 = int_to_ptr.vmem [resolvable:$true] %s605_s16 }
  0xdb   : > { %s595_s4 = scalar_lea.sflag [#allocation7], %s4384_s11  ;;  %p5008_p8 = scmp.ne.s32.totalorder %s4998_s17, 0 }
  0xdf   : > { %s4485_s1 = scalar_lea.hbm %s5006_s26, %s3201_s22  ;;  %s3911_s23 = scalar_lea.hbm %s5006_s26, 256 }
  0xe0   : > { %s4493_s18 = scalar_lea.hbm %s5007_s7, %s4395_s2  ;;  %s3906_s14 = scalar_lea.hbm %s4485_s1, 128 }
  0xe1   : > { %p3907_p12 = scmp.ne.s32.totalorder %s4485_s1, %s3906_s14  ;;  %p3912_p11 = scmp.lt.u32.totalorder %s4485_s1, %s5006_s26 }
  0xe2   : > { %p3913_p5 = scmp.lt.u32.totalorder %s3911_s23, %s3906_s14  ;;  %p3915_p0 = scmp.lt.u32.totalorder %s3906_s14, %s4485_s1 }
  0xe3   : > { %p3909_p6 = pnand %p3907_p12, %p5008_p8 }
  0xe4   : > { %p3914_p1 = por %p3913_p5, %p3912_p11 }
  0xe5   : > { %p3910_p2 = pneg %p3909_p6 }
  0xe6   : > { %p3916_p9 = por %p3915_p0, %p3914_p1 }
  0xe8   : > { %p3917_p10 = pnand %p3916_p9, %p3910_p2 }
  0xea   : > { %3920 = shalt.err (!%p3917_p10)
}
  0xeb   : > { %s3921_s11 = scalar_lea.vmem %s4487_s16, 128  ;;  %s4110_s21 = smov [#allocation6]  }
  0xec   : > { %p3922_p3 = scmp.ne.s32.totalorder %s4487_s16, %s3921_s11  ;;  %s3926_s5 = sshll.u32 %s4110_s21, 4  ;;  %s3927_s5 = int_to_ptr.vmem [resolvable:$false] %s3926_s5 }
  0xed   : > { %s3928_s6 = scalar_lea.vmem %s3927_s5, 256  ;;  %p3929_p7 = scmp.lt.s32.totalorder %s4487_s16, %s3927_s5 }
  0xee   : > { %p3924_p13 = pnand %p3922_p3, %p5008_p8  ;;  %p3930_p12 = scmp.lt.s32.totalorder %s3928_s6, %s3921_s11 }
  0xf0   : > { %p3925_p4 = pneg %p3924_p13  ;;  %p3931_p6 = por %p3930_p12, %p3929_p7 }
  0xf2   : > { %p3932_p11 = pnand %p3931_p6, %p3925_p4 }
  0xf4   : > { %3935 = shalt.err (!%p3932_p11)
}
  0xf5   : > { %p5009_p2 = scmp.ne.s32.totalorder %s4996_s20, 0  ;;  %s634_s14 = scalar_lea.vmem [#allocation11], %s4392_s24 }
  0xf6   : > { %s642_s27 = sshll.u32 %s634_s14, 4  ;;  %s4522_s25 = scalar_lea.hbm %s4917_s3, %s4395_s2  ;;  %s643_s27 = int_to_ptr.vmem [resolvable:$true] %s642_s27 }
  0xf7   : > { %3588 = dma.hbm_to_vmem [thread:$0]  (!%p5009_p2), %s4485_s1, 128, %s4487_s16, %s595_s4  }
  0xf8   : > { %s3936_s13 = scalar_lea.hbm %s4493_s18, 64  ;;  %s3941_s5 = scalar_lea.hbm %s5007_s7, 128 }
  0xf9   : > { %p3937_p5 = scmp.ne.s32.totalorder %s4493_s18, %s3936_s13  ;;  %p3942_p9 = scmp.lt.u32.totalorder %s4493_s18, %s5007_s7 }
  0xfa   : > { %p3943_p10 = scmp.lt.u32.totalorder %s3941_s5, %s3936_s13  ;;  %p3945_p13 = scmp.lt.u32.totalorder %s3936_s13, %s4493_s18 }
  0xfb   : > { %p3939_p1 = pnand %p3937_p5, %p5008_p8 }
  0xfc   : > { %p3944_p3 = por %p3943_p10, %p3942_p9 }
  0xfd   : > { %p3940_p0 = pneg %p3939_p1 }
  0xfe   : > { %p3946_p4 = por %p3945_p13, %p3944_p3 }
 0x100   : > { %p3947_p7 = pnand %p3946_p4, %p3940_p0 }
 0x102   : > { %3950 = shalt.err (!%p3947_p7)
}
 0x103   : > { %s3951_s2 = scalar_lea.vmem %s643_s27, 64  ;;  %s4111_s1 = smov [#allocation11]  }
 0x104   : > { %p3952_p12 = scmp.ne.s32.totalorder %s643_s27, %s3951_s2  ;;  %s3956_s16 = sshll.u32 %s4111_s1, 4  ;;  %s3957_s16 = int_to_ptr.vmem [resolvable:$false] %s3956_s16 }
 0x105   : > { %s3958_s4 = scalar_lea.vmem %s3957_s16, 128  ;;  %p3959_p5 = scmp.lt.s32.totalorder %s643_s27, %s3957_s16 }
 0x106   : > { %p3954_p6 = pnand %p3952_p12, %p5008_p8  ;;  %p3960_p1 = scmp.lt.s32.totalorder %s3958_s4, %s3951_s2 }
 0x108   : > { %p3955_p11 = pneg %p3954_p6  ;;  %p3961_p2 = por %p3960_p1, %p3959_p5 }
 0x10a   : > { %p3962_p9 = pnand %p3961_p2, %p3955_p11 }
 0x10c   : > { %3965 = shalt.err (!%p3962_p9)
}
 0x10d   : > { %p5010_p10 = scmp.ne.s32.totalorder %s4996_s20, 0  ;;  %s653_s9 = scalar_lea.vmem [#allocation12], %s4392_s24 }
 0x10e   : > { %s661_s14 = sshll.u32 %s653_s9, 4  ;;  %s5011_s22 = sand.u32 1, %s4098_s30   ;;  %s662_s14 = int_to_ptr.vmem [resolvable:$true] %s661_s14 }
 0x10f   : > { %3594 = dma.hbm_to_vmem [thread:$0]  (!%p5010_p10), %s4493_s18, 64, %s643_s27, %s4408_s10  }
 0x110   : > { %s650_s23 = scalar_lea.sflag [#allocation13], %s5011_s22  ;;  %s3966_s13 = scalar_lea.hbm %s4522_s25, 64 }
 0x111   : > { %p3967_p2 = scmp.ne.s32.totalorder %s4522_s25, %s3966_s13  ;;  %s3971_s5 = scalar_lea.hbm %s4917_s3, 128 }
 0x112   : > { %p3972_p13 = scmp.lt.u32.totalorder %s4522_s25, %s4917_s3  ;;  %p3973_p4 = scmp.lt.u32.totalorder %s3971_s5, %s3966_s13 }
 0x113   : > { %p3969_p0 = pnand %p3967_p2, %p5008_p8  ;;  %p3975_p12 = scmp.lt.u32.totalorder %s3966_s13, %s4522_s25 }
 0x114   : > { %p3974_p7 = por %p3973_p4, %p3972_p13 }
 0x115   : > { %p3970_p3 = pneg %p3969_p0 }
 0x116   : > { %p3976_p6 = por %p3975_p12, %p3974_p7 }
 0x118   : > { %p3977_p11 = pnand %p3976_p6, %p3970_p3 }
 0x11a   : > { %3980 = shalt.err (!%p3977_p11)
}
 0x11b   : > { %s3981_s10 = scalar_lea.vmem %s662_s14, 64  ;;  %s4112_s24 = smov [#allocation12]  }
 0x11c   : > { %p3982_p5 = scmp.ne.s32.totalorder %s662_s14, %s3981_s10  ;;  %s3986_s18 = sshll.u32 %s4112_s24, 4  ;;  %s3987_s18 = int_to_ptr.vmem [resolvable:$false] %s3986_s18 }
 0x11d   : > { %s3988_s27 = scalar_lea.vmem %s3987_s18, 128  ;;  %p3989_p2 = scmp.lt.s32.totalorder %s662_s14, %s3987_s18 }
 0x11e   : > { %p3984_p1 = pnand %p3982_p5, %p5008_p8  ;;  %p3990_p0 = scmp.lt.s32.totalorder %s3988_s27, %s3981_s10 }
 0x120   : > { %p3985_p9 = pneg %p3984_p1  ;;  %p3991_p10 = por %p3990_p0, %p3989_p2 }
 0x122   : > { %p3992_p4 = pnand %p3991_p10, %p3985_p9 }
 0x124   : > { %3995 = shalt.err (!%p3992_p4)
}
 0x125   : > { %p5012_p13 = scmp.ne.s32.totalorder %s4996_s20, 0  ;;  %p5013_p3 = scmp.ne.s32.totalorder %s4982_s19, 0 }
 0x126   : > { %s4565_s17 = sand.u32 (!%p5013_p3), 1, %s4082_s28   ;;  %p5014_p8 = scmp.ne.s32.totalorder (!%p5013_p3), %s4990_s15, 0 }
 0x127   : > { %3597 = dma.hbm_to_vmem [thread:$0]  (!%p5012_p13), %s4522_s25, 64, %s662_s14, %s650_s23  }
 0x128   : > { %670 = sbr.rel (%p5013_p3) target bundleno = 4987 (0x137b), region = 92  ;;  %s3209_s1 = sshll.u32 (!%p5013_p3), %s4565_s17, 3 }
 0x129   : > { %s673_s16 = scalar_lea.sflag (!%p5013_p3), [#allocation7], %s4565_s17  ;;  %s676_s4 = scalar_lea.vmem (!%p5013_p3), [#allocation6], %s3209_s1 }
 0x12f   : > { %4049 = dma.done.wait (%p5014_p8), %s673_s16, 128  }
 0x130   : > { %4051 = vsyncadd (%p5014_p8), %s673_s16, 4294967168  ;;  %s681_s19 = sand.u32 1, %s4246_s0   ;;  %s4577_s20 = sshll.u32 %s4565_s17, 2 }
 0x131   : > { %s682_s25 = scalar_lea.sflag [#allocation10], %s681_s19  ;;  %s685_s9 = scalar_lea.vmem [#allocation9], %s4577_s20 }
 0x132   : > { %4053 = dma.done.wait (%p5014_p8), %s682_s25, 128  }
 0x133   : > { %4055 = vsyncadd (%p5014_p8), %s682_s25, 4294967168  ;;  %s694_s14 = scalar_lea.vmem [#allocation11], %s4577_s20  ;;  %s700_s22 = scalar_lea.sflag [#allocation13], %s681_s19 }
 0x134   : > { %s703_s23 = scalar_lea.vmem [#allocation12], %s4577_s20 }
 0x135   : > { %4057 = dma.done.wait (%p5014_p8), %s700_s22, 64  }
 0x136   : > { %4059 = vsyncadd (%p5014_p8), %s700_s22, 4294967232  ;;  %p5015_p10 = scmp.eq.s32.totalorder %s4246_s0, 0 }
 0x138   : > { %4061 = dma.done.wait (%p5015_p10), [#allocation13], 48   ;;  %p5016_p7 = pmov %p5015_p10 }
 0x13a   : > { %4063 = vsyncadd (%p5016_p7), [#allocation13], 4294967248  ;;  %p5017_p12 = pmov %p5016_p7 }
 0x13b   : > { %p5018_p6 = pmov %p5016_p7 }
 0x13c   : > { %4065 = dma.done.wait (%p5017_p12), [#allocation16], 80  }
 0x13d   : > { %4067 = vsyncadd (%p5018_p6), [#allocation16], 4294967216  ;;  %p5019_p11 = pmov %p5018_p6 }
 0x13e   : > { %p5020_p5 = pmov %p5018_p6 }
 0x13f   : > { %4069 = dma.done.wait (%p5019_p11), [#allocation19], 768  }
 0x140   : > { %4071 = vsyncadd (%p5020_p5), [#allocation19], 4294966528  ;;  %vm799_vm0 = vcmask 261120   ;;  %v4602_v0 = vld [vmem:[%s676_s4] sm:$0xff]  ;;  %v4113_v13 = vmov 0.0   ;;  %vm4114_vm1 = vmmov 0  }
 0x141   : > { %v800_v1 = vsel %vm799_vm0, %v4602_v0, 0.0  ;;  %v3678_v12 = vld [vmem:[%s4922_s8] sm:$0xff]   ;;  %3375 = vmatprep.subr.bf16.mxu0 %v4113_v13  ;;  %3383 = vmatprep.subr.bf16.mxu1 %v4113_v13  ;;  %v3679_v14 = vld [vmem:[%s4922_s8 + $0x8] sm:$0xff]   ;;  %s5021_s6 = sld [smem:[#allocation41_spill]]  ;;  %v3682_v35 = vld [vmem:[%s4922_s8 + $0x10] sm:$0xff]   ;;  %s5022_s4 = sld [smem:[#allocation42_spill]] }
 0x142   : > { %801 = vadd.xlane.f32.xlu0 %v800_v1  ;;  %3376 = vmatpush3.bf16.msra.mxu0 %v3678_v12  ;;  %v3219_v22 = vld [vmem:[#allocation14] ss:$0 sm:$0xff]  ;;  %v3220_v24 = vld [vmem:[#allocation15] ss:$0 sm:$0xff]  ;;  %v3221_v36 = vld [vmem:[#allocation17] ss:$0 sm:$0xff] }
 0x143   : > { %3377 = vmatprep.subr.bf16.mxu0 %v4113_v13  ;;  %3379 = vmatprep.mubr.msk.bf16.mxu0 %vm4114_vm1, %v4113_v13  ;;  %v3683_v51 = vld [vmem:[%s4922_s8 + $0x18] sm:$0xff]   ;;  %v1097_v52 = vld [vmem:[%s685_s9] sm:$0xf]  ;;  %vm990_vm2 = vcmask 60416   ;;  %vm1580_vm3 = vcmask 64512   ;;  %s4115_s9 = smov 96  }
 0x144   : > { %3387 = vmatprep.mubr.msk.bf16.mxu1 %vm4114_vm1, %v4113_v13  ;;  %3384 = vmatpush3.bf16.msra.mxu1 %v3682_v35  ;;  %vm1816_vm4 = vcmask 1043456   ;;  %s4117_s22 = smov 16   ;;  %s4118_s0 = smov 24   ;;  %vm2014_vm5 = vcmask 130048   ;;  %vm2017_vm6 = vcmask 195584   ;;  %vm2926_vm7 = vcmask 523264  }
 0x145   : > { %3385 = vmatprep.subr.bf16.mxu1 %v4113_v13  ;;  %s5023_s11 = sld [smem:[#allocation45_spill]]  ;;  %s5024_s19 = sld [smem:[#allocation47_spill]] }
 0x146   : > { %1382 = vadd.xlane.f32.xlu0 %v800_v1  ;;  %3378 = vmatpush3.bf16.msra.mxu0 %v3679_v14  ;;  %s5026_s2 = sld [smem:[#allocation46_spill]]  ;;  %s5027_s18 = sld [smem:[#allocation48_spill]] }
 0x147   : > { %3391 = vmatprep.subr.bf16.mxu0 %v4113_v13  ;;  %v3680_v29 = vld [vmem:[%s5021_s6] sm:$0xff]   ;;  %v3681_v32 = vld [vmem:[%s5021_s6 + $0x8] sm:$0xff]   ;;  %s5028_s20 = sld [smem:[#allocation33_spill]]  ;;  %s790_s27 = scalar_lea.vmem [#allocation21], %s3209_s1 }
 0x148   : > { %v3253_v43 = vld [vmem:[%s5022_s4] ss:$0 sm:$0xff]  ;;  %3386 = vmatpush3.bf16.msra.mxu1 %v3683_v51  ;;  %s2995_s16 = sshll.u32 %s790_s27, 4  ;;  %s4119_s15 = smov [#allocation21]   ;;  %s4866_s16 = int_to_ptr.vmem [resolvable:$true] %s2995_s16 }
 0x149   : > { %3399 = vmatprep.subr.bf16.mxu1 %v4113_v13  ;;  %s3996_s1 = scalar_lea.vmem %s4866_s16, 128  ;;  %s4000_s13 = sshll.u32 %s4119_s15, 4  ;;  %s4001_s13 = int_to_ptr.vmem [resolvable:$false] %s4000_s13 }
 0x14a   : > { %p3997_p1 = scmp.ne.s32.totalorder %s4866_s16, %s3996_s1  ;;  %s4002_s21 = scalar_lea.vmem %s4001_s13, 256 }
 0x14b   : > { %3388 = vmatmul.mubr.msk.bf16.vlgmr.msra.gmra.mrb[0].mxu1 %vm799_vm0, %v1097_v52  ;;  %p4003_p4 = scmp.lt.s32.totalorder %s4866_s16, %s4001_s13  ;;  %p4004_p13 = scmp.lt.s32.totalorder %s4002_s21, %s3996_s1 }
 0x14c   : > { %3401 = vmatprep.mubr.msk.bf16.mxu1 %vm4114_vm1, %v4113_v13 }
 0x14d   : > { %p5030_p9 = scmp.ne.s32.totalorder %s5028_s20, 0  ;;  %p4005_p3 = por %p4004_p13, %p4003_p4 }
 0x14f   : > { %p3998_p2 = pnand %p3997_p1, %p5030_p9 }
 0x151   : > { %p3999_p0 = pneg %p3998_p2 }
 0x153   : > { %p4006_p8 = pnand %p4005_p3, %p3999_p0 }
 0x1cf   : > { %v802_v2 = vpop.xlane.xlu0 %801 }
 0x1d0   : > { %v804_v3 = vmul.f32 0.03125, %v802_v2 }
 0x1d2   : > { %v805_v4 = vsub.f32 %v4602_v0, %v804_v3 }
 0x1d3   : > { %v1383_v5 = vpop.xlane.xlu0 %1382 }
 0x1d4   : > { %v1385_v6 = vmul.f32 0.03125, %v1383_v5  ;;  %v806_v7 = vmul.f32 %v805_v4, %v805_v4 }
 0x1d6   : > { %v1386_v8 = vsub.f32 %v4602_v0, %v1385_v6  ;;  %v807_v9 = vsel %vm799_vm0, %v806_v7, 0.0 }
 0x1d7   : > { %808 = vadd.xlane.f32.xlu1 %v807_v9 }
 0x1d8   : > { %v1387_v10 = vmul.f32 %v1386_v8, %v1386_v8 }
 0x1da   : > { %v1388_v11 = vsel %vm799_vm0, %v1387_v10, 0.0 }
 0x1db   : > { %1389 = vadd.xlane.f32.xlu1 %v1388_v11 }
 0x264   : > { %v809_v15 = vpop.xlane.xlu1 %808 }
 0x265   : > { %v810_v16 = vmul.f32 0.03125, %v809_v15 }
 0x267   : > { %v811_v17 = vadd.f32 1e-05, %v810_v16 }
 0x268   : > { %v1390_v18 = vpop.xlane.xlu1 %1389 }
 0x269   : > { %3696 = vrsqrt.f32 %v811_v17  ;;  %v1391_v19 = vmul.f32 0.03125, %v1390_v18 }
 0x26b   : > { %v1392_v20 = vadd.f32 1e-05, %v1391_v19  ;;  %v4681_v19 = vpop.f32.mrb[0].mxu1 }
 0x26d   : > { %3698 = vrsqrt.f32 %v1392_v20  ;;  %v3389_v20 = vpop.f32.mrb[1].mxu1 }
 0x273   : > { %v3697_v21 = vpop.eup %3696 }
 0x274   : > { %v813_v23 = vmul.f32 %v3697_v21, %v805_v4  ;;  %v1163_v21 = vpop.f32.mrb[2].mxu1 }
 0x276   : > { %v820_v25 = vmul.f32 %v3219_v22, %v813_v23  ;;  %v1370_v23 = vld [vmem:[%s694_s14] sm:$0xf]  ;;  %s4116_s14 = smov 8  }
 0x277   : > { %v3699_v26 = vpop.eup %3698 }
 0x278   : > { %v1394_v27 = vmul.f32 %v3699_v26, %v1386_v8  ;;  %v827_v28 = vadd.f32 %v3220_v24, %v820_v25 }
 0x27a   : > { %v828_v30 = vpack.c.bf16 %v827_v28, %v827_v28  ;;  %v1401_v31 = vmul.f32 %v3219_v22, %v1394_v27  ;;  %v3390_v22 = vpop.f32.mrb[3].mxu1 }
 0x27c   : > { %3380 = vmatmul.mubr.msk.bf16.vlgmr.msra.gmra.mrb[0].mxu0 %vm799_vm0, %v828_v30  ;;  %v1408_v33 = vadd.f32 %v3220_v24, %v1401_v31  ;;  %v1371_v24 = vunpack.c.l.bf16 %v1370_v23 }
 0x27d   : > { %3392 = vmatpush3.bf16.msra.mxu0 %v3680_v29  ;;  %3395 = vmatprep.mubr.msk.bf16.mxu0 %vm4114_vm1, %v4113_v13 }
 0x27e   : > { %3393 = vmatprep.subr.bf16.mxu0 %v4113_v13  ;;  %v1409_v34 = vpack.c.bf16 %v1408_v33, %v1408_v33  ;;  %v3249_v25 = vadd.f32 -1.0, %v1371_v24 }
 0x280   : > { %v1373_v26 = vmul.f32 1e+09, %v3249_v25 }
 0x281   : > { %3394 = vmatpush3.bf16.msra.mxu0 %v3681_v32 }
 0x282   : > { %3405 = vmatprep.subr.bf16.mxu0 %v4113_v13 }
 0x284   : > { %3396 = vmatmul.mubr.msk.bf16.vlgmr.msra.gmra.mrb[4].mxu0 %vm799_vm0, %v1409_v34 }
 0x285   : > { %3407 = vmatprep.mubr.msk.bf16.mxu0 %vm4114_vm1, %v4113_v13 }
 0x34f   : > { %v889_v37 = vpop.f32.mrb[0].mxu0 }
 0x350   : > { %v890_v38 = vadd.f32 %v3221_v36, %v889_v37  ;;  %v3381_v39 = vpop.f32.mrb[1].mxu0 }
 0x351   : > { %v892_v40 = vpop.f32.mrb[2].mxu0 }
 0x352   : > { %v4642_v41 = vpack.c.bf16 %v890_v38, %v890_v38  ;;  %v3382_v42 = vpop.f32.mrb[3].mxu0 }
 0x354   : > { %896 = vxpose.xlu0.c.b16.start.end [1/1] (short) (narrow) %v4642_v41, 32 }
 0x357   : > { %v1470_v44 = vpop.f32.mrb[4].mxu0 }
 0x358   : > { %v1471_v45 = vadd.f32 %v3253_v43, %v1470_v44  ;;  %v3397_v46 = vpop.f32.mrb[5].mxu0 }
 0x359   : > { %v1473_v47 = vpop.f32.mrb[6].mxu0 }
 0x35a   : > { %v1476_v48 = vmul.f32 0.35355338, %v1471_v45  ;;  %v3398_v49 = vpop.f32.mrb[7].mxu0 }
 0x35c   : > { %v1477_v50 = vpack.c.bf16 %v1476_v48, %v1476_v48 }
 0x35e   : > { %1478 = vxpose.xlu1.c.b16.start.end [1/1] (short) (narrow) %v1477_v50, 32 }
 0x3ba   : > { %v904_v53 = vpop.trf.xlu0 }
 0x3bb   : > { %v3226_v54 = vcombine.high %v904_v53, %v904_v53  ;;  %v3225_v55 = vcombine.low %v904_v53, %v904_v53 }
 0x3bd   : > { %942 = vxpose.xlu1.c.b16.start.end [1/1] (short) (narrow) %v3226_v54, 16  ;;  %926 = vxpose.xlu0.c.b16.start.end [1/1] (short) (narrow) %v3225_v55, 16 }
 0x3be   : > { %v905_v56 = vpop.trf.xlu0 }
 0x3bf   : > { %v3228_v57 = vcombine.high %v905_v56, %v905_v56  ;;  %v3227_v58 = vcombine.low %v905_v56, %v905_v56 }
 0x3c1   : > { %974 = vxpose.xlu1.c.b16.start.end [1/1] (short) (narrow) %v3228_v57, 16  ;;  %958 = vxpose.xlu0.c.b16.start.end [1/1] (short) (narrow) %v3227_v58, 16 }
 0x3c4   : > { %v1486_v59 = vpop.trf.xlu1 }
 0x3c5   : > { %v3258_v60 = vcombine.high %v1486_v59, %v1486_v59  ;;  %v3257_v61 = vcombine.low %v1486_v59, %v1486_v59 }
 0x3c7   : > { %1524 = vxpose.xlu1.c.b16.start.end [1/1] (short) (narrow) %v3258_v60, 16  ;;  %1508 = vxpose.xlu0.c.b16.start.end [1/1] (short) (narrow) %v3257_v61, 16 }
 0x3c8   : > { %v1487_v62 = vpop.trf.xlu1 }
 0x3c9   : > { %v3260_v63 = vcombine.high %v1487_v62, %v1487_v62  ;;  %v3259_v1 = vcombine.low %v1487_v62, %v1487_v62 }
 0x3cb   : > { %1556 = vxpose.xlu1.c.b16.start.end [1/1] (short) (narrow) %v3260_v63, 16  ;;  %1540 = vxpose.xlu0.c.b16.start.end [1/1] (short) (narrow) %v3259_v1, 16 }
 0x423   : > { %v950_v2 = vpop.trf.xlu1  ;;  %v934_v3 = vpop.trf.xlu0 }
 0x424   : > { %992 = vst.msk [vmem:[#allocation2 + $0x4] sm:$0xf] %vm990_vm2, %v950_v2  ;;  %991 = vst.msk [vmem:[#allocation2] sm:$0xf] %vm990_vm2, %v934_v3 }
 0x427   : > { %v982_v4 = vpop.trf.xlu1  ;;  %v966_v5 = vpop.trf.xlu0 }
 0x428   : > { %994 = vst.msk [vmem:[#allocation2 + $0xc] sm:$0xf] %vm990_vm2, %v982_v4  ;;  %993 = vst.msk [vmem:[#allocation2 + $0x8] sm:$0xf] %vm990_vm2, %v966_v5 }
 0x42b   : > { %v1572_v6 = vld [vmem:[#allocation2] sm:$0xf]  ;;  %v1573_v7 = vld [vmem:[#allocation2 + $0x4] sm:$0xf] }
 0x42c   : > { %v1585_v8 = vsel %vm1580_vm3, %v1572_v6, 0  ;;  %v1631_v9 = vsel %vm1580_vm3, %v1573_v7, 0 }
 0x42d   : > { %3400 = vmatpush3.bf16.xpose.msra.mxu1 %v1585_v8  ;;  %3406 = vmatpush3.bf16.xpose.msra.mxu0 %v1631_v9  ;;  %v1532_v12 = vpop.trf.xlu1  ;;  %v1516_v14 = vpop.trf.xlu0 }
 0x42e   : > { %3411 = vmatprep.subr.bf16.mxu1 %v4113_v13  ;;  %3417 = vmatprep.subr.bf16.mxu0 %v4113_v13 }
 0x42f   : > { %v1574_v10 = vld [vmem:[#allocation2 + $0x8] sm:$0xf]  ;;  %v1575_v11 = vld [vmem:[#allocation2 + $0xc] sm:$0xf] }
 0x430   : > { %v1677_v15 = vsel %vm1580_vm3, %v1574_v10, 0  ;;  %v1723_v16 = vsel %vm1580_vm3, %v1575_v11, 0 }
 0x431   : > { %v1564_v17 = vpop.trf.xlu1  ;;  %v1548_v18 = vpop.trf.xlu0 }
 0x434   : > { %3402 = vmatmul.mubr.msk.bf16.vlgmr.msra.gmra.mrb[4].mxu1 %vm1580_vm3, %v1516_v14  ;;  %3408 = vmatmul.mubr.msk.bf16.vlgmr.msra.gmra.mrb[8].mxu0 %vm1580_vm3, %v1532_v12 }
 0x435   : > { %3412 = vmatpush3.bf16.xpose.msra.mxu1 %v1677_v15  ;;  %3418 = vmatpush3.bf16.xpose.msra.mxu0 %v1723_v16 }
 0x436   : > { %3419 = vmatprep.mubr.msk.bf16.mxu0 %vm4114_vm1, %v4113_v13  ;;  %3413 = vmatprep.mubr.msk.bf16.mxu1 %vm4114_vm1, %v4113_v13 }
 0x437   : > { %3423 = vmatprep.subr.bf16.mxu1 %v4113_v13  ;;  %3429 = vmatprep.subr.bf16.mxu0 %v4113_v13 }
 0x43c   : > { %3414 = vmatmul.mubr.msk.bf16.vlgmr.msra.gmra.mrb[8].mxu1 %vm1580_vm3, %v1548_v18  ;;  %3420 = vmatmul.mubr.msk.bf16.vlgmr.msra.gmra.mrb[12].mxu0 %vm1580_vm3, %v1564_v17 }
 0x43d   : > { %3425 = vmatprep.mubr.msk.bf16.mxu1 %vm4114_vm1, %v4113_v13  ;;  %3431 = vmatprep.mubr.msk.bf16.mxu0 %vm4114_vm1, %v4113_v13 }
 0x507   : > { %v1621_v27 = vpop.f32.mrb[4].mxu1  ;;  %v1667_v28 = vpop.f32.mrb[8].mxu0 }
 0x508   : > { %v1622_v29 = vadd.f32 %v1621_v27, %v1373_v26  ;;  %v1668_v30 = vadd.f32 %v1667_v28, %v1373_v26  ;;  %v3403_v31 = vpop.f32.mrb[5].mxu1  ;;  %v3409_v32 = vpop.f32.mrb[9].mxu0 }
 0x509   : > { %v1624_v33 = vpop.f32.mrb[6].mxu1  ;;  %v1670_v34 = vpop.f32.mrb[10].mxu0 }
 0x50a   : > { %v3404_v35 = vpop.f32.mrb[7].mxu1  ;;  %v1768_v36 = vsel %vm1580_vm3, %v1668_v30, -inf  ;;  %v1765_v37 = vsel %vm1580_vm3, %v1622_v29, -inf  ;;  %v3410_v38 = vpop.f32.mrb[11].mxu0 }
 0x50b   : > { %1769 = vmax.xlane.f32.xlu1 %v1768_v36  ;;  %1766 = vmax.xlane.f32.xlu0 %v1765_v37 }
 0x50f   : > { %v1713_v39 = vpop.f32.mrb[8].mxu1  ;;  %v1759_v40 = vpop.f32.mrb[12].mxu0 }
 0x510   : > { %v1714_v42 = vadd.f32 %v1713_v39, %v1373_v26  ;;  %v1760_v43 = vadd.f32 %v1759_v40, %v1373_v26  ;;  %v3415_v44 = vpop.f32.mrb[9].mxu1  ;;  %v3421_v45 = vpop.f32.mrb[13].mxu0 }
 0x511   : > { %v1716_v46 = vpop.f32.mrb[10].mxu1  ;;  %v1762_v47 = vpop.f32.mrb[14].mxu0 }
 0x512   : > { %v3416_v48 = vpop.f32.mrb[11].mxu1  ;;  %v1774_v49 = vsel %vm1580_vm3, %v1760_v43, -inf  ;;  %v1771_v50 = vsel %vm1580_vm3, %v1714_v42, -inf  ;;  %v3422_v51 = vpop.f32.mrb[15].mxu0  ;;  %v3684_v46 = vld [vmem:[#allocation18] sm:$0xff]  }
 0x513   : > { %1775 = vmax.xlane.f32.xlu1 %v1774_v49  ;;  %1772 = vmax.xlane.f32.xlu0 %v1771_v50  ;;  %v3685_v50 = vld [vmem:[#allocation18 + $0x8] sm:$0xff]  }
 0x529   : > { %996 = vrot.lane.b32.xlu0 %v4642_v41, %s4115_s9 }
 0x598   : > { %v1767_v52 = vpop.xlane.xlu0 %1766  ;;  %v1770_v55 = vpop.xlane.xlu1 %1769 }
 0x599   : > { %v1778_v56 = vsub.f32 %v1668_v30, %v1770_v55  ;;  %v1777_v57 = vsub.f32 %v1622_v29, %v1767_v52 }
 0x59b   : > { %v1783_v59 = vmul.f32 1.442695, %v1778_v56  ;;  %v1781_v60 = vmul.f32 1.442695, %v1777_v57 }
 0x59d   : > { %3700 = vpow2.f32 %v1783_v59 }
 0x59e   : > { %3702 = vpow2.f32 %v1781_v60 }
 0x5a0   : > { %v1773_v53 = vpop.xlane.xlu0 %1772  ;;  %v1776_v58 = vpop.xlane.xlu1 %1775 }
 0x5a1   : > { %v1779_v61 = vsub.f32 %v1714_v42, %v1773_v53  ;;  %v1780_v2 = vsub.f32 %v1760_v43, %v1776_v58 }
 0x5a3   : > { %v1785_v3 = vmul.f32 1.442695, %v1779_v61  ;;  %v1787_v41 = vmul.f32 1.442695, %v1780_v2 }
 0x5a4   : > { %v997_v54 = vpop.permute.xlu0 %996 }
 0x5a5   : > { %999 = vxpose.xlu1.c.b16.start.end [1/1] (short) (narrow) %v997_v54, 32  ;;  %3704 = vpow2.f32 %v1785_v3 }
 0x5a6   : > { %3706 = vpow2.f32 %v1787_v41 }
 0x5a7   : > { %v3701_v4 = vpop.eup %3700 }
 0x5a8   : > { %v3703_v5 = vpop.eup %3702  ;;  %v1792_v6 = vsel %vm1580_vm3, %v3701_v4, 0.0 }
 0x5a9   : > { %v1789_v7 = vsel %vm1580_vm3, %v3703_v5, 0.0 }
 0x5af   : > { %v3705_v8 = vpop.eup %3704 }
 0x5b0   : > { %v1795_v9 = vsel %vm1580_vm3, %v3705_v8, 0.0  ;;  %v3707_v10 = vpop.eup %3706 }
 0x5b1   : > { %v1798_v11 = vsel %vm1580_vm3, %v3707_v10, 0.0 }
 0x60b   : > { %v1007_v62 = vpop.trf.xlu1 }
 0x60c   : > { %v3229_v63 = vcombine.low %v1007_v62, %v1007_v62  ;;  %v3230_v1 = vcombine.high %v1007_v62, %v1007_v62 }
 0x60e   : > { %1045 = vxpose.xlu1.c.b16.start.end [1/1] (short) (narrow) %v3230_v1, 16  ;;  %1029 = vxpose.xlu0.c.b16.start.end [1/1] (short) (narrow) %v3229_v63, 16 }
 0x60f   : > { %v1008_v12 = vpop.trf.xlu1 }
 0x610   : > { %v3232_v14 = vcombine.high %v1008_v12, %v1008_v12  ;;  %v3231_v15 = vcombine.low %v1008_v12, %v1008_v12 }
 0x61b   : > { %1793 = vadd.xlane.f32.xlu1 %v1792_v6  ;;  %1790 = vadd.xlane.f32.xlu0 %v1789_v7 }
 0x61f   : > { %1796 = vadd.xlane.f32.xlu0 %v1795_v9 }
 0x623   : > { %1799 = vadd.xlane.f32.xlu0 %v1798_v11 }
 0x648   : > { %1077 = vxpose.xlu1.c.b16.start.end [1/1] (short) (narrow) %v3232_v14, 16 }
 0x650   : > { %1061 = vxpose.xlu0.c.b16.start.end [1/1] (short) (narrow) %v3231_v15, 16 }
 0x674   : > { %v1037_v16 = vpop.trf.xlu0  ;;  %v1053_v17 = vpop.trf.xlu1 }
 0x675   : > { %1093 = vst.msk [vmem:[#allocation3] sm:$0xf] %vm990_vm2, %v1037_v16  ;;  %1094 = vst.msk [vmem:[#allocation3 + $0x4] sm:$0xf] %vm990_vm2, %v1053_v17 }
 0x67c   : > { %v1576_v18 = vld [vmem:[#allocation3] sm:$0xf]  ;;  %v1577_v20 = vld [vmem:[#allocation3 + $0x4] sm:$0xf] }
 0x67d   : > { %v1818_v21 = vsel %vm1816_vm4, %v1576_v18, 0  ;;  %v1864_v22 = vsel %vm1816_vm4, %v1577_v20, 0  ;;  %v3237_v20 = vld [vmem:[#allocation17 + $0x1] ss:$0 sm:$0xff] }
 0x67e   : > { %3424 = vmatpush3.bf16.msra.mxu1 %v1818_v21  ;;  %3430 = vmatpush3.bf16.msra.mxu0 %v1864_v22  ;;  %v1161_v21 = vadd.f32 %v3237_v20, %v4681_v19  ;;  %v3687_v19 = vld [vmem:[%s5021_s6 + $0x18] sm:$0xff]  }
 0x67f   : > { %3441 = vmatprep.subr.bf16.mxu0 %v4113_v13  ;;  %3435 = vmatprep.subr.bf16.mxu1 %v4113_v13 }
 0x680   : > { %v4739_v22 = vpack.c.bf16 %v1161_v21, %v1161_v21 }
 0x6a8   : > { %v1791_v23 = vpop.xlane.xlu0 %1790  ;;  %v1794_v24 = vpop.xlane.xlu1 %1793 }
 0x6a9   : > { %3708 = vrcp.f32 %v1791_v23 }
 0x6aa   : > { %3710 = vrcp.f32 %v1794_v24 }
 0x6ac   : > { %v1797_v25 = vpop.xlane.xlu0 %1796 }
 0x6ad   : > { %3712 = vrcp.f32 %v1797_v25 }
 0x6ae   : > { %v1085_v26 = vpop.trf.xlu1 }
 0x6af   : > { %1096 = vst.msk [vmem:[#allocation3 + $0xc] sm:$0xf] %vm990_vm2, %v1085_v26 }
 0x6b0   : > { %v1800_v27 = vpop.xlane.xlu0 %1799 }
 0x6b1   : > { %3714 = vrcp.f32 %v1800_v27  ;;  %v3686_v27 = vld [vmem:[%s5021_s6 + $0x10] sm:$0xff]  }
 0x6b3   : > { %v3709_v28 = vpop.eup %3708 }
 0x6b4   : > { %v3711_v29 = vpop.eup %3710  ;;  %v1802_v30 = vmul.f32 %v3709_v28, %v3703_v5 }
 0x6b5   : > { %v1804_v31 = vmul.f32 %v3711_v29, %v3701_v4 }
 0x6b6   : > { %v1069_v32 = vpop.trf.xlu0  ;;  %v1809_v33 = vpack.c.bf16 %v1802_v30, %v1802_v30  ;;  %v1579_v34 = vld [vmem:[#allocation3 + $0xc] sm:$0xf] }
 0x6b7   : > { %1095 = vst.msk [vmem:[#allocation3 + $0x8] sm:$0xf] %vm990_vm2, %v1069_v32  ;;  %v1810_v35 = vpack.c.bf16 %v1804_v31, %v1804_v31  ;;  %v1956_v36 = vsel %vm1816_vm4, %v1579_v34, 0  ;;  %v3713_v37 = vpop.eup %3712  ;;  %v3273_v32 = vld [vmem:[#allocation14 + $0x1] ss:$0 sm:$0xff] }
 0x6b8   : > { %3426 = vmatmul.mubr.msk.bf16.vlgmr.msra.gmra.mrb[12].mxu1 %vm1580_vm3, %v1809_v33  ;;  %v1806_v40 = vmul.f32 %v3713_v37, %v3705_v8  ;;  %v3274_v34 = vld [vmem:[#allocation15 + $0x1] ss:$0 sm:$0xff] }
 0x6b9   : > { %3432 = vmatmul.mubr.msk.bf16.vlgmr.msra.gmra.mrb[16].mxu0 %vm1580_vm3, %v1810_v35  ;;  %3437 = vmatprep.mubr.msk.bf16.mxu1 %vm4114_vm1, %v4113_v13 }
 0x6ba   : > { %3442 = vmatpush3.bf16.msra.mxu0 %v1956_v36  ;;  %3443 = vmatprep.mubr.msk.bf16.mxu0 %vm4114_vm1, %v4113_v13  ;;  %v1811_v45 = vpack.c.bf16 %v1806_v40, %v1806_v40 }
 0x6bb   : > { %v3715_v38 = vpop.eup %3714  ;;  %3455 = vmatprep.subr.bf16.mxu0 %v4113_v13 }
 0x6bc   : > { %v1808_v39 = vmul.f32 %v3715_v38, %v3707_v10  ;;  %v3269_v10 = vld [vmem:[%s5023_s11] ss:$0 sm:$0xff] }
 0x6be   : > { %v1578_v42 = vld [vmem:[#allocation3 + $0x8] sm:$0xf]  ;;  %v1812_v43 = vpack.c.bf16 %v1808_v39, %v1808_v39 }
 0x6bf   : > { %v1910_v44 = vsel %vm1816_vm4, %v1578_v42, 0 }
 0x6c0   : > { %3436 = vmatpush3.bf16.msra.mxu1 %v1910_v44 }
 0x6c1   : > { %3444 = vmatmul.mubr.msk.bf16.vlgmr.msra.gmra.mrb[20].mxu0 %vm1580_vm3, %v1812_v43  ;;  %3447 = vmatprep.subr.bf16.mxu1 %v4113_v13 }
 0x6c2   : > { %3459 = vmatprep.mubr.msk.bf16.mxu0 %vm4114_vm1, %v4113_v13  ;;  %3456 = vmatpush3.bf16.msra.mxu0 %v3686_v27 }
 0x6c3   : > { %3438 = vmatmul.mubr.msk.bf16.vlgmr.msra.gmra.mrb[16].mxu1 %vm1580_vm3, %v1811_v45  ;;  %3457 = vmatprep.subr.bf16.mxu0 %v4113_v13 }
 0x6c4   : > { %3451 = vmatprep.mubr.msk.bf16.mxu1 %vm4114_vm1, %v4113_v13  ;;  %3448 = vmatpush3.bf16.msra.mxu1 %v3684_v46 }
 0x6c5   : > { %3449 = vmatprep.subr.bf16.mxu1 %v4113_v13 }
 0x6c6   : > { %3458 = vmatpush3.bf16.msra.mxu0 %v3687_v19 }
 0x6c7   : > { %3469 = vmatprep.subr.bf16.mxu0 %v4113_v13 }
 0x6c8   : > { %3450 = vmatpush3.bf16.msra.mxu1 %v3685_v50 }
 0x6c9   : > { %3463 = vmatprep.subr.bf16.mxu1 %v4113_v13 }
 0x78b   : > { %v1854_v47 = vpop.f32.mrb[12].mxu1 }
 0x78c   : > { %v1900_v48 = vpop.f32.mrb[16].mxu0  ;;  %v3427_v49 = vpop.f32.mrb[13].mxu1  ;;  %v1998_v5 = vpack.c.bf16 %v1854_v47, %v1854_v47 }
 0x78d   : > { %v1999_v51 = vpack.c.bf16 %v1900_v48, %v1900_v48  ;;  %v3433_v52 = vpop.f32.mrb[17].mxu0  ;;  %v1857_v53 = vpop.f32.mrb[14].mxu1  ;;  %v3280_v49 = vld [vmem:[%s5022_s4 + $0x1] ss:$0 sm:$0xff] }
 0x78e   : > { %v1903_v54 = vpop.f32.mrb[18].mxu0  ;;  %v3428_v55 = vpop.f32.mrb[15].mxu1 }
 0x78f   : > { %2003 = vrot.lane.b32.xlu0 %v1999_v51, %s4116_s14  ;;  %v3434_v56 = vpop.f32.mrb[19].mxu0 }
 0x794   : > { %v1992_v57 = vpop.f32.mrb[20].mxu0 }
 0x795   : > { %v3445_v58 = vpop.f32.mrb[21].mxu0  ;;  %v2001_v3 = vpack.c.bf16 %v1992_v57, %v1992_v57 }
 0x796   : > { %v1995_v59 = vpop.f32.mrb[22].mxu0  ;;  %v1946_v60 = vpop.f32.mrb[16].mxu1 }
 0x797   : > { %v2000_v61 = vpack.c.bf16 %v1946_v60, %v1946_v60  ;;  %v3446_v62 = vpop.f32.mrb[23].mxu0  ;;  %v3439_v63 = vpop.f32.mrb[17].mxu1 }
 0x798   : > { %v1949_v1 = vpop.f32.mrb[18].mxu1 }
 0x799   : > { %2006 = vrot.lane.b32.xlu1 %v2000_v61, %s4117_s22  ;;  %v3440_v2 = vpop.f32.mrb[19].mxu1 }
 0x79d   : > { %2009 = vrot.lane.b32.xlu1 %v2001_v3, %s4118_s0 }
 0x801   : > { %v2004_v41 = vpop.permute.xlu0 %2003 }
 0x802   : > { %v2013_v6 = vsel %vm1580_vm3, %v1998_v5, %v2004_v41 }
 0x80b   : > { %v2007_v4 = vpop.permute.xlu1 %2006 }
 0x80c   : > { %v2016_v7 = vsel %vm2014_vm5, %v2013_v6, %v2007_v4 }
 0x80f   : > { %v2010_v8 = vpop.permute.xlu1 %2009 }
 0x810   : > { %v2019_v9 = vsel %vm2017_vm6, %v2016_v7, %v2010_v8 }
 0x811   : > { %3452 = vmatmul.mubr.msk.bf16.vlgmr.msra.gmra.mrb[20].mxu1 %vm799_vm0, %v2019_v9 }
 0x812   : > { %3465 = vmatprep.mubr.msk.bf16.mxu1 %vm4114_vm1, %v4113_v13 }
 0x8e4   : > { %v2079_v11 = vpop.f32.mrb[20].mxu1 }
 0x8e5   : > { %v2080_v12 = vadd.f32 %v3269_v10, %v2079_v11  ;;  %v3453_v14 = vpop.f32.mrb[21].mxu1  ;;  %v1374_v11 = vld [vmem:[%s703_s23] sm:$0xf] }
 0x8e6   : > { %v2082_v15 = vpop.f32.mrb[22].mxu1 }
 0x8e7   : > { %v4734_v16 = vadd.f32 %v2080_v12, %v4602_v0  ;;  %v3454_v17 = vpop.f32.mrb[23].mxu1  ;;  %v1375_v12 = vunpack.c.l.bf16 %v1374_v11 }
 0x8e9   : > { %v2090_v18 = vsel %vm799_vm0, %v4734_v16, 0.0  ;;  %v3250_v14 = vadd.f32 -1.0, %v1375_v12 }
 0x8ea   : > { %2091 = vadd.xlane.f32.xlu0 %v2090_v18 }
 0x8eb   : > { %v1377_v15 = vmul.f32 1e+09, %v3250_v14 }
 0x917   : > { %1167 = vxpose.xlu0.c.b16.start.end [1/1] (short) (narrow) %v4739_v22, 32 }
 0x977   : > { %v2092_v23 = vpop.xlane.xlu0 %2091 }
 0x978   : > { %v2093_v24 = vmul.f32 0.03125, %v2092_v23 }
 0x97a   : > { %v2094_v25 = vsub.f32 %v4734_v16, %v2093_v24 }
 0x97c   : > { %v2095_v26 = vmul.f32 %v2094_v25, %v2094_v25 }
 0x97d   : > { %v1175_v38 = vpop.trf.xlu0 }
 0x97e   : > { %v2096_v0 = vsel %vm799_vm0, %v2095_v26, 0.0  ;;  %v3241_v39 = vcombine.low %v1175_v38, %v1175_v38  ;;  %v3242_v40 = vcombine.high %v1175_v38, %v1175_v38 }
 0x97f   : > { %2097 = vadd.xlane.f32.xlu1 %v2096_v0 }
 0x980   : > { %1197 = vxpose.xlu0.c.b16.start.end [1/1] (short) (narrow) %v3241_v39, 16 }
 0x981   : > { %v1176_v42 = vpop.trf.xlu0 }
 0x982   : > { %v3244_v43 = vcombine.high %v1176_v42, %v1176_v42  ;;  %v3243_v59 = vcombine.low %v1176_v42, %v1176_v42 }
 0x984   : > { %1213 = vxpose.xlu0.c.b16.start.end [1/1] (short) (narrow) %v3242_v40, 16 }
 0x988   : > { %1245 = vxpose.xlu0.c.b16.start.end [1/1] (short) (narrow) %v3244_v43, 16 }
 0x9e6   : > { %v1205_v44 = vpop.trf.xlu0 }
 0x9e7   : > { %1261 = vst.msk [vmem:[#allocation4] sm:$0xf] %vm990_vm2, %v1205_v44 }
 0x9ea   : > { %v1221_v45 = vpop.trf.xlu0 }
 0x9eb   : > { %1262 = vst.msk [vmem:[#allocation4 + $0x4] sm:$0xf] %vm990_vm2, %v1221_v45 }
 0x9ee   : > { %v1253_v46 = vpop.trf.xlu0  ;;  %v2282_v47 = vld [vmem:[#allocation4] sm:$0xf] }
 0x9ef   : > { %1264 = vst.msk [vmem:[#allocation4 + $0xc] sm:$0xf] %vm990_vm2, %v1253_v46  ;;  %v2294_v48 = vsel %vm1580_vm3, %v2282_v47, 0 }
 0x9f0   : > { %3464 = vmatpush3.bf16.xpose.msra.mxu1 %v2294_v48 }
 0x9f1   : > { %3475 = vmatprep.subr.bf16.mxu1 %v4113_v13 }
 0x9f2   : > { %v2283_v51 = vld [vmem:[#allocation4 + $0x4] sm:$0xf] }
 0x9f3   : > { %v2340_v54 = vsel %vm1580_vm3, %v2283_v51, 0 }
 0x9f6   : > { %v2285_v4 = vld [vmem:[#allocation4 + $0xc] sm:$0xf] }
 0x9f7   : > { %v2432_v6 = vsel %vm1580_vm3, %v2285_v4, 0 }
 0xa0c   : > { %v2098_v28 = vpop.xlane.xlu1 %2097 }
 0xa0d   : > { %v2099_v29 = vmul.f32 0.03125, %v2098_v28 }
 0xa0f   : > { %v2100_v30 = vadd.f32 1e-05, %v2099_v29 }
 0xa11   : > { %3716 = vrsqrt.f32 %v2100_v30 }
 0xa1b   : > { %v3717_v31 = vpop.eup %3716 }
 0xa1c   : > { %v2102_v33 = vmul.f32 %v3717_v31, %v2094_v25 }
 0xa1e   : > { %v2109_v35 = vmul.f32 %v3273_v32, %v2102_v33 }
 0xa20   : > { %v2116_v36 = vadd.f32 %v3274_v34, %v2109_v35 }
 0xa22   : > { %v2117_v37 = vpack.c.bf16 %v2116_v36, %v2116_v36 }
 0xa24   : > { %3460 = vmatmul.mubr.msk.bf16.vlgmr.msra.gmra.mrb[24].mxu0 %vm799_vm0, %v2117_v37 }
 0xa25   : > { %3471 = vmatprep.mubr.msk.bf16.mxu0 %vm4114_vm1, %v4113_v13  ;;  %3470 = vmatpush3.bf16.xpose.msra.mxu0 %v2340_v54 }
 0xa26   : > { %3481 = vmatprep.subr.bf16.mxu0 %v4113_v13 }
 0xaf7   : > { %v2180_v50 = vpop.f32.mrb[24].mxu0 }
 0xaf8   : > { %v2181_v52 = vadd.f32 %v3280_v49, %v2180_v50  ;;  %v3461_v53 = vpop.f32.mrb[25].mxu0 }
 0xaf9   : > { %v2183_v55 = vpop.f32.mrb[26].mxu0 }
 0xafa   : > { %v2186_v56 = vmul.f32 0.35355338, %v2181_v52  ;;  %v3462_v57 = vpop.f32.mrb[27].mxu0 }
 0xafc   : > { %v2187_v58 = vpack.c.bf16 %v2186_v56, %v2186_v56 }
 0xafe   : > { %2188 = vxpose.xlu1.c.b16.start.end [1/1] (short) (narrow) %v2187_v58, 32 }
 0xb03   : > { %1229 = vxpose.xlu1.c.b16.start.end [1/1] (short) (narrow) %v3243_v59, 16 }
 0xb64   : > { %v2196_v60 = vpop.trf.xlu1 }
 0xb65   : > { %v3285_v61 = vcombine.high %v2196_v60, %v2196_v60  ;;  %v3284_v62 = vcombine.low %v2196_v60, %v2196_v60 }
 0xb67   : > { %2234 = vxpose.xlu0.c.b16.start.end [1/1] (short) (narrow) %v3285_v61, 16  ;;  %2218 = vxpose.xlu1.c.b16.start.end [1/1] (short) (narrow) %v3284_v62, 16 }
 0xb68   : > { %v2197_v63 = vpop.trf.xlu1 }
 0xb69   : > { %v3287_v1 = vcombine.high %v2197_v63, %v2197_v63  ;;  %v3286_v2 = vcombine.low %v2197_v63, %v2197_v63 }
 0xb6b   : > { %2266 = vxpose.xlu0.c.b16.start.end [1/1] (short) (narrow) %v3287_v1, 16  ;;  %2250 = vxpose.xlu1.c.b16.start.end [1/1] (short) (narrow) %v3286_v2, 16 }
 0xb6c   : > { %v1237_v3 = vpop.trf.xlu1 }
 0xb6d   : > { %1263 = vst.msk [vmem:[#allocation4 + $0x8] sm:$0xf] %vm990_vm2, %v1237_v3 }
 0xb74   : > { %v2284_v41 = vld [vmem:[#allocation4 + $0x8] sm:$0xf] }
 0xb75   : > { %v2386_v5 = vsel %vm1580_vm3, %v2284_v41, 0 }
 0xbcd   : > { %v2226_v7 = vpop.trf.xlu1  ;;  %v2242_v8 = vpop.trf.xlu0 }
 0xbce   : > { %3466 = vmatmul.mubr.msk.bf16.vlgmr.msra.gmra.mrb[24].mxu1 %vm1580_vm3, %v2226_v7  ;;  %3472 = vmatmul.mubr.msk.bf16.vlgmr.msra.gmra.mrb[28].mxu0 %vm1580_vm3, %v2242_v8 }
 0xbcf   : > { %3476 = vmatpush3.bf16.xpose.msra.mxu1 %v2386_v5  ;;  %3482 = vmatpush3.bf16.xpose.msra.mxu0 %v2432_v6 }
 0xbd0   : > { %3477 = vmatprep.mubr.msk.bf16.mxu1 %vm4114_vm1, %v4113_v13  ;;  %3483 = vmatprep.mubr.msk.bf16.mxu0 %vm4114_vm1, %v4113_v13 }
 0xbd1   : > { %3487 = vmatprep.subr.bf16.mxu1 %v4113_v13  ;;  %3493 = vmatprep.subr.bf16.mxu0 %v4113_v13  ;;  %v2258_v9 = vpop.trf.xlu1  ;;  %v2274_v10 = vpop.trf.xlu0 }
 0xbd6   : > { %3478 = vmatmul.mubr.msk.bf16.vlgmr.msra.gmra.mrb[28].mxu1 %vm1580_vm3, %v2258_v9  ;;  %3484 = vmatmul.mubr.msk.bf16.vlgmr.msra.gmra.mrb[32].mxu0 %vm1580_vm3, %v2274_v10 }
 0xbd7   : > { %3489 = vmatprep.mubr.msk.bf16.mxu1 %vm4114_vm1, %v4113_v13  ;;  %3495 = vmatprep.mubr.msk.bf16.mxu0 %vm4114_vm1, %v4113_v13 }
 0xca1   : > { %v2330_v17 = vpop.f32.mrb[24].mxu1  ;;  %v2376_v18 = vpop.f32.mrb[28].mxu0 }
 0xca2   : > { %v2331_v20 = vadd.f32 %v2330_v17, %v1377_v15  ;;  %v2377_v21 = vadd.f32 %v2376_v18, %v1377_v15  ;;  %v3467_v23 = vpop.f32.mrb[25].mxu1  ;;  %v3473_v24 = vpop.f32.mrb[29].mxu0 }
 0xca3   : > { %v2333_v25 = vpop.f32.mrb[26].mxu1  ;;  %v2379_v26 = vpop.f32.mrb[30].mxu0 }
 0xca4   : > { %v3468_v0 = vpop.f32.mrb[27].mxu1  ;;  %v2477_v27 = vsel %vm1580_vm3, %v2377_v21, -inf  ;;  %v2474_v19 = vsel %vm1580_vm3, %v2331_v20, -inf  ;;  %v3474_v28 = vpop.f32.mrb[31].mxu0 }
 0xca5   : > { %2478 = vmax.xlane.f32.xlu0 %v2477_v27  ;;  %2475 = vmax.xlane.f32.xlu1 %v2474_v19 }
 0xca9   : > { %v2422_v29 = vpop.f32.mrb[28].mxu1  ;;  %v2468_v30 = vpop.f32.mrb[32].mxu0 }
 0xcaa   : > { %v2423_v31 = vadd.f32 %v2422_v29, %v1377_v15  ;;  %v2469_v32 = vadd.f32 %v2468_v30, %v1377_v15  ;;  %v3479_v33 = vpop.f32.mrb[29].mxu1  ;;  %v3485_v34 = vpop.f32.mrb[33].mxu0 }
 0xcab   : > { %v2425_v35 = vpop.f32.mrb[30].mxu1  ;;  %v2471_v36 = vpop.f32.mrb[34].mxu0  ;;  %v3688_v34 = vld [vmem:[#allocation18 + $0x10] sm:$0xff]  }
 0xcac   : > { %v3480_v37 = vpop.f32.mrb[31].mxu1  ;;  %v2483_v38 = vsel %vm1580_vm3, %v2469_v32, -inf  ;;  %v2480_v39 = vsel %vm1580_vm3, %v2423_v31, -inf  ;;  %v3486_v40 = vpop.f32.mrb[35].mxu0  ;;  %v3689_v35 = vld [vmem:[#allocation18 + $0x18] sm:$0xff]  }
 0xcad   : > { %2484 = vmax.xlane.f32.xlu0 %v2483_v38  ;;  %2481 = vmax.xlane.f32.xlu1 %v2480_v39 }
 0xcbe   : > { %1266 = vrot.lane.b32.xlu1 %v4739_v22, %s4115_s9 }
 0xd32   : > { %v2476_v42 = vpop.xlane.xlu1 %2475  ;;  %v2479_v45 = vpop.xlane.xlu0 %2478 }
 0xd33   : > { %v2487_v46 = vsub.f32 %v2377_v21, %v2479_v45  ;;  %v2486_v47 = vsub.f32 %v2331_v20, %v2476_v42 }
 0xd35   : > { %v2492_v49 = vmul.f32 1.442695, %v2487_v46  ;;  %v2490_v50 = vmul.f32 1.442695, %v2486_v47 }
 0xd37   : > { %3718 = vpow2.f32 %v2492_v49 }
 0xd38   : > { %3720 = vpow2.f32 %v2490_v50 }
 0xd3a   : > { %v2482_v43 = vpop.xlane.xlu1 %2481  ;;  %v2485_v48 = vpop.xlane.xlu0 %2484 }
 0xd3b   : > { %v2488_v51 = vsub.f32 %v2423_v31, %v2482_v43  ;;  %v2489_v55 = vsub.f32 %v2469_v32, %v2485_v48 }
 0xd3d   : > { %v2494_v56 = vmul.f32 1.442695, %v2488_v51  ;;  %v2496_v22 = vmul.f32 1.442695, %v2489_v55 }
 0xd3e   : > { %v1267_v44 = vpop.permute.xlu1 %1266 }
 0xd3f   : > { %1269 = vxpose.xlu0.c.b16.start.end [1/1] (short) (narrow) %v1267_v44, 32  ;;  %3722 = vpow2.f32 %v2494_v56 }
 0xd40   : > { %3724 = vpow2.f32 %v2496_v22 }
 0xd41   : > { %v3719_v57 = vpop.eup %3718 }
 0xd42   : > { %v3721_v58 = vpop.eup %3720  ;;  %v2501_v59 = vsel %vm1580_vm3, %v3719_v57, 0.0 }
 0xd43   : > { %v2498_v60 = vsel %vm1580_vm3, %v3721_v58, 0.0 }
 0xd49   : > { %v3723_v61 = vpop.eup %3722 }
 0xd4a   : > { %v2504_v62 = vsel %vm1580_vm3, %v3723_v61, 0.0  ;;  %v3725_v63 = vpop.eup %3724 }
 0xd4b   : > { %v2507_v1 = vsel %vm1580_vm3, %v3725_v63, 0.0 }
 0xda5   : > { %v1277_v52 = vpop.trf.xlu0 }
 0xda6   : > { %v3245_v53 = vcombine.low %v1277_v52, %v1277_v52  ;;  %v3246_v54 = vcombine.high %v1277_v52, %v1277_v52 }
 0xda8   : > { %1315 = vxpose.xlu0.c.b16.start.end [1/1] (short) (narrow) %v3246_v54, 16  ;;  %1299 = vxpose.xlu1.c.b16.start.end [1/1] (short) (narrow) %v3245_v53, 16 }
 0xda9   : > { %v1278_v2 = vpop.trf.xlu0 }
 0xdaa   : > { %v3248_v3 = vcombine.high %v1278_v2, %v1278_v2  ;;  %v3247_v41 = vcombine.low %v1278_v2, %v1278_v2 }
 0xdb5   : > { %2502 = vadd.xlane.f32.xlu0 %v2501_v59  ;;  %2499 = vadd.xlane.f32.xlu1 %v2498_v60 }
 0xdb9   : > { %2505 = vadd.xlane.f32.xlu1 %v2504_v62  ;;  %v3297_v62 = vld [vmem:[%s5023_s11 + $0x1] ss:$0 sm:$0xff] }
 0xdbd   : > { %2508 = vadd.xlane.f32.xlu1 %v2507_v1 }
 0xde2   : > { %1347 = vxpose.xlu0.c.b16.start.end [1/1] (short) (narrow) %v3248_v3, 16 }
 0xdea   : > { %1331 = vxpose.xlu1.c.b16.start.end [1/1] (short) (narrow) %v3247_v41, 16 }
 0xe0e   : > { %v1307_v4 = vpop.trf.xlu1  ;;  %v1323_v5 = vpop.trf.xlu0 }
 0xe0f   : > { %1363 = vst.msk [vmem:[#allocation5] sm:$0xf] %vm990_vm2, %v1307_v4  ;;  %1364 = vst.msk [vmem:[#allocation5 + $0x4] sm:$0xf] %vm990_vm2, %v1323_v5 }
 0xe16   : > { %v2286_v6 = vld [vmem:[#allocation5] sm:$0xf]  ;;  %v2287_v7 = vld [vmem:[#allocation5 + $0x4] sm:$0xf] }
 0xe17   : > { %v2526_v8 = vsel %vm1816_vm4, %v2286_v6, 0  ;;  %v2572_v9 = vsel %vm1816_vm4, %v2287_v7, 0 }
 0xe18   : > { %3488 = vmatpush3.bf16.msra.mxu1 %v2526_v8  ;;  %3494 = vmatpush3.bf16.msra.mxu0 %v2572_v9 }
 0xe19   : > { %3505 = vmatprep.subr.bf16.mxu0 %v4113_v13  ;;  %3499 = vmatprep.subr.bf16.mxu1 %v4113_v13 }
 0xe42   : > { %v2500_v10 = vpop.xlane.xlu1 %2499  ;;  %v2503_v11 = vpop.xlane.xlu0 %2502 }
 0xe43   : > { %3726 = vrcp.f32 %v2500_v10 }
 0xe44   : > { %3728 = vrcp.f32 %v2503_v11  ;;  %v3690_v11 = vld [vmem:[#allocation20] sm:$0xff]  }
 0xe46   : > { %v2506_v12 = vpop.xlane.xlu1 %2505 }
 0xe47   : > { %3730 = vrcp.f32 %v2506_v12  ;;  %v3691_v12 = vld [vmem:[#allocation20 + $0x8] sm:$0xff]  }
 0xe48   : > { %v1355_v14 = vpop.trf.xlu0 }
 0xe49   : > { %1366 = vst.msk [vmem:[#allocation5 + $0xc] sm:$0xf] %vm990_vm2, %v1355_v14  ;;  %v3693_v14 = vld [vmem:[%s5024_s19 + $0x8] sm:$0xff]  }
 0xe4a   : > { %v2509_v15 = vpop.xlane.xlu1 %2508 }
 0xe4b   : > { %3732 = vrcp.f32 %v2509_v15 }
 0xe4d   : > { %v3727_v17 = vpop.eup %3726 }
 0xe4e   : > { %v3729_v18 = vpop.eup %3728  ;;  %v2511_v20 = vmul.f32 %v3727_v17, %v3721_v58 }
 0xe4f   : > { %v2513_v21 = vmul.f32 %v3729_v18, %v3719_v57 }
 0xe50   : > { %v1339_v23 = vpop.trf.xlu1  ;;  %v2518_v24 = vpack.c.bf16 %v2511_v20, %v2511_v20  ;;  %v2289_v25 = vld [vmem:[#allocation5 + $0xc] sm:$0xf] }
 0xe51   : > { %1365 = vst.msk [vmem:[#allocation5 + $0x8] sm:$0xf] %vm990_vm2, %v1339_v23  ;;  %v2519_v26 = vpack.c.bf16 %v2513_v21, %v2513_v21  ;;  %v2664_v0 = vsel %vm1816_vm4, %v2289_v25, 0  ;;  %v3731_v27 = vpop.eup %3730  ;;  %v3301_v21 = vld [vmem:[#allocation14 + $0x2] ss:$0 sm:$0xff] }
 0xe52   : > { %3490 = vmatmul.mubr.msk.bf16.vlgmr.msra.gmra.mrb[32].mxu1 %vm1580_vm3, %v2518_v24  ;;  %v2515_v29 = vmul.f32 %v3731_v27, %v3723_v61  ;;  %v3302_v24 = vld [vmem:[#allocation15 + $0x2] ss:$0 sm:$0xff]  ;;  %v3694_v27 = vld [vmem:[%s5024_s19 + $0x10] sm:$0xff]  }
 0xe53   : > { %3496 = vmatmul.mubr.msk.bf16.vlgmr.msra.gmra.mrb[36].mxu0 %vm1580_vm3, %v2519_v26  ;;  %3501 = vmatprep.mubr.msk.bf16.mxu1 %vm4114_vm1, %v4113_v13 }
 0xe54   : > { %3506 = vmatpush3.bf16.msra.mxu0 %v2664_v0  ;;  %3507 = vmatprep.mubr.msk.bf16.mxu0 %vm4114_vm1, %v4113_v13  ;;  %v2520_v33 = vpack.c.bf16 %v2515_v29, %v2515_v29 }
 0xe55   : > { %v3733_v19 = vpop.eup %3732  ;;  %3519 = vmatprep.subr.bf16.mxu0 %v4113_v13 }
 0xe56   : > { %v2517_v28 = vmul.f32 %v3733_v19, %v3725_v63  ;;  %v3695_v19 = vld [vmem:[%s5024_s19 + $0x18] sm:$0xff]  }
 0xe58   : > { %v2288_v30 = vld [vmem:[#allocation5 + $0x8] sm:$0xf]  ;;  %v2521_v31 = vpack.c.bf16 %v2517_v28, %v2517_v28  ;;  %v3303_v28 = vld [vmem:[%s5026_s2] ss:$0 sm:$0xff] }
 0xe59   : > { %v2618_v32 = vsel %vm1816_vm4, %v2288_v30, 0 }
 0xe5a   : > { %3500 = vmatpush3.bf16.msra.mxu1 %v2618_v32 }
 0xe5b   : > { %3508 = vmatmul.mubr.msk.bf16.vlgmr.msra.gmra.mrb[40].mxu0 %vm1580_vm3, %v2521_v31  ;;  %3511 = vmatprep.subr.bf16.mxu1 %v4113_v13 }
 0xe5c   : > { %3523 = vmatprep.mubr.msk.bf16.mxu0 %vm4114_vm1, %v4113_v13  ;;  %3520 = vmatpush3.bf16.msra.mxu0 %v3690_v11 }
 0xe5d   : > { %3502 = vmatmul.mubr.msk.bf16.vlgmr.msra.gmra.mrb[36].mxu1 %vm1580_vm3, %v2520_v33  ;;  %3521 = vmatprep.subr.bf16.mxu0 %v4113_v13 }
 0xe5e   : > { %3515 = vmatprep.mubr.msk.bf16.mxu1 %vm4114_vm1, %v4113_v13  ;;  %3512 = vmatpush3.bf16.msra.mxu1 %v3688_v34 }
 0xe5f   : > { %3513 = vmatprep.subr.bf16.mxu1 %v4113_v13 }
 0xe60   : > { %3522 = vmatpush3.bf16.msra.mxu0 %v3691_v12 }
 0xe62   : > { %3514 = vmatpush3.bf16.msra.mxu1 %v3689_v35 }
 0xe63   : > { %3527 = vmatprep.subr.bf16.mxu1 %v4113_v13 }
 0xf25   : > { %v2562_v36 = vpop.f32.mrb[32].mxu1 }
 0xf26   : > { %v2608_v37 = vpop.f32.mrb[36].mxu0  ;;  %v3491_v38 = vpop.f32.mrb[33].mxu1  ;;  %v2706_v22 = vpack.c.bf16 %v2562_v36, %v2562_v36  ;;  %v3312_v36 = vld [vmem:[%s5027_s18] ss:$0 sm:$0xff] }
 0xf27   : > { %v2707_v39 = vpack.c.bf16 %v2608_v37, %v2608_v37  ;;  %v3497_v40 = vpop.f32.mrb[37].mxu0  ;;  %v2565_v42 = vpop.f32.mrb[34].mxu1 }
 0xf28   : > { %v2611_v43 = vpop.f32.mrb[38].mxu0  ;;  %v3492_v44 = vpop.f32.mrb[35].mxu1 }
 0xf29   : > { %2711 = vrot.lane.b32.xlu1 %v2707_v39, %s4116_s14  ;;  %v3498_v45 = vpop.f32.mrb[39].mxu0  ;;  %s5029_s14 = sld [smem:[#allocation49_spill]] }
 0xf2e   : > { %v2700_v46 = vpop.f32.mrb[40].mxu0 }
 0xf2f   : > { %v2709_v47 = vpack.c.bf16 %v2700_v46, %v2700_v46  ;;  %v3509_v48 = vpop.f32.mrb[41].mxu0 }
 0xf30   : > { %v2703_v49 = vpop.f32.mrb[42].mxu0  ;;  %v2654_v50 = vpop.f32.mrb[36].mxu1 }
 0xf31   : > { %2717 = vrot.lane.b32.xlu1 %v2709_v47, %s4118_s0  ;;  %v2708_v51 = vpack.c.bf16 %v2654_v50, %v2654_v50  ;;  %v3510_v52 = vpop.f32.mrb[43].mxu0  ;;  %v3503_v53 = vpop.f32.mrb[37].mxu1  ;;  %s5025_s0 = sld [smem:[#allocation31_spill]] }
 0xf32   : > { %v2657_v54 = vpop.f32.mrb[38].mxu1 }
 0xf33   : > { %2714 = vrot.lane.b32.xlu0 %v2708_v51, %s4117_s22  ;;  %v3504_v55 = vpop.f32.mrb[39].mxu1 }
 0xf37   : > { %s3314_s23 = sshll.u32 %s5025_s0, 7  ;;  %s2981_s0 = scalar_lea.sflag [#allocation8], %s4565_s17 }
 0xf38   : > { %s4864_s22 = scalar_lea.hbm %s5029_s14, %s3314_s23 }
 0xf9b   : > { %v2712_v56 = vpop.permute.xlu1 %2711 }
 0xf9c   : > { %v2721_v57 = vsel %vm1580_vm3, %v2706_v22, %v2712_v56 }
 0xfa3   : > { %v2718_v59 = vpop.permute.xlu1 %2717 }
 0xfa5   : > { %v2715_v58 = vpop.permute.xlu0 %2714 }
 0xfa6   : > { %v2723_v60 = vsel %vm2014_vm5, %v2721_v57, %v2715_v58 }
 0xfa7   : > { %v2725_v61 = vsel %vm2017_vm6, %v2723_v60, %v2718_v59 }
 0xfa8   : > { %3516 = vmatmul.mubr.msk.bf16.vlgmr.msra.gmra.mrb[40].mxu1 %vm799_vm0, %v2725_v61 }
 0xfa9   : > { %3535 = vmatprep.mubr.msk.bf16.mxu1 %vm4114_vm1, %v4113_v13 }
0x107b   : > { %v2787_v63 = vpop.f32.mrb[40].mxu1 }
0x107c   : > { %v2788_v1 = vadd.f32 %v3297_v62, %v2787_v63  ;;  %v3517_v2 = vpop.f32.mrb[41].mxu1 }
0x107d   : > { %v2790_v3 = vpop.f32.mrb[42].mxu1 }
0x107e   : > { %v2793_v41 = vadd.f32 %v2788_v1, %v4734_v16  ;;  %v3518_v4 = vpop.f32.mrb[43].mxu1  ;;  %v3692_v16 = vld [vmem:[%s5024_s19] sm:$0xff]  }
0x107f   : > { %3528 = vmatpush3.bf16.msra.mxu1 %v3692_v16 }
0x1080   : > { %v2798_v5 = vsel %vm799_vm0, %v2793_v41, 0.0  ;;  %3529 = vmatprep.subr.bf16.mxu1 %v4113_v13 }
0x1081   : > { %2799 = vadd.xlane.f32.xlu1 %v2798_v5 }
0x1083   : > { %3530 = vmatpush3.bf16.msra.mxu1 %v3693_v14 }
0x1084   : > { %3531 = vmatprep.subr.bf16.mxu1 %v4113_v13 }
0x1087   : > { %3532 = vmatpush3.bf16.msra.mxu1 %v3694_v27 }
0x1088   : > { %3533 = vmatprep.subr.bf16.mxu1 %v4113_v13 }
0x108b   : > { %3534 = vmatpush3.bf16.msra.mxu1 %v3695_v19 }
0x110e   : > { %v2800_v6 = vpop.xlane.xlu1 %2799 }
0x110f   : > { %v2801_v7 = vmul.f32 0.03125, %v2800_v6 }
0x1111   : > { %v2802_v8 = vsub.f32 %v2793_v41, %v2801_v7 }
0x1113   : > { %v2803_v9 = vmul.f32 %v2802_v8, %v2802_v8 }
0x1115   : > { %v2804_v10 = vsel %vm799_vm0, %v2803_v9, 0.0 }
0x1116   : > { %2805 = vadd.xlane.f32.xlu0 %v2804_v10 }
0x11a3   : > { %v2806_v15 = vpop.xlane.xlu0 %2805 }
0x11a4   : > { %v2807_v17 = vmul.f32 0.03125, %v2806_v15 }
0x11a6   : > { %v2808_v18 = vadd.f32 1e-05, %v2807_v17 }
0x11a8   : > { %3734 = vrsqrt.f32 %v2808_v18 }
0x11b2   : > { %v3735_v20 = vpop.eup %3734 }
0x11b3   : > { %v2810_v23 = vmul.f32 %v3735_v20, %v2802_v8 }
0x11b5   : > { %v2817_v25 = vmul.f32 %v3301_v21, %v2810_v23 }
0x11b7   : > { %v2824_v26 = vadd.f32 %v3302_v24, %v2817_v25 }
0x11b9   : > { %v2825_v0 = vpack.c.bf16 %v2824_v26, %v2824_v26 }
0x11bb   : > { %3524 = vmatmul.mubr.msk.bf16.vlgmr.msra.gmra.mrb[44].mxu0 %vm799_vm0, %v2825_v0 }
0x128e   : > { %v2886_v29 = vpop.f32.mrb[44].mxu0 }
0x128f   : > { %v2887_v30 = vadd.f32 %v3303_v28, %v2886_v29  ;;  %v3525_v31 = vpop.f32.mrb[45].mxu0 }
0x1290   : > { %v2889_v32 = vpop.f32.mrb[46].mxu0 }
0x1291   : > { %v2892_v33 = vmax.f32 %v2887_v30, 0.0  ;;  %v3526_v34 = vpop.f32.mrb[47].mxu0 }
0x1293   : > { %v2893_v35 = vpack.c.bf16 %v2892_v33, %v2892_v33 }
0x1295   : > { %3536 = vmatmul.mubr.msk.bf16.vlgmr.msra.gmra.mrb[44].mxu1 %vm2926_vm7, %v2893_v35 }
0x1368   : > { %v2964_v13 = vpop.f32.mrb[44].mxu1 }
0x1369   : > { %v2970_v37 = vadd.f32 %v2964_v13, %v2793_v41  ;;  %v3537_v38 = vpop.f32.mrb[45].mxu1 }
0x136a   : > { %v2967_v39 = vpop.f32.mrb[46].mxu1 }
0x136b   : > { %v2978_v40 = vadd.f32 %v3312_v36, %v2970_v37  ;;  %v3538_v42 = vpop.f32.mrb[47].mxu1 }
0x136d   : > { %2979 = vst.msk [vmem:[%s790_s27] sm:$0xff] %vm799_vm0, %v2978_v40 }
0x136e   : > { %4009 = shalt.err (!%p4006_p8)
}
0x136f   : > { %s4010_s17 = scalar_lea.hbm %s4864_s22, 128  ;;  %s4014_s10 = scalar_lea.hbm %s5029_s14, 256 }
0x1370   : > { %p4011_p10 = scmp.ne.s32.totalorder %s4864_s22, %s4010_s17  ;;  %p4015_p6 = scmp.lt.u32.totalorder %s4864_s22, %s5029_s14 }
0x1371   : > { %p4016_p11 = scmp.lt.u32.totalorder %s4014_s10, %s4010_s17  ;;  %p4018_p1 = scmp.lt.u32.totalorder %s4010_s17, %s4864_s22 }
0x1372   : > { %p4012_p7 = pnand %p4011_p10, %p5030_p9 }
0x1373   : > { %p4017_p5 = por %p4016_p11, %p4015_p6 }
0x1374   : > { %p4013_p12 = pneg %p4012_p7 }
0x1375   : > { %p4019_p2 = por %p4018_p1, %p4017_p5 }
0x1377   : > { %p4020_p0 = pnand %p4019_p2, %p4013_p12 }
0x1379   : > { %4023 = shalt.err (!%p4020_p0)
}
0x137a   : > { %3567 = dma.vmem_to_hbm [thread:$0]  (%p5030_p9), %s4866_s16, 128, %s4864_s22, %s2981_s0  }
0x137b PF: > { %s5031_s23 = sld [smem:[#allocation29_spill]]  ;;  %s5032_s27 = sld [smem:[#allocation35_spill]] }
0x137c   : > { %p5034_p13 = scmp.ge.s32.totalorder %s4098_s30, 2 }
0x1381   : > { %s3007_s25 = sand.u32 1, %s5031_s23   ;;  %p5033_p4 = scmp.ne.s32.totalorder %s5032_s27, 0 }
0x1382   : > { %s3008_s9 = scalar_lea.sflag [#allocation8], %s3007_s25 }
0x1383   : > { %p3599_p3 = pnand %p5034_p13, %p5033_p4 }
0x1385   : > { %4073 = dma.done.wait (!%p3599_p3), %s3008_s9, 128  }
0x1386   : > { %4075 = vsyncadd (!%p3599_p3), %s3008_s9, 4294967168  ;;  %s42_s30 = sadd.s32 1, %s4098_s30   ;;  %s5035_s1 = sld [smem:[#allocation30_spill]] }
0x1387   : > { %p39_p8 = scmp.ge.s32.totalorder %s42_s30, 4   ;;  %s5036_s16 = sld [smem:[#allocation34_spill]] }
0x1388   : > { %s5037_s20 = sld [smem:[#allocation32_spill]]  ;;  %s5038_s27 = smov %s4082_s28 }
0x1389   : > { %s5040_s17 = smov %s4094_s29  ;;  %41 = sbr.rel (!%p39_p8) target bundleno = 27 (0x1b), region = 209 }
0x138c   : > { %s5039_s28 = smov %s5035_s1 }
0x138e   : > { %s5041_s29 = smov %s5037_s20 }
0x1390   :  { %3013 = vsyncpa [#allocation7], 1 }
0x1391   :  { %3015 = vsyncpa [#allocation7 + $0x1], 1 }
0x1392   :  { %3016 = vsyncpa [#allocation10], 1 }
0x1393   :  { %3018 = vsyncpa [#allocation10 + $0x1], 1 }
0x1394   :  { %3019 = vsyncpa [#allocation13], 1 }
0x1395   :  { %3021 = vsyncpa [#allocation13 + $0x1], 1 }
0x1396   :  { %3022 = vsyncpa [#allocation16], 1 }
0x1397   :  { %3023 = vsyncpa [#allocation19], 1 }
0x1398   :  { %3024 = vsyncpa [#allocation8], 1 }
0x1399   :  { %3026 = vsyncpa [#allocation8 + $0x1], 1 }

// kernel: tpu_custom_call.1
= control target key start
LH: loop header
LB: loop body
LE: loop exit
PB: predicated region body
PF: predicated region fallthrough
CT: control target
= control target key end

     0   :  { %s4914_s0 = inlined_call_operand.hbm [shape: f32[2,8,32], index: 0, kind: input, shape index: {}]   ;;  %s4915_s1 = inlined_call_operand.hbm [shape: bf16[2,8,32], index: 1, kind: input, shape index: {}]   ;;  %s4916_s2 = inlined_call_operand.hbm [shape: bf16[2,8,8], index: 2, kind: input, shape index: {}]   ;;  %s4917_s3 = inlined_call_operand.hbm [shape: bf16[2,8,8], index: 3, kind: input, shape index: {}]   ;;  %s4918_s4 = inlined_call_operand.hbm [shape: f32[3,1,32], index: 4, kind: input, shape index: {}]   ;;  %s4919_s5 = inlined_call_operand.hbm [shape: f32[3,1,32], index: 5, kind: input, shape index: {}]   ;;  %s4920_s6 = inlined_call_operand.vmem [shape: bf16[2,32,32], index: 6, kind: input, shape index: {}]   ;;  %s4921_s7 = inlined_call_operand.vmem [shape: f32[2,1,32], index: 7, kind: input, shape index: {}]   ;;  %s4922_s8 = inlined_call_operand.vmem [shape: bf16[2,32,64], index: 8, kind: input, shape index: {}]   ;;  %s4923_s9 = inlined_call_operand.hbm [shape: f32[2,1,64], index: 9, kind: input, shape index: {}]   ;;  %s4924_s10 = inlined_call_operand.hbm [shape: bf16[2,32,32], index: 10, kind: input, shape index: {}]   ;;  %s4925_s11 = inlined_call_operand.vmem [shape: f32[2,1,32], index: 11, kind: input, shape index: {}]   ;;  %s4926_s12 = inlined_call_operand.hbm [shape: bf16[32,64], index: 12, kind: input, shape index: {}]   ;;  %s4927_s13 = inlined_call_operand.vmem [shape: f32[1,64], index: 13, kind: input, shape index: {}]   ;;  %s4928_s14 = inlined_call_operand.vmem [shape: bf16[64,32], index: 14, kind: input, shape index: {}]   ;;  %s4929_s15 = inlined_call_operand.vmem [shape: f32[1,32], index: 15, kind: input, shape index: {}]   ;;  %s4930_s16 = inlined_call_operand.vmem [shape: f32[1,32], index: 16, kind: input, shape index: {}]   ;;  %s4931_s17 = inlined_call_operand.vmem [shape: f32[1,32], index: 17, kind: input, shape index: {}]   ;;  %s4932_s18 = inlined_call_operand.hbm [shape: f32[2,8,32], index: 18, kind: output, shape index: {}]  }
   0x1   :  { %4965 = sst [smem:[#allocation36_spill]] %s4914_s0 }
   0x2   :  { %4966 = sst [smem:[#allocation37_spill]] %s4915_s1 }
   0x3   :  { %4967 = sst [smem:[#allocation38_spill]] %s4916_s2 }
   0x4   :  { %4968 = sst [smem:[#allocation39_spill]] %s4918_s4 }
   0x5   :  { %4969 = sst [smem:[#allocation40_spill]] %s4919_s5 }
   0x6   :  { %4970 = sst [smem:[#allocation41_spill]] %s4920_s6 }
   0x7   :  { %4971 = sst [smem:[#allocation42_spill]] %s4921_s7 }
   0x8   :  { %4972 = sst [smem:[#allocation43_spill]] %s4923_s9 }
   0x9   :  { %4973 = sst [smem:[#allocation44_spill]] %s4924_s10 }
   0xa   :  { %4974 = sst [smem:[#allocation45_spill]] %s4925_s11 }
   0xb   :  { %4975 = sst [smem:[#allocation46_spill]] %s4927_s13 }
   0xc   :  { %4976 = sst [smem:[#allocation47_spill]] %s4928_s14 }
   0xd   :  { %4977 = sst [smem:[#allocation48_spill]] %s4929_s15 }
   0xe   :  { %4978 = sst [smem:[#allocation49_spill]] %s4932_s18 }
   0xf   :  { %23 = vsyncpa [#allocation7], 0 }
  0x10   :  { %25 = vsyncpa [#allocation7 + $0x1], 0 }
  0x11   :  { %26 = vsyncpa [#allocation10], 0 }
  0x12   :  { %28 = vsyncpa [#allocation10 + $0x1], 0 }
  0x13   :  { %29 = vsyncpa [#allocation13], 0 }
  0x14   :  { %31 = vsyncpa [#allocation13 + $0x1], 0 }
  0x15   :  { %32 = vsyncpa [#allocation16], 0 }
  0x16   :  { %33 = vsyncpa [#allocation19], 0 }
  0x17   :  { %34 = vsyncpa [#allocation8], 0 }
  0x18   :  { %36 = vsyncpa [#allocation8 + $0x1], 0  ;;  %s4215_s27 = smov 0   ;;  %s4217_s28 = smov 0  }
  0x19   :  { %s4219_s16 = smov 0   ;;  %s4221_s17 = smov 0  }
  0x1a   :  { %s4223_s29 = smov 0   ;;  %s4225_s30 = smov 0  }
  0x1b LB: > { %4979 = sst [smem:[#allocation29_spill]] %s4078_s27  ;;  %s4246_s0 = sadd.s32 4294967295, %s4098_s30   ;;  %s4098_s30 = sphi %s4225_s30, %s42_s30   ;;  %s4094_s29 = sphi %s4223_s29, %s5041_s29   ;;  %s4090_s17 = sphi %s4221_s17, %s5040_s17   ;;  %s4086_s16 = sphi %s4219_s16, %s5036_s16   ;;  %s4082_s28 = sphi %s4217_s28, %s5039_s28   ;;  %s4078_s27 = sphi %s4215_s27, %s5038_s27  }
  0x1c   : > { %4980 = sst [smem:[#allocation30_spill]] %s4086_s16  ;;  %p3193_p0 = scmp.ge.s32.totalorder %s4098_s30, 1 }
  0x1d   : > { %4981 = sst [smem:[#allocation31_spill]] %s4090_s17  ;;  %p4940_p1 = scmp.eq.s32.totalorder %s4246_s0, 0 }
  0x1e   : > { %p489_p2 = scmp.lt.s32.totalorder %s4098_s30, 3  ;;  %s4100_s1 = smov [#allocation14]  }
  0x1f   : > { %s501_s20 = sshll.u32 %s4100_s1, 4  ;;  %s4101_s22 = smov [#allocation15]   ;;  %s4255_s20 = int_to_ptr.vmem [resolvable:$true] %s501_s20 }
  0x20   : > { %p4251_p3 = pnand %p3193_p0, %p489_p2  ;;  %s514_s2 = sshll.u32 %s4101_s22, 4  ;;  %s4266_s2 = int_to_ptr.vmem [resolvable:$true] %s514_s2 }
  0x21   : > { %s4102_s23 = smov [#allocation18]   ;;  %s4984_s4 = sld [smem:[#allocation39_spill]] }
  0x22   : > { %s4982_s19 = scalar_select %p4251_p3, 1, 0 }
  0x23   : > { %p3569_p4 = pneg %p4251_p3  ;;  %s4268_s24 = sshll.u32 %s4102_s23, 4  ;;  %s550_s24 = int_to_ptr.vmem [resolvable:$true] %s4268_s24 }
  0x25   : > { %p4262_p6 = pnand %p3569_p4, %p4940_p1 }
  0x27   : > { %s4983_s21 = scalar_select %p4262_p6, 1, 0 }
  0x28   : > { %s3736_s1 = scalar_lea.hbm %s4984_s4, 48  ;;  %p4278_p8 = pneg %p4262_p6 }
  0x29   : > { %p3737_p7 = scmp.ne.s32.totalorder %s4984_s4, %s3736_s1  ;;  %p3743_p11 = scmp.lt.u32.totalorder %s3736_s1, %s4984_s4 }
  0x2a   : > { %s4985_s13 = scalar_select %p4278_p8, 1, 0 }
  0x2b   : > { %p3739_p9 = pnand %p4278_p8, %p3737_p7 }
  0x2d   : > { %p3740_p10 = pneg %p3739_p9 }
  0x2f   : > { %p3745_p12 = pnand %p3743_p11, %p3740_p10 }
  0x31   : > { %3748 = shalt.err (!%p3745_p12)
}
  0x32   : > { %s3749_s15 = scalar_lea.vmem %s4255_s20, 48  ;;  %s3756_s18 = scalar_lea.vmem %s4255_s20, 64 }
  0x33   : > { %p3750_p13 = scmp.ne.s32.totalorder %s4255_s20, %s3749_s15  ;;  %p3757_p4 = scmp.lt.s32.totalorder %s4255_s20, %s4255_s20 }
  0x34   : > { %p3758_p7 = scmp.lt.s32.totalorder %s3756_s18, %s3749_s15 }
  0x35   : > { %p3752_p0 = pnand %p3750_p13, %p4278_p8 }
  0x36   : > { %p3759_p9 = por %p3758_p7, %p3757_p4 }
  0x37   : > { %p3753_p2 = pneg %p3752_p0 }
  0x39   : > { %p3760_p5 = pnand %p3759_p9, %p3753_p2 }
  0x3b   : > { %3763 = shalt.err (!%p3760_p5)
}
  0x3c   : > { %s4944_s25 = smov 16   ;;  %s4945_s26 = smov 1  }
  0x3d   : > { %3572 = dma.hbm_to_vmem [thread:$0]  (!%p4262_p6), %s4984_s4, 48, %s4255_s20, [#allocation13], %s4944_s25, %s4944_s25, %s4945_s26  }
  0x3e   : > { %s4986_s5 = sld [smem:[#allocation40_spill]] }
  0x44   : > { %s3764_s15 = scalar_lea.hbm %s4986_s5, 48 }
  0x45   : > { %p3765_p5 = scmp.ne.s32.totalorder %s4986_s5, %s3764_s15  ;;  %p3771_p12 = scmp.lt.u32.totalorder %s3764_s15, %s4986_s5 }
  0x47   : > { %p3767_p10 = pnand %p3765_p5, %p4278_p8 }
  0x49   : > { %p3768_p11 = pneg %p3767_p10 }
  0x4b   : > { %p3773_p13 = pnand %p3771_p12, %p3768_p11 }
  0x4d   : > { %3776 = shalt.err (!%p3773_p13)
}
  0x4e   : > { %s3777_s17 = scalar_lea.vmem %s4266_s2, 48  ;;  %s3784_s14 = scalar_lea.vmem %s4266_s2, 64 }
  0x4f   : > { %p3778_p0 = scmp.ne.s32.totalorder %s4266_s2, %s3777_s17  ;;  %p3785_p7 = scmp.lt.s32.totalorder %s4266_s2, %s4266_s2 }
  0x50   : > { %p3786_p9 = scmp.lt.s32.totalorder %s3784_s14, %s3777_s17 }
  0x51   : > { %p3780_p2 = pnand %p3778_p0, %p4278_p8 }
  0x52   : > { %p3787_p5 = por %p3786_p9, %p3785_p7 }
  0x53   : > { %p3781_p4 = pneg %p3780_p2 }
  0x55   : > { %p3788_p10 = pnand %p3787_p5, %p3781_p4 }
  0x57   : > { %3791 = shalt.err (!%p3788_p10)
}
  0x58   : > { %3575 = dma.hbm_to_vmem [thread:$0]  (!%p4262_p6), %s4986_s5, 48, %s4266_s2, [#allocation16], %s4944_s25, %s4944_s25, %s4945_s26  }
  0x59   : > { %s4987_s10 = sld [smem:[#allocation44_spill]] }
  0x5f   : > { %s3792_s22 = scalar_lea.hbm %s4987_s10, 512 }
  0x60   : > { %p3793_p11 = scmp.ne.s32.totalorder %s4987_s10, %s3792_s22  ;;  %p3799_p0 = scmp.lt.u32.totalorder %s3792_s22, %s4987_s10 }
  0x62   : > { %p3795_p12 = pnand %p3793_p11, %p4278_p8 }
  0x64   : > { %p3796_p13 = pneg %p3795_p12 }
  0x66   : > { %p3801_p2 = pnand %p3799_p0, %p3796_p13 }
  0x68   : > { %3804 = shalt.err (!%p3801_p2)
}
  0x69   : > { %s3805_s14 = scalar_lea.vmem %s550_s24, 512  ;;  %p3813_p5 = scmp.lt.s32.totalorder %s550_s24, %s550_s24 }
  0x6a   : > { %p3806_p4 = scmp.ne.s32.totalorder %s550_s24, %s3805_s14  ;;  %p3814_p10 = scmp.lt.s32.totalorder %s3805_s14, %s3805_s14 }
  0x6c   : > { %p3808_p7 = pnand %p3806_p4, %p4278_p8  ;;  %p3815_p1 = por %p3814_p10, %p3813_p5 }
  0x6e   : > { %p3809_p9 = pneg %p3808_p7 }
  0x70   : > { %p3816_p3 = pnand %p3815_p1, %p3809_p9 }
  0x72   : > { %3819 = shalt.err (!%p3816_p3)
}
  0x73   : > { %s4942_s2 = smov 64   ;;  %s4943_s7 = smov 4  }
  0x74   : > { %3581 = dma.hbm_to_vmem [thread:$0]  (!%p4262_p6), %s4987_s10, 512, %s550_s24, [#allocation19], %s4942_s2, %s4942_s2, %s4943_s7  }
  0x75   : > { %s3192_s1 = sadd.s32 4294967294, %s4098_s30   ;;  %s54_s22 = sadd.s32 1, %s4094_s29 }
  0x76   : > { %s61_s23 = sadd.s32 1, %s4086_s16  ;;  %p56_p1 = scmp.ge.s32.totalorder %s54_s22, 2 }
  0x77   : > { %p68_p3 = scmp.ne.s32.totalorder %s4086_s16, %s4082_s28  ;;  %p69_p11 = scmp.eq.s32.totalorder %s4098_s30, 0 }
  0x78   : > { %p74_p12 = scmp.ne.s32.totalorder %s4082_s28, %s4078_s27  ;;  %s5043_s22 = smov (%p56_p1, %s54_s22), 0 }
  0x79   : > { %4988 = sst [smem:[#allocation32_spill]] %s5043_s22  ;;  %p70_p13 = por %p69_p11, %p68_p3 }
  0x7a   : > { %p4989_p0 = scmp.eq.s32.totalorder %s4246_s0, 0  ;;  %s58_s24 = ssub.s32 %s4094_s29, %s5043_s22 }
  0x7b   : > { %p476_p4 = scmp.eq.s32.totalorder %s4246_s0, 1  ;;  %p59_p7 = scmp.eq.s32.totalorder %s58_s24, 0 }
  0x7c   : > { %p4364_p2 = por %p4989_p0, %p74_p12  ;;  %p482_p9 = scmp.eq.s32.totalorder %s3192_s1, 1 }
  0x7d   : > { %p4371_p5 = por %p476_p4, %p68_p3  ;;  %p3607_p10 = scmp.lt.s32.totalorder %s4098_s30, 2 }
  0x7e   : > { %s4990_s15 = scalar_select %p4364_p2, 1, 0 }
  0x7f   : > { %s4991_s18 = scalar_select %p4371_p5, 1, 0 }
  0x80   : > { %s4377_s17 = scalar_select %p59_p7, %s4086_s16, %s61_s23  }
  0x81   : > { %4992 = sst [smem:[#allocation33_spill]] %s4991_s18  ;;  %p4379_p1 = por %p482_p9, %p74_p12 }
  0x82   : > { %4993 = sst [smem:[#allocation34_spill]] %s4377_s17  ;;  %s4384_s11 = sand.u32 1, %s4086_s16  }
  0x83   : > { %s4994_s14 = scalar_select %p4379_p1, 1, 0 }
  0x84   : > { %p4386_p11 = pnand %p3607_p10, %p70_p13  ;;  %s4950_s1 = sand.u32 1, %s4098_s30  }
  0x85   : > { %4995 = sst [smem:[#allocation35_spill]] %s4994_s14  ;;  %s4392_s24 = sshll.u32 %s4384_s11, 2 }
  0x86   : > { %s4996_s20 = scalar_select %p4386_p11, 1, 0 }
  0x87   : > { %s4395_s2 = sshll.u32 %s4094_s29, 6  ;;  %s616_s23 = scalar_lea.vmem [#allocation9], %s4392_s24 }
  0x88   : > { %s623_s7 = sshll.u32 %s616_s23, 4  ;;  %s4997_s4 = sld [smem:[#allocation37_spill]]  ;;  %s4404_s7 = int_to_ptr.vmem [resolvable:$true] %s623_s7 }
  0x89   : > { %s4408_s10 = scalar_lea.sflag [#allocation10], %s4950_s1  ;;  %p4414_p12 = pneg %p4386_p11 }
  0x8b   : > { %s4998_s17 = scalar_select %p4414_p12, 1, 0 }
  0x8e   : > { %s4402_s5 = scalar_lea.hbm %s4997_s4, %s4395_s2  ;;  %s3825_s23 = scalar_lea.hbm %s4997_s4, 128 }
  0x8f   : > { %s3820_s22 = scalar_lea.hbm %s4402_s5, 64  ;;  %p3826_p4 = scmp.lt.u32.totalorder %s4402_s5, %s4997_s4 }
  0x90   : > { %p3821_p3 = scmp.ne.s32.totalorder %s4402_s5, %s3820_s22  ;;  %p3827_p7 = scmp.lt.u32.totalorder %s3825_s23, %s3820_s22 }
  0x91   : > { %p3829_p10 = scmp.lt.u32.totalorder %s3820_s22, %s4402_s5 }
  0x92   : > { %p3823_p13 = pnand %p4414_p12, %p3821_p3  ;;  %p3828_p9 = por %p3827_p7, %p3826_p4 }
  0x94   : > { %p3824_p0 = pneg %p3823_p13  ;;  %p3830_p1 = por %p3829_p10, %p3828_p9 }
  0x96   : > { %p3831_p5 = pnand %p3830_p1, %p3824_p0 }
  0x98   : > { %3834 = shalt.err (!%p3831_p5)
}
  0x99   : > { %s3835_s1 = scalar_lea.vmem %s4404_s7, 64  ;;  %s4107_s25 = smov [#allocation9]  }
  0x9a   : > { %p3836_p3 = scmp.ne.s32.totalorder %s4404_s7, %s3835_s1  ;;  %s3840_s26 = sshll.u32 %s4107_s25, 4  ;;  %s3841_s26 = int_to_ptr.vmem [resolvable:$false] %s3840_s26 }
  0x9b   : > { %s3842_s16 = scalar_lea.vmem %s3841_s26, 128  ;;  %p3843_p6 = scmp.lt.s32.totalorder %s4404_s7, %s3841_s26 }
  0x9c   : > { %p3838_p13 = pnand %p3836_p3, %p4414_p12  ;;  %p3844_p8 = scmp.lt.s32.totalorder %s3842_s16, %s3835_s1 }
  0x9e   : > { %p3839_p2 = pneg %p3838_p13  ;;  %p3845_p4 = por %p3844_p8, %p3843_p6 }
  0xa0   : > { %p3846_p7 = pnand %p3845_p4, %p3839_p2 }
  0xa2   : > { %3849 = shalt.err (!%p3846_p7)
}
  0xa3   : > { %3591 = dma.hbm_to_vmem [thread:$0]  (!%p4386_p11), %s4402_s5, 64, %s4404_s7, %s4408_s10  }
  0xa4   : > { %s4108_s22 = smov [#allocation17]   ;;  %s4109_s23 = smov [#allocation20]  }
  0xa5   : > { %s536_s14 = sshll.u32 %s4108_s22, 4  ;;  %s565_s4 = sshll.u32 %s4109_s23, 4  ;;  %s537_s14 = int_to_ptr.vmem [resolvable:$true] %s536_s14  ;;  %s566_s4 = int_to_ptr.vmem [resolvable:$true] %s565_s4 }
  0xa6   : > { %s4999_s9 = sld [smem:[#allocation43_spill]]  ;;  %p5000_p8 = scmp.ne.s32.totalorder %s4985_s13, 0 }
  0xac   : > { %s3850_s26 = scalar_lea.hbm %s4999_s9, 32 }
  0xad   : > { %p3851_p6 = scmp.ne.s32.totalorder %s4999_s9, %s3850_s26  ;;  %p3857_p1 = scmp.lt.u32.totalorder %s3850_s26, %s4999_s9 }
  0xaf   : > { %p3853_p2 = pnand %p3851_p6, %p5000_p8 }
  0xb1   : > { %p3854_p5 = pneg %p3853_p2 }
  0xb3   : > { %p3859_p0 = pnand %p3857_p1, %p3854_p5 }
  0xb5   : > { %3862 = shalt.err (!%p3859_p0)
}
  0xb6   : > { %s3863_s5 = scalar_lea.vmem %s537_s14, 32  ;;  %p3871_p13 = scmp.lt.s32.totalorder %s537_s14, %s537_s14 }
  0xb7   : > { %p3864_p9 = scmp.ne.s32.totalorder %s537_s14, %s3863_s5  ;;  %p3872_p4 = scmp.lt.s32.totalorder %s3863_s5, %s3863_s5 }
  0xb9   : > { %p3866_p10 = pnand %p3864_p9, %p5000_p8  ;;  %p3873_p7 = por %p3872_p4, %p3871_p13 }
  0xbb   : > { %p3867_p3 = pneg %p3866_p10 }
  0xbd   : > { %p3874_p11 = pnand %p3873_p7, %p3867_p3 }
  0xbf   : > { %3877 = shalt.err (!%p3874_p11)
}
  0xc0   : > { %p5001_p6 = scmp.ne.s32.totalorder %s4983_s21, 0  ;;  %s5002_s27 = smov 1  }
  0xc1   : > { %s5003_s7 = smov 16   ;;  %s3878_s25 = scalar_lea.hbm %s4926_s12, 256 }
  0xc2   : > { %3578 = dma.hbm_to_vmem [thread:$0]  (!%p5001_p6), %s4999_s9, 32, %s537_s14, [#allocation16], %s5003_s7, %s5003_s7, %s5002_s27  }
  0xc3   : > { %p3879_p2 = scmp.ne.s32.totalorder %s4926_s12, %s3878_s25  ;;  %p3885_p1 = scmp.lt.u32.totalorder %s3878_s25, %s4926_s12 }
  0xc5   : > { %p3881_p11 = pnand %p3879_p2, %p5000_p8 }
  0xc7   : > { %p3882_p5 = pneg %p3881_p11 }
  0xc9   : > { %p3887_p0 = pnand %p3885_p1, %p3882_p5 }
  0xcb   : > { %3890 = shalt.err (!%p3887_p0)
}
  0xcc   : > { %s3891_s6 = scalar_lea.vmem %s566_s4, 256  ;;  %p3899_p13 = scmp.lt.s32.totalorder %s566_s4, %s566_s4 }
  0xcd   : > { %p3892_p9 = scmp.ne.s32.totalorder %s566_s4, %s3891_s6  ;;  %p3900_p4 = scmp.lt.s32.totalorder %s3891_s6, %s3891_s6 }
  0xcf   : > { %p3894_p10 = pnand %p3892_p9, %p5000_p8  ;;  %p3901_p7 = por %p3900_p4, %p3899_p13 }
  0xd1   : > { %p3895_p3 = pneg %p3894_p10 }
  0xd3   : > { %p3902_p12 = pnand %p3901_p7, %p3895_p3 }
  0xd5   : > { %3905 = shalt.err (!%p3902_p12)
}
  0xd6   : > { %s5004_s14 = smov 4   ;;  %s5005_s27 = smov 64  }
  0xd7   : > { %3584 = dma.hbm_to_vmem [thread:$0]  (!%p5001_p6), %s4926_s12, 256, %s566_s4, [#allocation19], %s5005_s27, %s5005_s27, %s5004_s14  }
  0xd8   : > { %s3200_s13 = sshll.u32 %s4384_s11, 3  ;;  %s3201_s22 = sshll.u32 %s4094_s29, 7 }
  0xd9   : > { %s5006_s26 = sld [smem:[#allocation36_spill]]  ;;  %s598_s21 = scalar_lea.vmem [#allocation6], %s3200_s13 }
  0xda   : > { %s605_s16 = sshll.u32 %s598_s21, 4  ;;  %s5007_s7 = sld [smem:[#allocation38_spill]]  ;;  %s4487_s16 = int_to_ptr.vmem [resolvable:$true] %s605_s16 }
  0xdb   : > { %s595_s4 = scalar_lea.sflag [#allocation7], %s4384_s11  ;;  %p5008_p8 = scmp.ne.s32.totalorder %s4998_s17, 0 }
  0xdf   : > { %s4485_s1 = scalar_lea.hbm %s5006_s26, %s3201_s22  ;;  %s3911_s23 = scalar_lea.hbm %s5006_s26, 256 }
  0xe0   : > { %s4493_s18 = scalar_lea.hbm %s5007_s7, %s4395_s2  ;;  %s3906_s14 = scalar_lea.hbm %s4485_s1, 128 }
  0xe1   : > { %p3907_p12 = scmp.ne.s32.totalorder %s4485_s1, %s3906_s14  ;;  %p3912_p11 = scmp.lt.u32.totalorder %s4485_s1, %s5006_s26 }
  0xe2   : > { %p3913_p5 = scmp.lt.u32.totalorder %s3911_s23, %s3906_s14  ;;  %p3915_p0 = scmp.lt.u32.totalorder %s3906_s14, %s4485_s1 }
  0xe3   : > { %p3909_p6 = pnand %p3907_p12, %p5008_p8 }
  0xe4   : > { %p3914_p1 = por %p3913_p5, %p3912_p11 }
  0xe5   : > { %p3910_p2 = pneg %p3909_p6 }
  0xe6   : > { %p3916_p9 = por %p3915_p0, %p3914_p1 }
  0xe8   : > { %p3917_p10 = pnand %p3916_p9, %p3910_p2 }
  0xea   : > { %3920 = shalt.err (!%p3917_p10)
}
  0xeb   : > { %s3921_s11 = scalar_lea.vmem %s4487_s16, 128  ;;  %s4110_s21 = smov [#allocation6]  }
  0xec   : > { %p3922_p3 = scmp.ne.s32.totalorder %s4487_s16, %s3921_s11  ;;  %s3926_s5 = sshll.u32 %s4110_s21, 4  ;;  %s3927_s5 = int_to_ptr.vmem [resolvable:$false] %s3926_s5 }
  0xed   : > { %s3928_s6 = scalar_lea.vmem %s3927_s5, 256  ;;  %p3929_p7 = scmp.lt.s32.totalorder %s4487_s16, %s3927_s5 }
  0xee   : > { %p3924_p13 = pnand %p3922_p3, %p5008_p8  ;;  %p3930_p12 = scmp.lt.s32.totalorder %s3928_s6, %s3921_s11 }
  0xf0   : > { %p3925_p4 = pneg %p3924_p13  ;;  %p3931_p6 = por %p3930_p12, %p3929_p7 }
  0xf2   : > { %p3932_p11 = pnand %p3931_p6, %p3925_p4 }
  0xf4   : > { %3935 = shalt.err (!%p3932_p11)
}
  0xf5   : > { %p5009_p2 = scmp.ne.s32.totalorder %s4996_s20, 0  ;;  %s634_s14 = scalar_lea.vmem [#allocation11], %s4392_s24 }
  0xf6   : > { %s642_s27 = sshll.u32 %s634_s14, 4  ;;  %s4522_s25 = scalar_lea.hbm %s4917_s3, %s4395_s2  ;;  %s643_s27 = int_to_ptr.vmem [resolvable:$true] %s642_s27 }
  0xf7   : > { %3588 = dma.hbm_to_vmem [thread:$0]  (!%p5009_p2), %s4485_s1, 128, %s4487_s16, %s595_s4  }
  0xf8   : > { %s3936_s13 = scalar_lea.hbm %s4493_s18, 64  ;;  %s3941_s5 = scalar_lea.hbm %s5007_s7, 128 }
  0xf9   : > { %p3937_p5 = scmp.ne.s32.totalorder %s4493_s18, %s3936_s13  ;;  %p3942_p9 = scmp.lt.u32.totalorder %s4493_s18, %s5007_s7 }
  0xfa   : > { %p3943_p10 = scmp.lt.u32.totalorder %s3941_s5, %s3936_s13  ;;  %p3945_p13 = scmp.lt.u32.totalorder %s3936_s13, %s4493_s18 }
  0xfb   : > { %p3939_p1 = pnand %p3937_p5, %p5008_p8 }
  0xfc   : > { %p3944_p3 = por %p3943_p10, %p3942_p9 }
  0xfd   : > { %p3940_p0 = pneg %p3939_p1 }
  0xfe   : > { %p3946_p4 = por %p3945_p13, %p3944_p3 }
 0x100   : > { %p3947_p7 = pnand %p3946_p4, %p3940_p0 }
 0x102   : > { %3950 = shalt.err (!%p3947_p7)
}
 0x103   : > { %s3951_s2 = scalar_lea.vmem %s643_s27, 64  ;;  %s4111_s1 = smov [#allocation11]  }
 0x104   : > { %p3952_p12 = scmp.ne.s32.totalorder %s643_s27, %s3951_s2  ;;  %s3956_s16 = sshll.u32 %s4111_s1, 4  ;;  %s3957_s16 = int_to_ptr.vmem [resolvable:$false] %s3956_s16 }
 0x105   : > { %s3958_s4 = scalar_lea.vmem %s3957_s16, 128  ;;  %p3959_p5 = scmp.lt.s32.totalorder %s643_s27, %s3957_s16 }
 0x106   : > { %p3954_p6 = pnand %p3952_p12, %p5008_p8  ;;  %p3960_p1 = scmp.lt.s32.totalorder %s3958_s4, %s3951_s2 }
 0x108   : > { %p3955_p11 = pneg %p3954_p6  ;;  %p3961_p2 = por %p3960_p1, %p3959_p5 }
 0x10a   : > { %p3962_p9 = pnand %p3961_p2, %p3955_p11 }
 0x10c   : > { %3965 = shalt.err (!%p3962_p9)
}
 0x10d   : > { %p5010_p10 = scmp.ne.s32.totalorder %s4996_s20, 0  ;;  %s653_s9 = scalar_lea.vmem [#allocation12], %s4392_s24 }
 0x10e   : > { %s661_s14 = sshll.u32 %s653_s9, 4  ;;  %s5011_s22 = sand.u32 1, %s4098_s30   ;;  %s662_s14 = int_to_ptr.vmem [resolvable:$true] %s661_s14 }
 0x10f   : > { %3594 = dma.hbm_to_vmem [thread:$0]  (!%p5010_p10), %s4493_s18, 64, %s643_s27, %s4408_s10  }
 0x110   : > { %s650_s23 = scalar_lea.sflag [#allocation13], %s5011_s22  ;;  %s3966_s13 = scalar_lea.hbm %s4522_s25, 64 }
 0x111   : > { %p3967_p2 = scmp.ne.s32.totalorder %s4522_s25, %s3966_s13  ;;  %s3971_s5 = scalar_lea.hbm %s4917_s3, 128 }
 0x112   : > { %p3972_p13 = scmp.lt.u32.totalorder %s4522_s25, %s4917_s3  ;;  %p3973_p4 = scmp.lt.u32.totalorder %s3971_s5, %s3966_s13 }
 0x113   : > { %p3969_p0 = pnand %p3967_p2, %p5008_p8  ;;  %p3975_p12 = scmp.lt.u32.totalorder %s3966_s13, %s4522_s25 }
 0x114   : > { %p3974_p7 = por %p3973_p4, %p3972_p13 }
 0x115   : > { %p3970_p3 = pneg %p3969_p0 }
 0x116   : > { %p3976_p6 = por %p3975_p12, %p3974_p7 }
 0x118   : > { %p3977_p11 = pnand %p3976_p6, %p3970_p3 }
 0x11a   : > { %3980 = shalt.err (!%p3977_p11)
}
 0x11b   : > { %s3981_s10 = scalar_lea.vmem %s662_s14, 64  ;;  %s4112_s24 = smov [#allocation12]  }
 0x11c   : > { %p3982_p5 = scmp.ne.s32.totalorder %s662_s14, %s3981_s10  ;;  %s3986_s18 = sshll.u32 %s4112_s24, 4  ;;  %s3987_s18 = int_to_ptr.vmem [resolvable:$false] %s3986_s18 }
 0x11d   : > { %s3988_s27 = scalar_lea.vmem %s3987_s18, 128  ;;  %p3989_p2 = scmp.lt.s32.totalorder %s662_s14, %s3987_s18 }
 0x11e   : > { %p3984_p1 = pnand %p3982_p5, %p5008_p8  ;;  %p3990_p0 = scmp.lt.s32.totalorder %s3988_s27, %s3981_s10 }
 0x120   : > { %p3985_p9 = pneg %p3984_p1  ;;  %p3991_p10 = por %p3990_p0, %p3989_p2 }
 0x122   : > { %p3992_p4 = pnand %p3991_p10, %p3985_p9 }
 0x124   : > { %3995 = shalt.err (!%p3992_p4)
}
 0x125   : > { %p5012_p13 = scmp.ne.s32.totalorder %s4996_s20, 0  ;;  %p5013_p3 = scmp.ne.s32.totalorder %s4982_s19, 0 }
 0x126   : > { %s4565_s17 = sand.u32 (!%p5013_p3), 1, %s4082_s28   ;;  %p5014_p8 = scmp.ne.s32.totalorder (!%p5013_p3), %s4990_s15, 0 }
 0x127   : > { %3597 = dma.hbm_to_vmem [thread:$0]  (!%p5012_p13), %s4522_s25, 64, %s662_s14, %s650_s23  }
 0x128   : > { %670 = sbr.rel (%p5013_p3) target bundleno = 4987 (0x137b), region = 92  ;;  %s3209_s1 = sshll.u32 (!%p5013_p3), %s4565_s17, 3 }
 0x129   : > { %s673_s16 = scalar_lea.sflag (!%p5013_p3), [#allocation7], %s4565_s17  ;;  %s676_s4 = scalar_lea.vmem (!%p5013_p3), [#allocation6], %s3209_s1 }
 0x12f   : > { %4049 = dma.done.wait (%p5014_p8), %s673_s16, 128  }
 0x130   : > { %4051 = vsyncadd (%p5014_p8), %s673_s16, 4294967168  ;;  %s681_s19 = sand.u32 1, %s4246_s0   ;;  %s4577_s20 = sshll.u32 %s4565_s17, 2 }
 0x131   : > { %s682_s25 = scalar_lea.sflag [#allocation10], %s681_s19  ;;  %s685_s9 = scalar_lea.vmem [#allocation9], %s4577_s20 }
 0x132   : > { %4053 = dma.done.wait (%p5014_p8), %s682_s25, 128  }
 0x133   : > { %4055 = vsyncadd (%p5014_p8), %s682_s25, 4294967168  ;;  %s694_s14 = scalar_lea.vmem [#allocation11], %s4577_s20  ;;  %s700_s22 = scalar_lea.sflag [#allocation13], %s681_s19 }
 0x134   : > { %s703_s23 = scalar_lea.vmem [#allocation12], %s4577_s20 }
 0x135   : > { %4057 = dma.done.wait (%p5014_p8), %s700_s22, 64  }
 0x136   : > { %4059 = vsyncadd (%p5014_p8), %s700_s22, 4294967232  ;;  %p5015_p10 = scmp.eq.s32.totalorder %s4246_s0, 0 }
 0x138   : > { %4061 = dma.done.wait (%p5015_p10), [#allocation13], 48   ;;  %p5016_p7 = pmov %p5015_p10 }
 0x13a   : > { %4063 = vsyncadd (%p5016_p7), [#allocation13], 4294967248  ;;  %p5017_p12 = pmov %p5016_p7 }
 0x13b   : > { %p5018_p6 = pmov %p5016_p7 }
 0x13c   : > { %4065 = dma.done.wait (%p5017_p12), [#allocation16], 80  }
 0x13d   : > { %4067 = vsyncadd (%p5018_p6), [#allocation16], 4294967216  ;;  %p5019_p11 = pmov %p5018_p6 }
 0x13e   : > { %p5020_p5 = pmov %p5018_p6 }
 0x13f   : > { %4069 = dma.done.wait (%p5019_p11), [#allocation19], 768  }
 0x140   : > { %4071 = vsyncadd (%p5020_p5), [#allocation19], 4294966528  ;;  %vm799_vm0 = vcmask 261120   ;;  %v4602_v0 = vld [vmem:[%s676_s4] sm:$0xff]  ;;  %v4113_v13 = vmov 0.0   ;;  %vm4114_vm1 = vmmov 0  }
 0x141   : > { %v800_v1 = vsel %vm799_vm0, %v4602_v0, 0.0  ;;  %v3678_v12 = vld [vmem:[%s4922_s8] sm:$0xff]   ;;  %3375 = vmatprep.subr.bf16.mxu0 %v4113_v13  ;;  %3383 = vmatprep.subr.bf16.mxu1 %v4113_v13  ;;  %v3679_v14 = vld [vmem:[%s4922_s8 + $0x8] sm:$0xff]   ;;  %s5021_s6 = sld [smem:[#allocation41_spill]]  ;;  %v3682_v35 = vld [vmem:[%s4922_s8 + $0x10] sm:$0xff]   ;;  %s5022_s4 = sld [smem:[#allocation42_spill]] }
 0x142   : > { %801 = vadd.xlane.f32.xlu0 %v800_v1  ;;  %3376 = vmatpush3.bf16.msra.mxu0 %v3678_v12  ;;  %v3219_v22 = vld [vmem:[#allocation14] ss:$0 sm:$0xff]  ;;  %v3220_v24 = vld [vmem:[#allocation15] ss:$0 sm:$0xff]  ;;  %v3221_v36 = vld [vmem:[#allocation17] ss:$0 sm:$0xff] }
 0x143   : > { %3377 = vmatprep.subr.bf16.mxu0 %v4113_v13  ;;  %3379 = vmatprep.mubr.msk.bf16.mxu0 %vm4114_vm1, %v4113_v13  ;;  %v3683_v51 = vld [vmem:[%s4922_s8 + $0x18] sm:$0xff]   ;;  %v1097_v52 = vld [vmem:[%s685_s9] sm:$0xf]  ;;  %vm990_vm2 = vcmask 60416   ;;  %vm1580_vm3 = vcmask 64512   ;;  %s4115_s9 = smov 96  }
 0x144   : > { %3387 = vmatprep.mubr.msk.bf16.mxu1 %vm4114_vm1, %v4113_v13  ;;  %3384 = vmatpush3.bf16.msra.mxu1 %v3682_v35  ;;  %vm1816_vm4 = vcmask 1043456   ;;  %s4117_s22 = smov 16   ;;  %s4118_s0 = smov 24   ;;  %vm2014_vm5 = vcmask 130048   ;;  %vm2017_vm6 = vcmask 195584   ;;  %vm2926_vm7 = vcmask 523264  }
 0x145   : > { %3385 = vmatprep.subr.bf16.mxu1 %v4113_v13  ;;  %s5023_s11 = sld [smem:[#allocation45_spill]]  ;;  %s5024_s19 = sld [smem:[#allocation47_spill]] }
 0x146   : > { %1382 = vadd.xlane.f32.xlu0 %v800_v1  ;;  %3378 = vmatpush3.bf16.msra.mxu0 %v3679_v14  ;;  %s5026_s2 = sld [smem:[#allocation46_spill]]  ;;  %s5027_s18 = sld [smem:[#allocation48_spill]] }
 0x147   : > { %3391 = vmatprep.subr.bf16.mxu0 %v4113_v13  ;;  %v3680_v29 = vld [vmem:[%s5021_s6] sm:$0xff]   ;;  %v3681_v32 = vld [vmem:[%s5021_s6 + $0x8] sm:$0xff]   ;;  %s5028_s20 = sld [smem:[#allocation33_spill]]  ;;  %s790_s27 = scalar_lea.vmem [#allocation21], %s3209_s1 }
 0x148   : > { %v3253_v43 = vld [vmem:[%s5022_s4] ss:$0 sm:$0xff]  ;;  %3386 = vmatpush3.bf16.msra.mxu1 %v3683_v51  ;;  %s2995_s16 = sshll.u32 %s790_s27, 4  ;;  %s4119_s15 = smov [#allocation21]   ;;  %s4866_s16 = int_to_ptr.vmem [resolvable:$true] %s2995_s16 }
 0x149   : > { %3399 = vmatprep.subr.bf16.mxu1 %v4113_v13  ;;  %s3996_s1 = scalar_lea.vmem %s4866_s16, 128  ;;  %s4000_s13 = sshll.u32 %s4119_s15, 4  ;;  %s4001_s13 = int_to_ptr.vmem [resolvable:$false] %s4000_s13 }
 0x14a   : > { %p3997_p1 = scmp.ne.s32.totalorder %s4866_s16, %s3996_s1  ;;  %s4002_s21 = scalar_lea.vmem %s4001_s13, 256 }
 0x14b   : > { %3388 = vmatmul.mubr.msk.bf16.vlgmr.msra.gmra.mrb[0].mxu1 %vm799_vm0, %v1097_v52  ;;  %p4003_p4 = scmp.lt.s32.totalorder %s4866_s16, %s4001_s13  ;;  %p4004_p13 = scmp.lt.s32.totalorder %s4002_s21, %s3996_s1 }
 0x14c   : > { %3401 = vmatprep.mubr.msk.bf16.mxu1 %vm4114_vm1, %v4113_v13 }
 0x14d   : > { %p5030_p9 = scmp.ne.s32.totalorder %s5028_s20, 0  ;;  %p4005_p3 = por %p4004_p13, %p4003_p4 }
 0x14f   : > { %p3998_p2 = pnand %p3997_p1, %p5030_p9 }
 0x151   : > { %p3999_p0 = pneg %p3998_p2 }
 0x153   : > { %p4006_p8 = pnand %p4005_p3, %p3999_p0 }
 0x1cf   : > { %v802_v2 = vpop.xlane.xlu0 %801 }
 0x1d0   : > { %v804_v3 = vmul.f32 0.03125, %v802_v2 }
 0x1d2   : > { %v805_v4 = vsub.f32 %v4602_v0, %v804_v3 }
 0x1d3   : > { %v1383_v5 = vpop.xlane.xlu0 %1382 }
 0x1d4   : > { %v1385_v6 = vmul.f32 0.03125, %v1383_v5  ;;  %v806_v7 = vmul.f32 %v805_v4, %v805_v4 }
 0x1d6   : > { %v1386_v8 = vsub.f32 %v4602_v0, %v1385_v6  ;;  %v807_v9 = vsel %vm799_vm0, %v806_v7, 0.0 }
 0x1d7   : > { %808 = vadd.xlane.f32.xlu1 %v807_v9 }
 0x1d8   : > { %v1387_v10 = vmul.f32 %v1386_v8, %v1386_v8 }
 0x1da   : > { %v1388_v11 = vsel %vm799_vm0, %v1387_v10, 0.0 }
 0x1db   : > { %1389 = vadd.xlane.f32.xlu1 %v1388_v11 }
 0x264   : > { %v809_v15 = vpop.xlane.xlu1 %808 }
 0x265   : > { %v810_v16 = vmul.f32 0.03125, %v809_v15 }
 0x267   : > { %v811_v17 = vadd.f32 1e-05, %v810_v16 }
 0x268   : > { %v1390_v18 = vpop.xlane.xlu1 %1389 }
 0x269   : > { %3696 = vrsqrt.f32 %v811_v17  ;;  %v1391_v19 = vmul.f32 0.03125, %v1390_v18 }
 0x26b   : > { %v1392_v20 = vadd.f32 1e-05, %v1391_v19  ;;  %v4681_v19 = vpop.f32.mrb[0].mxu1 }
 0x26d   : > { %3698 = vrsqrt.f32 %v1392_v20  ;;  %v3389_v20 = vpop.f32.mrb[1].mxu1 }
 0x273   : > { %v3697_v21 = vpop.eup %3696 }
 0x274   : > { %v813_v23 = vmul.f32 %v3697_v21, %v805_v4  ;;  %v1163_v21 = vpop.f32.mrb[2].mxu1 }
 0x276   : > { %v820_v25 = vmul.f32 %v3219_v22, %v813_v23  ;;  %v1370_v23 = vld [vmem:[%s694_s14] sm:$0xf]  ;;  %s4116_s14 = smov 8  }
 0x277   : > { %v3699_v26 = vpop.eup %3698 }
 0x278   : > { %v1394_v27 = vmul.f32 %v3699_v26, %v1386_v8  ;;  %v827_v28 = vadd.f32 %v3220_v24, %v820_v25 }
 0x27a   : > { %v828_v30 = vpack.c.bf16 %v827_v28, %v827_v28  ;;  %v1401_v31 = vmul.f32 %v3219_v22, %v1394_v27  ;;  %v3390_v22 = vpop.f32.mrb[3].mxu1 }
 0x27c   : > { %3380 = vmatmul.mubr.msk.bf16.vlgmr.msra.gmra.mrb[0].mxu0 %vm799_vm0, %v828_v30  ;;  %v1408_v33 = vadd.f32 %v3220_v24, %v1401_v31  ;;  %v1371_v24 = vunpack.c.l.bf16 %v1370_v23 }
 0x27d   : > { %3392 = vmatpush3.bf16.msra.mxu0 %v3680_v29  ;;  %3395 = vmatprep.mubr.msk.bf16.mxu0 %vm4114_vm1, %v4113_v13 }
 0x27e   : > { %3393 = vmatprep.subr.bf16.mxu0 %v4113_v13  ;;  %v1409_v34 = vpack.c.bf16 %v1408_v33, %v1408_v33  ;;  %v3249_v25 = vadd.f32 -1.0, %v1371_v24 }
 0x280   : > { %v1373_v26 = vmul.f32 1e+09, %v3249_v25 }
 0x281   : > { %3394 = vmatpush3.bf16.msra.mxu0 %v3681_v32 }
 0x282   : > { %3405 = vmatprep.subr.bf16.mxu0 %v4113_v13 }
 0x284   : > { %3396 = vmatmul.mubr.msk.bf16.vlgmr.msra.gmra.mrb[4].mxu0 %vm799_vm0, %v1409_v34 }
 0x285   : > { %3407 = vmatprep.mubr.msk.bf16.mxu0 %vm4114_vm1, %v4113_v13 }
 0x34f   : > { %v889_v37 = vpop.f32.mrb[0].mxu0 }
 0x350   : > { %v890_v38 = vadd.f32 %v3221_v36, %v889_v37  ;;  %v3381_v39 = vpop.f32.mrb[1].mxu0 }
 0x351   : > { %v892_v40 = vpop.f32.mrb[2].mxu0 }
 0x352   : > { %v4642_v41 = vpack.c.bf16 %v890_v38, %v890_v38  ;;  %v3382_v42 = vpop.f32.mrb[3].mxu0 }
 0x354   : > { %896 = vxpose.xlu0.c.b16.start.end [1/1] (short) (narrow) %v4642_v41, 32 }
 0x357   : > { %v1470_v44 = vpop.f32.mrb[4].mxu0 }
 0x358   : > { %v1471_v45 = vadd.f32 %v3253_v43, %v1470_v44  ;;  %v3397_v46 = vpop.f32.mrb[5].mxu0 }
 0x359   : > { %v1473_v47 = vpop.f32.mrb[6].mxu0 }
 0x35a   : > { %v1476_v48 = vmul.f32 0.35355338, %v1471_v45  ;;  %v3398_v49 = vpop.f32.mrb[7].mxu0 }
 0x35c   : > { %v1477_v50 = vpack.c.bf16 %v1476_v48, %v1476_v48 }
 0x35e   : > { %1478 = vxpose.xlu1.c.b16.start.end [1/1] (short) (narrow) %v1477_v50, 32 }
 0x3ba   : > { %v904_v53 = vpop.trf.xlu0 }
 0x3bb   : > { %v3226_v54 = vcombine.high %v904_v53, %v904_v53  ;;  %v3225_v55 = vcombine.low %v904_v53, %v904_v53 }
 0x3bd   : > { %942 = vxpose.xlu1.c.b16.start.end [1/1] (short) (narrow) %v3226_v54, 16  ;;  %926 = vxpose.xlu0.c.b16.start.end [1/1] (short) (narrow) %v3225_v55, 16 }
 0x3be   : > { %v905_v56 = vpop.trf.xlu0 }
 0x3bf   : > { %v3228_v57 = vcombine.high %v905_v56, %v905_v56  ;;  %v3227_v58 = vcombine.low %v905_v56, %v905_v56 }
 0x3c1   : > { %974 = vxpose.xlu1.c.b16.start.end [1/1] (short) (narrow) %v3228_v57, 16  ;;  %958 = vxpose.xlu0.c.b16.start.end [1/1] (short) (narrow) %v3227_v58, 16 }
 0x3c4   : > { %v1486_v59 = vpop.trf.xlu1 }
 0x3c5   : > { %v3258_v60 = vcombine.high %v1486_v59, %v1486_v59  ;;  %v3257_v61 = vcombine.low %v1486_v59, %v1486_v59 }
 0x3c7   : > { %1524 = vxpose.xlu1.c.b16.start.end [1/1] (short) (narrow) %v3258_v60, 16  ;;  %1508 = vxpose.xlu0.c.b16.start.end [1/1] (short) (narrow) %v3257_v61, 16 }
 0x3c8   : > { %v1487_v62 = vpop.trf.xlu1 }
 0x3c9   : > { %v3260_v63 = vcombine.high %v1487_v62, %v1487_v62  ;;  %v3259_v1 = vcombine.low %v1487_v62, %v1487_v62 }
 0x3cb   : > { %1556 = vxpose.xlu1.c.b16.start.end [1/1] (short) (narrow) %v3260_v63, 16  ;;  %1540 = vxpose.xlu0.c.b16.start.end [1/1] (short) (narrow) %v3259_v1, 16 }
 0x423   : > { %v950_v2 = vpop.trf.xlu1  ;;  %v934_v3 = vpop.trf.xlu0 }
 0x424   : > { %992 = vst.msk [vmem:[#allocation2 + $0x4] sm:$0xf] %vm990_vm2, %v950_v2  ;;  %991 = vst.msk [vmem:[#allocation2] sm:$0xf] %vm990_vm2, %v934_v3 }
 0x427   : > { %v982_v4 = vpop.trf.xlu1  ;;  %v966_v5 = vpop.trf.xlu0 }
 0x428   : > { %994 = vst.msk [vmem:[#allocation2 + $0xc] sm:$0xf] %vm990_vm2, %v982_v4  ;;  %993 = vst.msk [vmem:[#allocation2 + $0x8] sm:$0xf] %vm990_vm2, %v966_v5 }
 0x42b   : > { %v1572_v6 = vld [vmem:[#allocation2] sm:$0xf]  ;;  %v1573_v7 = vld [vmem:[#allocation2 + $0x4] sm:$0xf] }
 0x42c   : > { %v1585_v8 = vsel %vm1580_vm3, %v1572_v6, 0  ;;  %v1631_v9 = vsel %vm1580_vm3, %v1573_v7, 0 }
 0x42d   : > { %3400 = vmatpush3.bf16.xpose.msra.mxu1 %v1585_v8  ;;  %3406 = vmatpush3.bf16.xpose.msra.mxu0 %v1631_v9  ;;  %v1532_v12 = vpop.trf.xlu1  ;;  %v1516_v14 = vpop.trf.xlu0 }
 0x42e   : > { %3411 = vmatprep.subr.bf16.mxu1 %v4113_v13  ;;  %3417 = vmatprep.subr.bf16.mxu0 %v4113_v13 }
 0x42f   : > { %v1574_v10 = vld [vmem:[#allocation2 + $0x8] sm:$0xf]  ;;  %v1575_v11 = vld [vmem:[#allocation2 + $0xc] sm:$0xf] }
 0x430   : > { %v1677_v15 = vsel %vm1580_vm3, %v1574_v10, 0  ;;  %v1723_v16 = vsel %vm1580_vm3, %v1575_v11, 0 }
 0x431   : > { %v1564_v17 = vpop.trf.xlu1  ;;  %v1548_v18 = vpop.trf.xlu0 }
 0x434   : > { %3402 = vmatmul.mubr.msk.bf16.vlgmr.msra.gmra.mrb[4].mxu1 %vm1580_vm3, %v1516_v14  ;;  %3408 = vmatmul.mubr.msk.bf16.vlgmr.msra.gmra.mrb[8].mxu0 %vm1580_vm3, %v1532_v12 }
 0x435   : > { %3412 = vmatpush3.bf16.xpose.msra.mxu1 %v1677_v15  ;;  %3418 = vmatpush3.bf16.xpose.msra.mxu0 %v1723_v16 }
 0x436   : > { %3419 = vmatprep.mubr.msk.bf16.mxu0 %vm4114_vm1, %v4113_v13  ;;  %3413 = vmatprep.mubr.msk.bf16.mxu1 %vm4114_vm1, %v4113_v13 }
 0x437   : > { %3423 = vmatprep.subr.bf16.mxu1 %v4113_v13  ;;  %3429 = vmatprep.subr.bf16.mxu0 %v4113_v13 }
 0x43c   : > { %3414 = vmatmul.mubr.msk.bf16.vlgmr.msra.gmra.mrb[8].mxu1 %vm1580_vm3, %v1548_v18  ;;  %3420 = vmatmul.mubr.msk.bf16.vlgmr.msra.gmra.mrb[12].mxu0 %vm1580_vm3, %v1564_v17 }
 0x43d   : > { %3425 = vmatprep.mubr.msk.bf16.mxu1 %vm4114_vm1, %v4113_v13  ;;  %3431 = vmatprep.mubr.msk.bf16.mxu0 %vm4114_vm1, %v4113_v13 }
 0x507   : > { %v1621_v27 = vpop.f32.mrb[4].mxu1  ;;  %v1667_v28 = vpop.f32.mrb[8].mxu0 }
 0x508   : > { %v1622_v29 = vadd.f32 %v1621_v27, %v1373_v26  ;;  %v1668_v30 = vadd.f32 %v1667_v28, %v1373_v26  ;;  %v3403_v31 = vpop.f32.mrb[5].mxu1  ;;  %v3409_v32 = vpop.f32.mrb[9].mxu0 }
 0x509   : > { %v1624_v33 = vpop.f32.mrb[6].mxu1  ;;  %v1670_v34 = vpop.f32.mrb[10].mxu0 }
 0x50a   : > { %v3404_v35 = vpop.f32.mrb[7].mxu1  ;;  %v1768_v36 = vsel %vm1580_vm3, %v1668_v30, -inf  ;;  %v1765_v37 = vsel %vm1580_vm3, %v1622_v29, -inf  ;;  %v3410_v38 = vpop.f32.mrb[11].mxu0 }
 0x50b   : > { %1769 = vmax.xlane.f32.xlu1 %v1768_v36  ;;  %1766 = vmax.xlane.f32.xlu0 %v1765_v37 }
 0x50f   : > { %v1713_v39 = vpop.f32.mrb[8].mxu1  ;;  %v1759_v40 = vpop.f32.mrb[12].mxu0 }
 0x510   : > { %v1714_v42 = vadd.f32 %v1713_v39, %v1373_v26  ;;  %v1760_v43 = vadd.f32 %v1759_v40, %v1373_v26  ;;  %v3415_v44 = vpop.f32.mrb[9].mxu1  ;;  %v3421_v45 = vpop.f32.mrb[13].mxu0 }
 0x511   : > { %v1716_v46 = vpop.f32.mrb[10].mxu1  ;;  %v1762_v47 = vpop.f32.mrb[14].mxu0 }
 0x512   : > { %v3416_v48 = vpop.f32.mrb[11].mxu1  ;;  %v1774_v49 = vsel %vm1580_vm3, %v1760_v43, -inf  ;;  %v1771_v50 = vsel %vm1580_vm3, %v1714_v42, -inf  ;;  %v3422_v51 = vpop.f32.mrb[15].mxu0  ;;  %v3684_v46 = vld [vmem:[#allocation18] sm:$0xff]  }
 0x513   : > { %1775 = vmax.xlane.f32.xlu1 %v1774_v49  ;;  %1772 = vmax.xlane.f32.xlu0 %v1771_v50  ;;  %v3685_v50 = vld [vmem:[#allocation18 + $0x8] sm:$0xff]  }
 0x529   : > { %996 = vrot.lane.b32.xlu0 %v4642_v41, %s4115_s9 }
 0x598   : > { %v1767_v52 = vpop.xlane.xlu0 %1766  ;;  %v1770_v55 = vpop.xlane.xlu1 %1769 }
 0x599   : > { %v1778_v56 = vsub.f32 %v1668_v30, %v1770_v55  ;;  %v1777_v57 = vsub.f32 %v1622_v29, %v1767_v52 }
 0x59b   : > { %v1783_v59 = vmul.f32 1.442695, %v1778_v56  ;;  %v1781_v60 = vmul.f32 1.442695, %v1777_v57 }
 0x59d   : > { %3700 = vpow2.f32 %v1783_v59 }
 0x59e   : > { %3702 = vpow2.f32 %v1781_v60 }
 0x5a0   : > { %v1773_v53 = vpop.xlane.xlu0 %1772  ;;  %v1776_v58 = vpop.xlane.xlu1 %1775 }
 0x5a1   : > { %v1779_v61 = vsub.f32 %v1714_v42, %v1773_v53  ;;  %v1780_v2 = vsub.f32 %v1760_v43, %v1776_v58 }
 0x5a3   : > { %v1785_v3 = vmul.f32 1.442695, %v1779_v61  ;;  %v1787_v41 = vmul.f32 1.442695, %v1780_v2 }
 0x5a4   : > { %v997_v54 = vpop.permute.xlu0 %996 }
 0x5a5   : > { %999 = vxpose.xlu1.c.b16.start.end [1/1] (short) (narrow) %v997_v54, 32  ;;  %3704 = vpow2.f32 %v1785_v3 }
 0x5a6   : > { %3706 = vpow2.f32 %v1787_v41 }
 0x5a7   : > { %v3701_v4 = vpop.eup %3700 }
 0x5a8   : > { %v3703_v5 = vpop.eup %3702  ;;  %v1792_v6 = vsel %vm1580_vm3, %v3701_v4, 0.0 }
 0x5a9   : > { %v1789_v7 = vsel %vm1580_vm3, %v3703_v5, 0.0 }
 0x5af   : > { %v3705_v8 = vpop.eup %3704 }
 0x5b0   : > { %v1795_v9 = vsel %vm1580_vm3, %v3705_v8, 0.0  ;;  %v3707_v10 = vpop.eup %3706 }
 0x5b1   : > { %v1798_v11 = vsel %vm1580_vm3, %v3707_v10, 0.0 }
 0x60b   : > { %v1007_v62 = vpop.trf.xlu1 }
 0x60c   : > { %v3229_v63 = vcombine.low %v1007_v62, %v1007_v62  ;;  %v3230_v1 = vcombine.high %v1007_v62, %v1007_v62 }
 0x60e   : > { %1045 = vxpose.xlu1.c.b16.start.end [1/1] (short) (narrow) %v3230_v1, 16  ;;  %1029 = vxpose.xlu0.c.b16.start.end [1/1] (short) (narrow) %v3229_v63, 16 }
 0x60f   : > { %v1008_v12 = vpop.trf.xlu1 }
 0x610   : > { %v3232_v14 = vcombine.high %v1008_v12, %v1008_v12  ;;  %v3231_v15 = vcombine.low %v1008_v12, %v1008_v12 }
 0x61b   : > { %1793 = vadd.xlane.f32.xlu1 %v1792_v6  ;;  %1790 = vadd.xlane.f32.xlu0 %v1789_v7 }
 0x61f   : > { %1796 = vadd.xlane.f32.xlu0 %v1795_v9 }
 0x623   : > { %1799 = vadd.xlane.f32.xlu0 %v1798_v11 }
 0x648   : > { %1077 = vxpose.xlu1.c.b16.start.end [1/1] (short) (narrow) %v3232_v14, 16 }
 0x650   : > { %1061 = vxpose.xlu0.c.b16.start.end [1/1] (short) (narrow) %v3231_v15, 16 }
 0x674   : > { %v1037_v16 = vpop.trf.xlu0  ;;  %v1053_v17 = vpop.trf.xlu1 }
 0x675   : > { %1093 = vst.msk [vmem:[#allocation3] sm:$0xf] %vm990_vm2, %v1037_v16  ;;  %1094 = vst.msk [vmem:[#allocation3 + $0x4] sm:$0xf] %vm990_vm2, %v1053_v17 }
 0x67c   : > { %v1576_v18 = vld [vmem:[#allocation3] sm:$0xf]  ;;  %v1577_v20 = vld [vmem:[#allocation3 + $0x4] sm:$0xf] }
 0x67d   : > { %v1818_v21 = vsel %vm1816_vm4, %v1576_v18, 0  ;;  %v1864_v22 = vsel %vm1816_vm4, %v1577_v20, 0  ;;  %v3237_v20 = vld [vmem:[#allocation17 + $0x1] ss:$0 sm:$0xff] }
 0x67e   : > { %3424 = vmatpush3.bf16.msra.mxu1 %v1818_v21  ;;  %3430 = vmatpush3.bf16.msra.mxu0 %v1864_v22  ;;  %v1161_v21 = vadd.f32 %v3237_v20, %v4681_v19  ;;  %v3687_v19 = vld [vmem:[%s5021_s6 + $0x18] sm:$0xff]  }
 0x67f   : > { %3441 = vmatprep.subr.bf16.mxu0 %v4113_v13  ;;  %3435 = vmatprep.subr.bf16.mxu1 %v4113_v13 }
 0x680   : > { %v4739_v22 = vpack.c.bf16 %v1161_v21, %v1161_v21 }
 0x6a8   : > { %v1791_v23 = vpop.xlane.xlu0 %1790  ;;  %v1794_v24 = vpop.xlane.xlu1 %1793 }
 0x6a9   : > { %3708 = vrcp.f32 %v1791_v23 }
 0x6aa   : > { %3710 = vrcp.f32 %v1794_v24 }
 0x6ac   : > { %v1797_v25 = vpop.xlane.xlu0 %1796 }
 0x6ad   : > { %3712 = vrcp.f32 %v1797_v25 }
 0x6ae   : > { %v1085_v26 = vpop.trf.xlu1 }
 0x6af   : > { %1096 = vst.msk [vmem:[#allocation3 + $0xc] sm:$0xf] %vm990_vm2, %v1085_v26 }
 0x6b0   : > { %v1800_v27 = vpop.xlane.xlu0 %1799 }
 0x6b1   : > { %3714 = vrcp.f32 %v1800_v27  ;;  %v3686_v27 = vld [vmem:[%s5021_s6 + $0x10] sm:$0xff]  }
 0x6b3   : > { %v3709_v28 = vpop.eup %3708 }
 0x6b4   : > { %v3711_v29 = vpop.eup %3710  ;;  %v1802_v30 = vmul.f32 %v3709_v28, %v3703_v5 }
 0x6b5   : > { %v1804_v31 = vmul.f32 %v3711_v29, %v3701_v4 }
 0x6b6   : > { %v1069_v32 = vpop.trf.xlu0  ;;  %v1809_v33 = vpack.c.bf16 %v1802_v30, %v1802_v30  ;;  %v1579_v34 = vld [vmem:[#allocation3 + $0xc] sm:$0xf] }
 0x6b7   : > { %1095 = vst.msk [vmem:[#allocation3 + $0x8] sm:$0xf] %vm990_vm2, %v1069_v32  ;;  %v1810_v35 = vpack.c.bf16 %v1804_v31, %v1804_v31  ;;  %v1956_v36 = vsel %vm1816_vm4, %v1579_v34, 0  ;;  %v3713_v37 = vpop.eup %3712  ;;  %v3273_v32 = vld [vmem:[#allocation14 + $0x1] ss:$0 sm:$0xff] }
 0x6b8   : > { %3426 = vmatmul.mubr.msk.bf16.vlgmr.msra.gmra.mrb[12].mxu1 %vm1580_vm3, %v1809_v33  ;;  %v1806_v40 = vmul.f32 %v3713_v37, %v3705_v8  ;;  %v3274_v34 = vld [vmem:[#allocation15 + $0x1] ss:$0 sm:$0xff] }
 0x6b9   : > { %3432 = vmatmul.mubr.msk.bf16.vlgmr.msra.gmra.mrb[16].mxu0 %vm1580_vm3, %v1810_v35  ;;  %3437 = vmatprep.mubr.msk.bf16.mxu1 %vm4114_vm1, %v4113_v13 }
 0x6ba   : > { %3442 = vmatpush3.bf16.msra.mxu0 %v1956_v36  ;;  %3443 = vmatprep.mubr.msk.bf16.mxu0 %vm4114_vm1, %v4113_v13  ;;  %v1811_v45 = vpack.c.bf16 %v1806_v40, %v1806_v40 }
 0x6bb   : > { %v3715_v38 = vpop.eup %3714  ;;  %3455 = vmatprep.subr.bf16.mxu0 %v4113_v13 }
 0x6bc   : > { %v1808_v39 = vmul.f32 %v3715_v38, %v3707_v10  ;;  %v3269_v10 = vld [vmem:[%s5023_s11] ss:$0 sm:$0xff] }
 0x6be   : > { %v1578_v42 = vld [vmem:[#allocation3 + $0x8] sm:$0xf]  ;;  %v1812_v43 = vpack.c.bf16 %v1808_v39, %v1808_v39 }
 0x6bf   : > { %v1910_v44 = vsel %vm1816_vm4, %v1578_v42, 0 }
 0x6c0   : > { %3436 = vmatpush3.bf16.msra.mxu1 %v1910_v44 }
 0x6c1   : > { %3444 = vmatmul.mubr.msk.bf16.vlgmr.msra.gmra.mrb[20].mxu0 %vm1580_vm3, %v1812_v43  ;;  %3447 = vmatprep.subr.bf16.mxu1 %v4113_v13 }
 0x6c2   : > { %3459 = vmatprep.mubr.msk.bf16.mxu0 %vm4114_vm1, %v4113_v13  ;;  %3456 = vmatpush3.bf16.msra.mxu0 %v3686_v27 }
 0x6c3   : > { %3438 = vmatmul.mubr.msk.bf16.vlgmr.msra.gmra.mrb[16].mxu1 %vm1580_vm3, %v1811_v45  ;;  %3457 = vmatprep.subr.bf16.mxu0 %v4113_v13 }
 0x6c4   : > { %3451 = vmatprep.mubr.msk.bf16.mxu1 %vm4114_vm1, %v4113_v13  ;;  %3448 = vmatpush3.bf16.msra.mxu1 %v3684_v46 }
 0x6c5   : > { %3449 = vmatprep.subr.bf16.mxu1 %v4113_v13 }
 0x6c6   : > { %3458 = vmatpush3.bf16.msra.mxu0 %v3687_v19 }
 0x6c7   : > { %3469 = vmatprep.subr.bf16.mxu0 %v4113_v13 }
 0x6c8   : > { %3450 = vmatpush3.bf16.msra.mxu1 %v3685_v50 }
 0x6c9   : > { %3463 = vmatprep.subr.bf16.mxu1 %v4113_v13 }
 0x78b   : > { %v1854_v47 = vpop.f32.mrb[12].mxu1 }
 0x78c   : > { %v1900_v48 = vpop.f32.mrb[16].mxu0  ;;  %v3427_v49 = vpop.f32.mrb[13].mxu1  ;;  %v1998_v5 = vpack.c.bf16 %v1854_v47, %v1854_v47 }
 0x78d   : > { %v1999_v51 = vpack.c.bf16 %v1900_v48, %v1900_v48  ;;  %v3433_v52 = vpop.f32.mrb[17].mxu0  ;;  %v1857_v53 = vpop.f32.mrb[14].mxu1  ;;  %v3280_v49 = vld [vmem:[%s5022_s4 + $0x1] ss:$0 sm:$0xff] }
 0x78e   : > { %v1903_v54 = vpop.f32.mrb[18].mxu0  ;;  %v3428_v55 = vpop.f32.mrb[15].mxu1 }
 0x78f   : > { %2003 = vrot.lane.b32.xlu0 %v1999_v51, %s4116_s14  ;;  %v3434_v56 = vpop.f32.mrb[19].mxu0 }
 0x794   : > { %v1992_v57 = vpop.f32.mrb[20].mxu0 }
 0x795   : > { %v3445_v58 = vpop.f32.mrb[21].mxu0  ;;  %v2001_v3 = vpack.c.bf16 %v1992_v57, %v1992_v57 }
 0x796   : > { %v1995_v59 = vpop.f32.mrb[22].mxu0  ;;  %v1946_v60 = vpop.f32.mrb[16].mxu1 }
 0x797   : > { %v2000_v61 = vpack.c.bf16 %v1946_v60, %v1946_v60  ;;  %v3446_v62 = vpop.f32.mrb[23].mxu0  ;;  %v3439_v63 = vpop.f32.mrb[17].mxu1 }
 0x798   : > { %v1949_v1 = vpop.f32.mrb[18].mxu1 }
 0x799   : > { %2006 = vrot.lane.b32.xlu1 %v2000_v61, %s4117_s22  ;;  %v3440_v2 = vpop.f32.mrb[19].mxu1 }
 0x79d   : > { %2009 = vrot.lane.b32.xlu1 %v2001_v3, %s4118_s0 }
 0x801   : > { %v2004_v41 = vpop.permute.xlu0 %2003 }
 0x802   : > { %v2013_v6 = vsel %vm1580_vm3, %v1998_v5, %v2004_v41 }
 0x80b   : > { %v2007_v4 = vpop.permute.xlu1 %2006 }
 0x80c   : > { %v2016_v7 = vsel %vm2014_vm5, %v2013_v6, %v2007_v4 }
 0x80f   : > { %v2010_v8 = vpop.permute.xlu1 %2009 }
 0x810   : > { %v2019_v9 = vsel %vm2017_vm6, %v2016_v7, %v2010_v8 }
 0x811   : > { %3452 = vmatmul.mubr.msk.bf16.vlgmr.msra.gmra.mrb[20].mxu1 %vm799_vm0, %v2019_v9 }
 0x812   : > { %3465 = vmatprep.mubr.msk.bf16.mxu1 %vm4114_vm1, %v4113_v13 }
 0x8e4   : > { %v2079_v11 = vpop.f32.mrb[20].mxu1 }
 0x8e5   : > { %v2080_v12 = vadd.f32 %v3269_v10, %v2079_v11  ;;  %v3453_v14 = vpop.f32.mrb[21].mxu1  ;;  %v1374_v11 = vld [vmem:[%s703_s23] sm:$0xf] }
 0x8e6   : > { %v2082_v15 = vpop.f32.mrb[22].mxu1 }
 0x8e7   : > { %v4734_v16 = vadd.f32 %v2080_v12, %v4602_v0  ;;  %v3454_v17 = vpop.f32.mrb[23].mxu1  ;;  %v1375_v12 = vunpack.c.l.bf16 %v1374_v11 }
 0x8e9   : > { %v2090_v18 = vsel %vm799_vm0, %v4734_v16, 0.0  ;;  %v3250_v14 = vadd.f32 -1.0, %v1375_v12 }
 0x8ea   : > { %2091 = vadd.xlane.f32.xlu0 %v2090_v18 }
 0x8eb   : > { %v1377_v15 = vmul.f32 1e+09, %v3250_v14 }
 0x917   : > { %1167 = vxpose.xlu0.c.b16.start.end [1/1] (short) (narrow) %v4739_v22, 32 }
 0x977   : > { %v2092_v23 = vpop.xlane.xlu0 %2091 }
 0x978   : > { %v2093_v24 = vmul.f32 0.03125, %v2092_v23 }
 0x97a   : > { %v2094_v25 = vsub.f32 %v4734_v16, %v2093_v24 }
 0x97c   : > { %v2095_v26 = vmul.f32 %v2094_v25, %v2094_v25 }
 0x97d   : > { %v1175_v38 = vpop.trf.xlu0 }
 0x97e   : > { %v2096_v0 = vsel %vm799_vm0, %v2095_v26, 0.0  ;;  %v3241_v39 = vcombine.low %v1175_v38, %v1175_v38  ;;  %v3242_v40 = vcombine.high %v1175_v38, %v1175_v38 }
 0x97f   : > { %2097 = vadd.xlane.f32.xlu1 %v2096_v0 }
 0x980   : > { %1197 = vxpose.xlu0.c.b16.start.end [1/1] (short) (narrow) %v3241_v39, 16 }
 0x981   : > { %v1176_v42 = vpop.trf.xlu0 }
 0x982   : > { %v3244_v43 = vcombine.high %v1176_v42, %v1176_v42  ;;  %v3243_v59 = vcombine.low %v1176_v42, %v1176_v42 }
 0x984   : > { %1213 = vxpose.xlu0.c.b16.start.end [1/1] (short) (narrow) %v3242_v40, 16 }
 0x988   : > { %1245 = vxpose.xlu0.c.b16.start.end [1/1] (short) (narrow) %v3244_v43, 16 }
 0x9e6   : > { %v1205_v44 = vpop.trf.xlu0 }
 0x9e7   : > { %1261 = vst.msk [vmem:[#allocation4] sm:$0xf] %vm990_vm2, %v1205_v44 }
 0x9ea   : > { %v1221_v45 = vpop.trf.xlu0 }
 0x9eb   : > { %1262 = vst.msk [vmem:[#allocation4 + $0x4] sm:$0xf] %vm990_vm2, %v1221_v45 }
 0x9ee   : > { %v1253_v46 = vpop.trf.xlu0  ;;  %v2282_v47 = vld [vmem:[#allocation4] sm:$0xf] }
 0x9ef   : > { %1264 = vst.msk [vmem:[#allocation4 + $0xc] sm:$0xf] %vm990_vm2, %v1253_v46  ;;  %v2294_v48 = vsel %vm1580_vm3, %v2282_v47, 0 }
 0x9f0   : > { %3464 = vmatpush3.bf16.xpose.msra.mxu1 %v2294_v48 }
 0x9f1   : > { %3475 = vmatprep.subr.bf16.mxu1 %v4113_v13 }
 0x9f2   : > { %v2283_v51 = vld [vmem:[#allocation4 + $0x4] sm:$0xf] }
 0x9f3   : > { %v2340_v54 = vsel %vm1580_vm3, %v2283_v51, 0 }
 0x9f6   : > { %v2285_v4 = vld [vmem:[#allocation4 + $0xc] sm:$0xf] }
 0x9f7   : > { %v2432_v6 = vsel %vm1580_vm3, %v2285_v4, 0 }
 0xa0c   : > { %v2098_v28 = vpop.xlane.xlu1 %2097 }
 0xa0d   : > { %v2099_v29 = vmul.f32 0.03125, %v2098_v28 }
 0xa0f   : > { %v2100_v30 = vadd.f32 1e-05, %v2099_v29 }
 0xa11   : > { %3716 = vrsqrt.f32 %v2100_v30 }
 0xa1b   : > { %v3717_v31 = vpop.eup %3716 }
 0xa1c   : > { %v2102_v33 = vmul.f32 %v3717_v31, %v2094_v25 }
 0xa1e   : > { %v2109_v35 = vmul.f32 %v3273_v32, %v2102_v33 }
 0xa20   : > { %v2116_v36 = vadd.f32 %v3274_v34, %v2109_v35 }
 0xa22   : > { %v2117_v37 = vpack.c.bf16 %v2116_v36, %v2116_v36 }
 0xa24   : > { %3460 = vmatmul.mubr.msk.bf16.vlgmr.msra.gmra.mrb[24].mxu0 %vm799_vm0, %v2117_v37 }
 0xa25   : > { %3471 = vmatprep.mubr.msk.bf16.mxu0 %vm4114_vm1, %v4113_v13  ;;  %3470 = vmatpush3.bf16.xpose.msra.mxu0 %v2340_v54 }
 0xa26   : > { %3481 = vmatprep.subr.bf16.mxu0 %v4113_v13 }
 0xaf7   : > { %v2180_v50 = vpop.f32.mrb[24].mxu0 }
 0xaf8   : > { %v2181_v52 = vadd.f32 %v3280_v49, %v2180_v50  ;;  %v3461_v53 = vpop.f32.mrb[25].mxu0 }
 0xaf9   : > { %v2183_v55 = vpop.f32.mrb[26].mxu0 }
 0xafa   : > { %v2186_v56 = vmul.f32 0.35355338, %v2181_v52  ;;  %v3462_v57 = vpop.f32.mrb[27].mxu0 }
 0xafc   : > { %v2187_v58 = vpack.c.bf16 %v2186_v56, %v2186_v56 }
 0xafe   : > { %2188 = vxpose.xlu1.c.b16.start.end [1/1] (short) (narrow) %v2187_v58, 32 }
 0xb03   : > { %1229 = vxpose.xlu1.c.b16.start.end [1/1] (short) (narrow) %v3243_v59, 16 }
 0xb64   : > { %v2196_v60 = vpop.trf.xlu1 }
 0xb65   : > { %v3285_v61 = vcombine.high %v2196_v60, %v2196_v60  ;;  %v3284_v62 = vcombine.low %v2196_v60, %v2196_v60 }
 0xb67   : > { %2234 = vxpose.xlu0.c.b16.start.end [1/1] (short) (narrow) %v3285_v61, 16  ;;  %2218 = vxpose.xlu1.c.b16.start.end [1/1] (short) (narrow) %v3284_v62, 16 }
 0xb68   : > { %v2197_v63 = vpop.trf.xlu1 }
 0xb69   : > { %v3287_v1 = vcombine.high %v2197_v63, %v2197_v63  ;;  %v3286_v2 = vcombine.low %v2197_v63, %v2197_v63 }
 0xb6b   : > { %2266 = vxpose.xlu0.c.b16.start.end [1/1] (short) (narrow) %v3287_v1, 16  ;;  %2250 = vxpose.xlu1.c.b16.start.end [1/1] (short) (narrow) %v3286_v2, 16 }
 0xb6c   : > { %v1237_v3 = vpop.trf.xlu1 }
 0xb6d   : > { %1263 = vst.msk [vmem:[#allocation4 + $0x8] sm:$0xf] %vm990_vm2, %v1237_v3 }
 0xb74   : > { %v2284_v41 = vld [vmem:[#allocation4 + $0x8] sm:$0xf] }
 0xb75   : > { %v2386_v5 = vsel %vm1580_vm3, %v2284_v41, 0 }
 0xbcd   : > { %v2226_v7 = vpop.trf.xlu1  ;;  %v2242_v8 = vpop.trf.xlu0 }
 0xbce   : > { %3466 = vmatmul.mubr.msk.bf16.vlgmr.msra.gmra.mrb[24].mxu1 %vm1580_vm3, %v2226_v7  ;;  %3472 = vmatmul.mubr.msk.bf16.vlgmr.msra.gmra.mrb[28].mxu0 %vm1580_vm3, %v2242_v8 }
 0xbcf   : > { %3476 = vmatpush3.bf16.xpose.msra.mxu1 %v2386_v5  ;;  %3482 = vmatpush3.bf16.xpose.msra.mxu0 %v2432_v6 }
 0xbd0   : > { %3477 = vmatprep.mubr.msk.bf16.mxu1 %vm4114_vm1, %v4113_v13  ;;  %3483 = vmatprep.mubr.msk.bf16.mxu0 %vm4114_vm1, %v4113_v13 }
 0xbd1   : > { %3487 = vmatprep.subr.bf16.mxu1 %v4113_v13  ;;  %3493 = vmatprep.subr.bf16.mxu0 %v4113_v13  ;;  %v2258_v9 = vpop.trf.xlu1  ;;  %v2274_v10 = vpop.trf.xlu0 }
 0xbd6   : > { %3478 = vmatmul.mubr.msk.bf16.vlgmr.msra.gmra.mrb[28].mxu1 %vm1580_vm3, %v2258_v9  ;;  %3484 = vmatmul.mubr.msk.bf16.vlgmr.msra.gmra.mrb[32].mxu0 %vm1580_vm3, %v2274_v10 }
 0xbd7   : > { %3489 = vmatprep.mubr.msk.bf16.mxu1 %vm4114_vm1, %v4113_v13  ;;  %3495 = vmatprep.mubr.msk.bf16.mxu0 %vm4114_vm1, %v4113_v13 }
 0xca1   : > { %v2330_v17 = vpop.f32.mrb[24].mxu1  ;;  %v2376_v18 = vpop.f32.mrb[28].mxu0 }
 0xca2   : > { %v2331_v20 = vadd.f32 %v2330_v17, %v1377_v15  ;;  %v2377_v21 = vadd.f32 %v2376_v18, %v1377_v15  ;;  %v3467_v23 = vpop.f32.mrb[25].mxu1  ;;  %v3473_v24 = vpop.f32.mrb[29].mxu0 }
 0xca3   : > { %v2333_v25 = vpop.f32.mrb[26].mxu1  ;;  %v2379_v26 = vpop.f32.mrb[30].mxu0 }
 0xca4   : > { %v3468_v0 = vpop.f32.mrb[27].mxu1  ;;  %v2477_v27 = vsel %vm1580_vm3, %v2377_v21, -inf  ;;  %v2474_v19 = vsel %vm1580_vm3, %v2331_v20, -inf  ;;  %v3474_v28 = vpop.f32.mrb[31].mxu0 }
 0xca5   : > { %2478 = vmax.xlane.f32.xlu0 %v2477_v27  ;;  %2475 = vmax.xlane.f32.xlu1 %v2474_v19 }
 0xca9   : > { %v2422_v29 = vpop.f32.mrb[28].mxu1  ;;  %v2468_v30 = vpop.f32.mrb[32].mxu0 }
 0xcaa   : > { %v2423_v31 = vadd.f32 %v2422_v29, %v1377_v15  ;;  %v2469_v32 = vadd.f32 %v2468_v30, %v1377_v15  ;;  %v3479_v33 = vpop.f32.mrb[29].mxu1  ;;  %v3485_v34 = vpop.f32.mrb[33].mxu0 }
 0xcab   : > { %v2425_v35 = vpop.f32.mrb[30].mxu1  ;;  %v2471_v36 = vpop.f32.mrb[34].mxu0  ;;  %v3688_v34 = vld [vmem:[#allocation18 + $0x10] sm:$0xff]  }
 0xcac   : > { %v3480_v37 = vpop.f32.mrb[31].mxu1  ;;  %v2483_v38 = vsel %vm1580_vm3, %v2469_v32, -inf  ;;  %v2480_v39 = vsel %vm1580_vm3, %v2423_v31, -inf  ;;  %v3486_v40 = vpop.f32.mrb[35].mxu0  ;;  %v3689_v35 = vld [vmem:[#allocation18 + $0x18] sm:$0xff]  }
 0xcad   : > { %2484 = vmax.xlane.f32.xlu0 %v2483_v38  ;;  %2481 = vmax.xlane.f32.xlu1 %v2480_v39 }
 0xcbe   : > { %1266 = vrot.lane.b32.xlu1 %v4739_v22, %s4115_s9 }
 0xd32   : > { %v2476_v42 = vpop.xlane.xlu1 %2475  ;;  %v2479_v45 = vpop.xlane.xlu0 %2478 }
 0xd33   : > { %v2487_v46 = vsub.f32 %v2377_v21, %v2479_v45  ;;  %v2486_v47 = vsub.f32 %v2331_v20, %v2476_v42 }
 0xd35   : > { %v2492_v49 = vmul.f32 1.442695, %v2487_v46  ;;  %v2490_v50 = vmul.f32 1.442695, %v2486_v47 }
 0xd37   : > { %3718 = vpow2.f32 %v2492_v49 }
 0xd38   : > { %3720 = vpow2.f32 %v2490_v50 }
 0xd3a   : > { %v2482_v43 = vpop.xlane.xlu1 %2481  ;;  %v2485_v48 = vpop.xlane.xlu0 %2484 }
 0xd3b   : > { %v2488_v51 = vsub.f32 %v2423_v31, %v2482_v43  ;;  %v2489_v55 = vsub.f32 %v2469_v32, %v2485_v48 }
 0xd3d   : > { %v2494_v56 = vmul.f32 1.442695, %v2488_v51  ;;  %v2496_v22 = vmul.f32 1.442695, %v2489_v55 }
 0xd3e   : > { %v1267_v44 = vpop.permute.xlu1 %1266 }
 0xd3f   : > { %1269 = vxpose.xlu0.c.b16.start.end [1/1] (short) (narrow) %v1267_v44, 32  ;;  %3722 = vpow2.f32 %v2494_v56 }
 0xd40   : > { %3724 = vpow2.f32 %v2496_v22 }
 0xd41   : > { %v3719_v57 = vpop.eup %3718 }
 0xd42   : > { %v3721_v58 = vpop.eup %3720  ;;  %v2501_v59 = vsel %vm1580_vm3, %v3719_v57, 0.0 }
 0xd43   : > { %v2498_v60 = vsel %vm1580_vm3, %v3721_v58, 0.0 }
 0xd49   : > { %v3723_v61 = vpop.eup %3722 }
 0xd4a   : > { %v2504_v62 = vsel %vm1580_vm3, %v3723_v61, 0.0  ;;  %v3725_v63 = vpop.eup %3724 }
 0xd4b   : > { %v2507_v1 = vsel %vm1580_vm3, %v3725_v63, 0.0 }
 0xda5   : > { %v1277_v52 = vpop.trf.xlu0 }
 0xda6   : > { %v3245_v53 = vcombine.low %v1277_v52, %v1277_v52  ;;  %v3246_v54 = vcombine.high %v1277_v52, %v1277_v52 }
 0xda8   : > { %1315 = vxpose.xlu0.c.b16.start.end [1/1] (short) (narrow) %v3246_v54, 16  ;;  %1299 = vxpose.xlu1.c.b16.start.end [1/1] (short) (narrow) %v3245_v53, 16 }
 0xda9   : > { %v1278_v2 = vpop.trf.xlu0 }
 0xdaa   : > { %v3248_v3 = vcombine.high %v1278_v2, %v1278_v2  ;;  %v3247_v41 = vcombine.low %v1278_v2, %v1278_v2 }
 0xdb5   : > { %2502 = vadd.xlane.f32.xlu0 %v2501_v59  ;;  %2499 = vadd.xlane.f32.xlu1 %v2498_v60 }
 0xdb9   : > { %2505 = vadd.xlane.f32.xlu1 %v2504_v62  ;;  %v3297_v62 = vld [vmem:[%s5023_s11 + $0x1] ss:$0 sm:$0xff] }
 0xdbd   : > { %2508 = vadd.xlane.f32.xlu1 %v2507_v1 }
 0xde2   : > { %1347 = vxpose.xlu0.c.b16.start.end [1/1] (short) (narrow) %v3248_v3, 16 }
 0xdea   : > { %1331 = vxpose.xlu1.c.b16.start.end [1/1] (short) (narrow) %v3247_v41, 16 }
 0xe0e   : > { %v1307_v4 = vpop.trf.xlu1  ;;  %v1323_v5 = vpop.trf.xlu0 }
 0xe0f   : > { %1363 = vst.msk [vmem:[#allocation5] sm:$0xf] %vm990_vm2, %v1307_v4  ;;  %1364 = vst.msk [vmem:[#allocation5 + $0x4] sm:$0xf] %vm990_vm2, %v1323_v5 }
 0xe16   : > { %v2286_v6 = vld [vmem:[#allocation5] sm:$0xf]  ;;  %v2287_v7 = vld [vmem:[#allocation5 + $0x4] sm:$0xf] }
 0xe17   : > { %v2526_v8 = vsel %vm1816_vm4, %v2286_v6, 0  ;;  %v2572_v9 = vsel %vm1816_vm4, %v2287_v7, 0 }
 0xe18   : > { %3488 = vmatpush3.bf16.msra.mxu1 %v2526_v8  ;;  %3494 = vmatpush3.bf16.msra.mxu0 %v2572_v9 }
 0xe19   : > { %3505 = vmatprep.subr.bf16.mxu0 %v4113_v13  ;;  %3499 = vmatprep.subr.bf16.mxu1 %v4113_v13 }
 0xe42   : > { %v2500_v10 = vpop.xlane.xlu1 %2499  ;;  %v2503_v11 = vpop.xlane.xlu0 %2502 }
 0xe43   : > { %3726 = vrcp.f32 %v2500_v10 }
 0xe44   : > { %3728 = vrcp.f32 %v2503_v11  ;;  %v3690_v11 = vld [vmem:[#allocation20] sm:$0xff]  }
 0xe46   : > { %v2506_v12 = vpop.xlane.xlu1 %2505 }
 0xe47   : > { %3730 = vrcp.f32 %v2506_v12  ;;  %v3691_v12 = vld [vmem:[#allocation20 + $0x8] sm:$0xff]  }
 0xe48   : > { %v1355_v14 = vpop.trf.xlu0 }
 0xe49   : > { %1366 = vst.msk [vmem:[#allocation5 + $0xc] sm:$0xf] %vm990_vm2, %v1355_v14  ;;  %v3693_v14 = vld [vmem:[%s5024_s19 + $0x8] sm:$0xff]  }
 0xe4a   : > { %v2509_v15 = vpop.xlane.xlu1 %2508 }
 0xe4b   : > { %3732 = vrcp.f32 %v2509_v15 }
 0xe4d   : > { %v3727_v17 = vpop.eup %3726 }
 0xe4e   : > { %v3729_v18 = vpop.eup %3728  ;;  %v2511_v20 = vmul.f32 %v3727_v17, %v3721_v58 }
 0xe4f   : > { %v2513_v21 = vmul.f32 %v3729_v18, %v3719_v57 }
 0xe50   : > { %v1339_v23 = vpop.trf.xlu1  ;;  %v2518_v24 = vpack.c.bf16 %v2511_v20, %v2511_v20  ;;  %v2289_v25 = vld [vmem:[#allocation5 + $0xc] sm:$0xf] }
 0xe51   : > { %1365 = vst.msk [vmem:[#allocation5 + $0x8] sm:$0xf] %vm990_vm2, %v1339_v23  ;;  %v2519_v26 = vpack.c.bf16 %v2513_v21, %v2513_v21  ;;  %v2664_v0 = vsel %vm1816_vm4, %v2289_v25, 0  ;;  %v3731_v27 = vpop.eup %3730  ;;  %v3301_v21 = vld [vmem:[#allocation14 + $0x2] ss:$0 sm:$0xff] }
 0xe52   : > { %3490 = vmatmul.mubr.msk.bf16.vlgmr.msra.gmra.mrb[32].mxu1 %vm1580_vm3, %v2518_v24  ;;  %v2515_v29 = vmul.f32 %v3731_v27, %v3723_v61  ;;  %v3302_v24 = vld [vmem:[#allocation15 + $0x2] ss:$0 sm:$0xff]  ;;  %v3694_v27 = vld [vmem:[%s5024_s19 + $0x10] sm:$0xff]  }
 0xe53   : > { %3496 = vmatmul.mubr.msk.bf16.vlgmr.msra.gmra.mrb[36].mxu0 %vm1580_vm3, %v2519_v26  ;;  %3501 = vmatprep.mubr.msk.bf16.mxu1 %vm4114_vm1, %v4113_v13 }
 0xe54   : > { %3506 = vmatpush3.bf16.msra.mxu0 %v2664_v0  ;;  %3507 = vmatprep.mubr.msk.bf16.mxu0 %vm4114_vm1, %v4113_v13  ;;  %v2520_v33 = vpack.c.bf16 %v2515_v29, %v2515_v29 }
 0xe55   : > { %v3733_v19 = vpop.eup %3732  ;;  %3519 = vmatprep.subr.bf16.mxu0 %v4113_v13 }
 0xe56   : > { %v2517_v28 = vmul.f32 %v3733_v19, %v3725_v63  ;;  %v3695_v19 = vld [vmem:[%s5024_s19 + $0x18] sm:$0xff]  }
 0xe58   : > { %v2288_v30 = vld [vmem:[#allocation5 + $0x8] sm:$0xf]  ;;  %v2521_v31 = vpack.c.bf16 %v2517_v28, %v2517_v28  ;;  %v3303_v28 = vld [vmem:[%s5026_s2] ss:$0 sm:$0xff] }
 0xe59   : > { %v2618_v32 = vsel %vm1816_vm4, %v2288_v30, 0 }
 0xe5a   : > { %3500 = vmatpush3.bf16.msra.mxu1 %v2618_v32 }
 0xe5b   : > { %3508 = vmatmul.mubr.msk.bf16.vlgmr.msra.gmra.mrb[40].mxu0 %vm1580_vm3, %v2521_v31  ;;  %3511 = vmatprep.subr.bf16.mxu1 %v4113_v13 }
 0xe5c   : > { %3523 = vmatprep.mubr.msk.bf16.mxu0 %vm4114_vm1, %v4113_v13  ;;  %3520 = vmatpush3.bf16.msra.mxu0 %v3690_v11 }
 0xe5d   : > { %3502 = vmatmul.mubr.msk.bf16.vlgmr.msra.gmra.mrb[36].mxu1 %vm1580_vm3, %v2520_v33  ;;  %3521 = vmatprep.subr.bf16.mxu0 %v4113_v13 }
 0xe5e   : > { %3515 = vmatprep.mubr.msk.bf16.mxu1 %vm4114_vm1, %v4113_v13  ;;  %3512 = vmatpush3.bf16.msra.mxu1 %v3688_v34 }
 0xe5f   : > { %3513 = vmatprep.subr.bf16.mxu1 %v4113_v13 }
 0xe60   : > { %3522 = vmatpush3.bf16.msra.mxu0 %v3691_v12 }
 0xe62   : > { %3514 = vmatpush3.bf16.msra.mxu1 %v3689_v35 }
 0xe63   : > { %3527 = vmatprep.subr.bf16.mxu1 %v4113_v13 }
 0xf25   : > { %v2562_v36 = vpop.f32.mrb[32].mxu1 }
 0xf26   : > { %v2608_v37 = vpop.f32.mrb[36].mxu0  ;;  %v3491_v38 = vpop.f32.mrb[33].mxu1  ;;  %v2706_v22 = vpack.c.bf16 %v2562_v36, %v2562_v36  ;;  %v3312_v36 = vld [vmem:[%s5027_s18] ss:$0 sm:$0xff] }
 0xf27   : > { %v2707_v39 = vpack.c.bf16 %v2608_v37, %v2608_v37  ;;  %v3497_v40 = vpop.f32.mrb[37].mxu0  ;;  %v2565_v42 = vpop.f32.mrb[34].mxu1 }
 0xf28   : > { %v2611_v43 = vpop.f32.mrb[38].mxu0  ;;  %v3492_v44 = vpop.f32.mrb[35].mxu1 }
 0xf29   : > { %2711 = vrot.lane.b32.xlu1 %v2707_v39, %s4116_s14  ;;  %v3498_v45 = vpop.f32.mrb[39].mxu0  ;;  %s5029_s14 = sld [smem:[#allocation49_spill]] }
 0xf2e   : > { %v2700_v46 = vpop.f32.mrb[40].mxu0 }
 0xf2f   : > { %v2709_v47 = vpack.c.bf16 %v2700_v46, %v2700_v46  ;;  %v3509_v48 = vpop.f32.mrb[41].mxu0 }
 0xf30   : > { %v2703_v49 = vpop.f32.mrb[42].mxu0  ;;  %v2654_v50 = vpop.f32.mrb[36].mxu1 }
 0xf31   : > { %2717 = vrot.lane.b32.xlu1 %v2709_v47, %s4118_s0  ;;  %v2708_v51 = vpack.c.bf16 %v2654_v50, %v2654_v50  ;;  %v3510_v52 = vpop.f32.mrb[43].mxu0  ;;  %v3503_v53 = vpop.f32.mrb[37].mxu1  ;;  %s5025_s0 = sld [smem:[#allocation31_spill]] }
 0xf32   : > { %v2657_v54 = vpop.f32.mrb[38].mxu1 }
 0xf33   : > { %2714 = vrot.lane.b32.xlu0 %v2708_v51, %s4117_s22  ;;  %v3504_v55 = vpop.f32.mrb[39].mxu1 }
 0xf37   : > { %s3314_s23 = sshll.u32 %s5025_s0, 7  ;;  %s2981_s0 = scalar_lea.sflag [#allocation8], %s4565_s17 }
 0xf38   : > { %s4864_s22 = scalar_lea.hbm %s5029_s14, %s3314_s23 }
 0xf9b   : > { %v2712_v56 = vpop.permute.xlu1 %2711 }
 0xf9c   : > { %v2721_v57 = vsel %vm1580_vm3, %v2706_v22, %v2712_v56 }
 0xfa3   : > { %v2718_v59 = vpop.permute.xlu1 %2717 }
 0xfa5   : > { %v2715_v58 = vpop.permute.xlu0 %2714 }
 0xfa6   : > { %v2723_v60 = vsel %vm2014_vm5, %v2721_v57, %v2715_v58 }
 0xfa7   : > { %v2725_v61 = vsel %vm2017_vm6, %v2723_v60, %v2718_v59 }
 0xfa8   : > { %3516 = vmatmul.mubr.msk.bf16.vlgmr.msra.gmra.mrb[40].mxu1 %vm799_vm0, %v2725_v61 }
 0xfa9   : > { %3535 = vmatprep.mubr.msk.bf16.mxu1 %vm4114_vm1, %v4113_v13 }
0x107b   : > { %v2787_v63 = vpop.f32.mrb[40].mxu1 }
0x107c   : > { %v2788_v1 = vadd.f32 %v3297_v62, %v2787_v63  ;;  %v3517_v2 = vpop.f32.mrb[41].mxu1 }
0x107d   : > { %v2790_v3 = vpop.f32.mrb[42].mxu1 }
0x107e   : > { %v2793_v41 = vadd.f32 %v2788_v1, %v4734_v16  ;;  %v3518_v4 = vpop.f32.mrb[43].mxu1  ;;  %v3692_v16 = vld [vmem:[%s5024_s19] sm:$0xff]  }
0x107f   : > { %3528 = vmatpush3.bf16.msra.mxu1 %v3692_v16 }
0x1080   : > { %v2798_v5 = vsel %vm799_vm0, %v2793_v41, 0.0  ;;  %3529 = vmatprep.subr.bf16.mxu1 %v4113_v13 }
0x1081   : > { %2799 = vadd.xlane.f32.xlu1 %v2798_v5 }
0x1083   : > { %3530 = vmatpush3.bf16.msra.mxu1 %v3693_v14 }
0x1084   : > { %3531 = vmatprep.subr.bf16.mxu1 %v4113_v13 }
0x1087   : > { %3532 = vmatpush3.bf16.msra.mxu1 %v3694_v27 }
0x1088   : > { %3533 = vmatprep.subr.bf16.mxu1 %v4113_v13 }
0x108b   : > { %3534 = vmatpush3.bf16.msra.mxu1 %v3695_v19 }
0x110e   : > { %v2800_v6 = vpop.xlane.xlu1 %2799 }
0x110f   : > { %v2801_v7 = vmul.f32 0.03125, %v2800_v6 }
0x1111   : > { %v2802_v8 = vsub.f32 %v2793_v41, %v2801_v7 }
0x1113   : > { %v2803_v9 = vmul.f32 %v2802_v8, %v2802_v8 }
0x1115   : > { %v2804_v10 = vsel %vm799_vm0, %v2803_v9, 0.0 }
0x1116   : > { %2805 = vadd.xlane.f32.xlu0 %v2804_v10 }
0x11a3   : > { %v2806_v15 = vpop.xlane.xlu0 %2805 }
0x11a4   : > { %v2807_v17 = vmul.f32 0.03125, %v2806_v15 }
0x11a6   : > { %v2808_v18 = vadd.f32 1e-05, %v2807_v17 }
0x11a8   : > { %3734 = vrsqrt.f32 %v2808_v18 }
0x11b2   : > { %v3735_v20 = vpop.eup %3734 }
0x11b3   : > { %v2810_v23 = vmul.f32 %v3735_v20, %v2802_v8 }
0x11b5   : > { %v2817_v25 = vmul.f32 %v3301_v21, %v2810_v23 }
0x11b7   : > { %v2824_v26 = vadd.f32 %v3302_v24, %v2817_v25 }
0x11b9   : > { %v2825_v0 = vpack.c.bf16 %v2824_v26, %v2824_v26 }
0x11bb   : > { %3524 = vmatmul.mubr.msk.bf16.vlgmr.msra.gmra.mrb[44].mxu0 %vm799_vm0, %v2825_v0 }
0x128e   : > { %v2886_v29 = vpop.f32.mrb[44].mxu0 }
0x128f   : > { %v2887_v30 = vadd.f32 %v3303_v28, %v2886_v29  ;;  %v3525_v31 = vpop.f32.mrb[45].mxu0 }
0x1290   : > { %v2889_v32 = vpop.f32.mrb[46].mxu0 }
0x1291   : > { %v2892_v33 = vmax.f32 %v2887_v30, 0.0  ;;  %v3526_v34 = vpop.f32.mrb[47].mxu0 }
0x1293   : > { %v2893_v35 = vpack.c.bf16 %v2892_v33, %v2892_v33 }
0x1295   : > { %3536 = vmatmul.mubr.msk.bf16.vlgmr.msra.gmra.mrb[44].mxu1 %vm2926_vm7, %v2893_v35 }
0x1368   : > { %v2964_v13 = vpop.f32.mrb[44].mxu1 }
0x1369   : > { %v2970_v37 = vadd.f32 %v2964_v13, %v2793_v41  ;;  %v3537_v38 = vpop.f32.mrb[45].mxu1 }
0x136a   : > { %v2967_v39 = vpop.f32.mrb[46].mxu1 }
0x136b   : > { %v2978_v40 = vadd.f32 %v3312_v36, %v2970_v37  ;;  %v3538_v42 = vpop.f32.mrb[47].mxu1 }
0x136d   : > { %2979 = vst.msk [vmem:[%s790_s27] sm:$0xff] %vm799_vm0, %v2978_v40 }
0x136e   : > { %4009 = shalt.err (!%p4006_p8)
}
0x136f   : > { %s4010_s17 = scalar_lea.hbm %s4864_s22, 128  ;;  %s4014_s10 = scalar_lea.hbm %s5029_s14, 256 }
0x1370   : > { %p4011_p10 = scmp.ne.s32.totalorder %s4864_s22, %s4010_s17  ;;  %p4015_p6 = scmp.lt.u32.totalorder %s4864_s22, %s5029_s14 }
0x1371   : > { %p4016_p11 = scmp.lt.u32.totalorder %s4014_s10, %s4010_s17  ;;  %p4018_p1 = scmp.lt.u32.totalorder %s4010_s17, %s4864_s22 }
0x1372   : > { %p4012_p7 = pnand %p4011_p10, %p5030_p9 }
0x1373   : > { %p4017_p5 = por %p4016_p11, %p4015_p6 }
0x1374   : > { %p4013_p12 = pneg %p4012_p7 }
0x1375   : > { %p4019_p2 = por %p4018_p1, %p4017_p5 }
0x1377   : > { %p4020_p0 = pnand %p4019_p2, %p4013_p12 }
0x1379   : > { %4023 = shalt.err (!%p4020_p0)
}
0x137a   : > { %3567 = dma.vmem_to_hbm [thread:$0]  (%p5030_p9), %s4866_s16, 128, %s4864_s22, %s2981_s0  }
0x137b PF: > { %s5031_s23 = sld [smem:[#allocation29_spill]]  ;;  %s5032_s27 = sld [smem:[#allocation35_spill]] }
0x137c   : > { %p5034_p13 = scmp.ge.s32.totalorder %s4098_s30, 2 }
0x1381   : > { %s3007_s25 = sand.u32 1, %s5031_s23   ;;  %p5033_p4 = scmp.ne.s32.totalorder %s5032_s27, 0 }
0x1382   : > { %s3008_s9 = scalar_lea.sflag [#allocation8], %s3007_s25 }
0x1383   : > { %p3599_p3 = pnand %p5034_p13, %p5033_p4 }
0x1385   : > { %4073 = dma.done.wait (!%p3599_p3), %s3008_s9, 128  }
0x1386   : > { %4075 = vsyncadd (!%p3599_p3), %s3008_s9, 4294967168  ;;  %s42_s30 = sadd.s32 1, %s4098_s30   ;;  %s5035_s1 = sld [smem:[#allocation30_spill]] }
0x1387   : > { %p39_p8 = scmp.ge.s32.totalorder %s42_s30, 4   ;;  %s5036_s16 = sld [smem:[#allocation34_spill]] }
0x1388   : > { %s5037_s20 = sld [smem:[#allocation32_spill]]  ;;  %s5038_s27 = smov %s4082_s28 }
0x1389   : > { %s5040_s17 = smov %s4094_s29  ;;  %41 = sbr.rel (!%p39_p8) target bundleno = 27 (0x1b), region = 209 }
0x138c   : > { %s5039_s28 = smov %s5035_s1 }
0x138e   : > { %s5041_s29 = smov %s5037_s20 }
0x1390   :  { %3013 = vsyncpa [#allocation7], 1 }
0x1391   :  { %3015 = vsyncpa [#allocation7 + $0x1], 1 }
0x1392   :  { %3016 = vsyncpa [#allocation10], 1 }
0x1393   :  { %3018 = vsyncpa [#allocation10 + $0x1], 1 }
0x1394   :  { %3019 = vsyncpa [#allocation13], 1 }
0x1395   :  { %3021 = vsyncpa [#allocation13 + $0x1], 1 }
0x1396   :  { %3022 = vsyncpa [#allocation16], 1 }
0x1397   :  { %3023 = vsyncpa [#allocation19], 1 }
0x1398   :  { %3024 = vsyncpa [#allocation8], 1 }
0x1399   :  { %3026 = vsyncpa [#allocation8 + $0x1], 1 }

</bundles_post_ra>
